<compile_context>
chip_gen: v7x
topology: tpu7x:2x2x1
jax: 0.10.0
libtpu: 0.0.40
codegen_flags: <defaults>
</compile_context>

<pallas_src>
import functools

import jax
import jax.numpy as jnp
from jax.experimental import pallas as pl
from jax.experimental.pallas import tpu as pltpu


def _round_up(x, m):
    return (x + m - 1) // m * m


# ----------------------------------------------------------------------------
# Fused BasicBlock kernel (one batch element per grid step)
# ----------------------------------------------------------------------------
def _basic_block_kernel(x_ref, w1_ref, s1_ref, b1_ref, w2_ref, s2_ref, b2_ref,
                        wd_ref, sd_ref, bd_ref, o_ref,
                        xpad_ref, lhs1_ref, o1pad_ref, lhs2_ref, *,
                        stride, h, w, cin, p, cp, ho, wo, cdt):
    """Fused: relu(bn2(conv2(relu(bn1(conv1(x))))) + downsample/identity(x)).

    x_ref   : (1, H, W, Cin)          input image (NHWC)
    w1_ref  : (9*Cin, P)   cdt        conv1 weight, HWIO flattened over 3x3
    s1/b1   : (1, P)       f32        folded BN1 scale / bias
    w2_ref  : (9*P, CP)    cdt        conv2 weight, cols zero-padded to CP
    s2/b2   : (1, CP)      f32        folded BN2 (zero beyond P)
    wd_ref  : (Cin, CP)    f32        1x1 downsample weight, or identity matrix
    sd/bd   : (1, CP)      f32        folded BN of downsample (or 1 / 0)
    o_ref   : (1, Ho, Wo, CP)         lane-dense (CP % 128 == 0) output
    scratch : xpad (H+2,W+2,Cin), lhs1 (Ho,Wo,9*Cin),
              o1pad (Ho+2,Wo+2,P), lhs2 (Ho,Wo,9*P)   all f32 VMEM
    """
    m = ho * wo

    def win(ref, dy, dx, s):
        if s == 1:
            return ref[pl.ds(dy, ho), pl.ds(dx, wo), :]
        return ref[pl.ds(dy, ho, s), pl.ds(dx, wo, s), :]

    # -- stage 0: zero-pad the input into a VMEM halo buffer (padding=1) -----
    xpad_ref[...] = jnp.zeros_like(xpad_ref)
    xpad_ref[pl.ds(1, h), pl.ds(1, w), :] = x_ref[0]

    # -- stage 1: conv1 (3x3, stride) + BN1 + ReLU as ONE im2col matmul ------
    for k in range(9):
        dy, dx = k // 3, k % 3
        lhs1_ref[:, :, pl.ds(k * cin, cin)] = win(xpad_ref, dy, dx, stride)
    y1 = jnp.dot(lhs1_ref[...].reshape(m, 9 * cin).astype(cdt), w1_ref[...],
                 preferred_element_type=jnp.float32)
    y1 = jnp.maximum(y1 * s1_ref[...] + b1_ref[...], 0.0)          # f32 epilogue

    # -- stage 2: zero-pad conv1 output in VMEM for conv2's halo -------------
    o1pad_ref[...] = jnp.zeros_like(o1pad_ref)
    o1pad_ref[pl.ds(1, ho), pl.ds(1, wo), :] = y1.reshape(ho, wo, p)

    # -- stage 3: conv2 (3x3, stride 1) + BN2 as ONE im2col matmul -----------
    for k in range(9):
        dy, dx = k // 3, k % 3
        lhs2_ref[:, :, pl.ds(k * p, p)] = win(o1pad_ref, dy, dx, 1)
    y2 = jnp.dot(lhs2_ref[...].reshape(m, 9 * p).astype(cdt), w2_ref[...],
                 preferred_element_type=jnp.float32)
    y2 = y2 * s2_ref[...] + b2_ref[...]

    # -- stage 4: residual branch (1x1 downsample conv + BN, or exact identity
    #    expressed as an identity-matrix weight), add, final ReLU.  Kept in f32
    #    so the identity pass-through is bit-exact. ---------------------------
    xs = win(xpad_ref, 1, 1, stride).reshape(m, cin)
    ident = jnp.dot(xs, wd_ref[...], preferred_element_type=jnp.float32)
    ident = ident * sd_ref[...] + bd_ref[...]

    o_ref[0] = jnp.maximum(y2 + ident, 0.0).reshape(ho, wo, cp)


# ----------------------------------------------------------------------------
# BN folding / parameter init
# ----------------------------------------------------------------------------
def fold_bn(gamma, beta, mean, var, eps=1e-5):
    scale = gamma / jnp.sqrt(var + eps)
    bias = beta - mean * scale
    return scale, bias


def init_basic_block(key, in_planes, planes):
    """Deterministic synthetic parameters matching BasicBlock.__init__ shapes."""
    ks = jax.random.split(key, 16)

    def bn_params(k, c):
        k0, k1, k2, k3 = jax.random.split(k, 4)
        return dict(
            gamma=1.0 + 0.1 * jax.random.normal(k0, (c,), jnp.float32),
            beta=0.1 * jax.random.normal(k1, (c,), jnp.float32),
            mean=0.05 * jax.random.normal(k2, (c,), jnp.float32),
            var=0.5 + jnp.abs(jax.random.normal(k3, (c,), jnp.float32)),
        )

    params = {
        "w1": 0.1 * jax.random.normal(ks[0], (3, 3, in_planes, planes), jnp.float32),
        "bn1": bn_params(ks[1], planes),
        "w2": 0.1 * jax.random.normal(ks[2], (3, 3, planes, planes), jnp.float32),
        "bn2": bn_params(ks[3], planes),
    }
    if in_planes != planes:  # explosion == 1
        params["wd"] = 0.1 * jax.random.normal(ks[4], (in_planes, planes), jnp.float32)
        params["bnd"] = bn_params(ks[5], planes)
    return params


# ----------------------------------------------------------------------------
# Public forward (fused single pallas_call)
# ----------------------------------------------------------------------------
def basic_block_forward(x_nchw, params, *, stride=1, compute_dtype=jnp.float32):
    x = jnp.transpose(x_nchw, (0, 2, 3, 1)).astype(jnp.float32)     # NCHW -> NHWC
    n, h, w, cin = x.shape
    p = params["w1"].shape[-1]
    cp = _round_up(p, 128)                      # lane-dense output channels
    ho = (h - 1) // stride + 1
    wo = (w - 1) // stride + 1

    s1, b1 = fold_bn(**params["bn1"])
    s2, b2 = fold_bn(**params["bn2"])

    # conv weights, HWIO flattened over the 3x3 window; conv2 cols zero-padded.
    w1 = params["w1"].reshape(9 * cin, p).astype(compute_dtype)
    w2 = jnp.pad(params["w2"].reshape(9 * p, p),
                 ((0, 0), (0, cp - p))).astype(compute_dtype)
    s2p = jnp.pad(s2, (0, cp - p))
    b2p = jnp.pad(b2, (0, cp - p))

    if "wd" in params:
        sd, bd = fold_bn(**params["bnd"])
        wd = params["wd"].astype(jnp.float32)                # (Cin, P)
    else:
        # identity residual expressed as a 1x1 "conv" with an identity matrix
        wd = jnp.eye(cin, p, dtype=jnp.float32)              # cin == p here
        sd = jnp.ones((p,), jnp.float32)
        bd = jnp.zeros((p,), jnp.float32)
    wd_p = jnp.pad(wd, ((0, 0), (0, cp - p)))
    sd_p = jnp.pad(sd, (0, cp - p))
    bd_p = jnp.pad(bd, (0, cp - p))

    kern = functools.partial(_basic_block_kernel, stride=stride, h=h, w=w,
                             cin=cin, p=p, cp=cp, ho=ho, wo=wo,
                             cdt=compute_dtype)

    out = pl.pallas_call(
        kern,
        out_shape=jax.ShapeDtypeStruct((n, ho, wo, cp), jnp.float32),
        grid=(n,),
        in_specs=[
            pl.BlockSpec((1, h, w, cin), lambda i: (i, 0, 0, 0)),   # x
            pl.BlockSpec((9 * cin, p), lambda i: (0, 0)),           # w1
            pl.BlockSpec((1, p), lambda i: (0, 0)),                 # s1
            pl.BlockSpec((1, p), lambda i: (0, 0)),                 # b1
            pl.BlockSpec((9 * p, cp), lambda i: (0, 0)),            # w2
            pl.BlockSpec((1, cp), lambda i: (0, 0)),                # s2
            pl.BlockSpec((1, cp), lambda i: (0, 0)),                # b2
            pl.BlockSpec((cin, cp), lambda i: (0, 0)),              # wd
            pl.BlockSpec((1, cp), lambda i: (0, 0)),                # sd
            pl.BlockSpec((1, cp), lambda i: (0, 0)),                # bd
        ],
        out_specs=pl.BlockSpec((1, ho, wo, cp), lambda i: (i, 0, 0, 0)),
        scratch_shapes=[
            pltpu.VMEM((h + 2, w + 2, cin), jnp.float32),           # xpad
            pltpu.VMEM((ho, wo, 9 * cin), jnp.float32),             # lhs1 (im2col)
            pltpu.VMEM((ho + 2, wo + 2, p), jnp.float32),           # o1pad
            pltpu.VMEM((ho, wo, 9 * p), jnp.float32),               # lhs2 (im2col)
        ],
        compiler_params=pltpu.CompilerParams(dimension_semantics=("parallel",)),
    )(x, w1, s1.reshape(1, p), b1.reshape(1, p),
      w2, s2p.reshape(1, cp), b2p.reshape(1, cp),
      wd_p, sd_p.reshape(1, cp), bd_p.reshape(1, cp))

    # drop the zero-padded lanes; slice fuses into the boundary transpose.
    return jnp.transpose(out[..., :p], (0, 3, 1, 2))                # NHWC -> NCHW


# ----------------------------------------------------------------------------
# Pure-JAX reference (for correctness check)
# ----------------------------------------------------------------------------
def basic_block_reference(x_nchw, params, *, stride=1):
    x = jnp.transpose(x_nchw, (0, 2, 3, 1)).astype(jnp.float32)

    def conv(inp, w, s, pad):
        return jax.lax.conv_general_dilated(
            inp, w, (s, s), pad, dimension_numbers=("NHWC", "HWIO", "NHWC"))

    def bn(inp, prm):
        sc, bi = fold_bn(**prm)
        return inp * sc + bi

    out = jax.nn.relu(bn(conv(x, params["w1"], stride, ((1, 1), (1, 1))), params["bn1"]))
    out = bn(conv(out, params["w2"], 1, ((1, 1), (1, 1))), params["bn2"])
    if "wd" in params:
        ident = bn(conv(x, params["wd"][None, None], stride, "VALID"), params["bnd"])
    else:
        ident = x
    out = jax.nn.relu(out + ident)
    return jnp.transpose(out, (0, 3, 1, 2))


# ----------------------------------------------------------------------------
if __name__ == "__main__":
    key = jax.random.PRNGKey(0)
    k_x, k_p = jax.random.split(key)

    N, IN_PLANES, PLANES, H, W = 2, 4, 16, 16, 16
    STRIDE = 1  # downsample branch is exercised via in_planes != planes

    x = jax.random.normal(k_x, (N, IN_PLANES, H, W), jnp.float32)   # NCHW
    params = init_basic_block(k_p, IN_PLANES, PLANES)

    ref = jax.block_until_ready(basic_block_reference(x, params, stride=STRIDE))

    # f32 MXU path -- tight tolerance.
    out = jax.block_until_ready(basic_block_forward(x, params, stride=STRIDE))
    assert out.shape == ref.shape, (out.shape, ref.shape)
    assert jnp.allclose(out, ref, atol=1e-4, rtol=1e-4), float(
        jnp.max(jnp.abs(out - ref)))

    # bf16 matmul / f32 accumulate path (v6e/v7x) -- looser tolerance.
    out_bf16 = jax.block_until_ready(
        basic_block_forward(x, params, stride=STRIDE, compute_dtype=jnp.bfloat16))
    assert jnp.allclose(out_bf16, ref, atol=5e-2, rtol=5e-2), float(
        jnp.max(jnp.abs(out_bf16 - ref)))

    print("KERNEL_OK")
</pallas_src>

<mosaic_0001>
module attributes {stable_mosaic.version = 11 : i64} {
  func.func @_basic_block_kernel(%arg0: i32, %arg1: memref<1x16x16x4xf32, #tpu.memory_space<vmem>>, %arg2: memref<36x16xf32, #tpu.memory_space<vmem>>, %arg3: memref<1x16xf32, #tpu.memory_space<vmem>>, %arg4: memref<1x16xf32, #tpu.memory_space<vmem>>, %arg5: memref<144x128xf32, #tpu.memory_space<vmem>>, %arg6: memref<1x128xf32, #tpu.memory_space<vmem>>, %arg7: memref<1x128xf32, #tpu.memory_space<vmem>>, %arg8: memref<4x128xf32, #tpu.memory_space<vmem>>, %arg9: memref<1x128xf32, #tpu.memory_space<vmem>>, %arg10: memref<1x128xf32, #tpu.memory_space<vmem>>, %arg11: memref<1x16x16x128xf32, #tpu.memory_space<vmem>>, %arg12: memref<18x18x4xf32, #tpu.memory_space<vmem>>, %arg13: memref<16x16x36xf32, #tpu.memory_space<vmem>>, %arg14: memref<18x18x16xf32, #tpu.memory_space<vmem>>, %arg15: memref<16x16x144xf32, #tpu.memory_space<vmem>>) attributes {dimension_semantics = [#tpu.dimension_semantics<parallel>], iteration_bounds = array<i64: 2>, scalar_prefetch = 0 : i64, scratch_operands = 4 : i64, tpu.core_type = #tpu.core_type<tc>, window_params = [{transform_indices = @transform_0, window_bounds = array<i64: 1, 16, 16, 4>}, {pipeline_mode = #tpu.pipeline_mode<synchronous>, transform_indices = @transform_1, window_bounds = array<i64: 36, 16>}, {pipeline_mode = #tpu.pipeline_mode<synchronous>, transform_indices = @transform_2, window_bounds = array<i64: 1, 16>}, {pipeline_mode = #tpu.pipeline_mode<synchronous>, transform_indices = @transform_3, window_bounds = array<i64: 1, 16>}, {pipeline_mode = #tpu.pipeline_mode<synchronous>, transform_indices = @transform_4, window_bounds = array<i64: 144, 128>}, {pipeline_mode = #tpu.pipeline_mode<synchronous>, transform_indices = @transform_5, window_bounds = array<i64: 1, 128>}, {pipeline_mode = #tpu.pipeline_mode<synchronous>, transform_indices = @transform_6, window_bounds = array<i64: 1, 128>}, {pipeline_mode = #tpu.pipeline_mode<synchronous>, transform_indices = @transform_7, window_bounds = array<i64: 4, 128>}, {pipeline_mode = #tpu.pipeline_mode<synchronous>, transform_indices = @transform_8, window_bounds = array<i64: 1, 128>}, {pipeline_mode = #tpu.pipeline_mode<synchronous>, transform_indices = @transform_9, window_bounds = array<i64: 1, 128>}, {transform_indices = @transform_10, window_bounds = array<i64: 1, 16, 16, 128>}]} {
    %cst = arith.constant 0.000000e+00 : f32
    %0 = vector.broadcast %cst : f32 to vector<18x18x4xf32>
    %c0 = arith.constant 0 : index
    %c0_0 = arith.constant 0 : index
    %c0_1 = arith.constant 0 : index
    %1 = vector.load %arg12[%c0, %c0_0, %c0_1] : memref<18x18x4xf32, #tpu.memory_space<vmem>>, vector<18x18x4xf32>
    tpu.vector_store %arg12[%c0, %c0_0, %c0_1], %0 {strides = array<i32>} : memref<18x18x4xf32, #tpu.memory_space<vmem>>, vector<18x18x4xf32>,
    %c0_2 = arith.constant 0 : index
    %c0_3 = arith.constant 0 : index
    %c0_4 = arith.constant 0 : index
    %c0_5 = arith.constant 0 : index
    %2 = vector.load %arg1[%c0_2, %c0_3, %c0_4, %c0_5] : memref<1x16x16x4xf32, #tpu.memory_space<vmem>>, vector<1x16x16x4xf32>
    %3 = vector.shape_cast %2 : vector<1x16x16x4xf32> to vector<16x16x4xf32>
    %c1 = arith.constant 1 : index
    %c1_6 = arith.constant 1 : index
    %c0_7 = arith.constant 0 : index
    %4 = vector.load %arg12[%c1, %c1_6, %c0_7] : memref<18x18x4xf32, #tpu.memory_space<vmem>>, vector<16x16x4xf32>
    tpu.vector_store %arg12[%c1, %c1_6, %c0_7], %3 {strides = array<i32>} : memref<18x18x4xf32, #tpu.memory_space<vmem>>, vector<16x16x4xf32>,
    %c0_8 = arith.constant 0 : index
    %c0_9 = arith.constant 0 : index
    %c0_10 = arith.constant 0 : index
    %5 = vector.load %arg12[%c0_8, %c0_9, %c0_10] : memref<18x18x4xf32, #tpu.memory_space<vmem>>, vector<16x16x4xf32>
    %c0_11 = arith.constant 0 : index
    %c0_12 = arith.constant 0 : index
    %c0_13 = arith.constant 0 : index
    %6 = vector.load %arg13[%c0_11, %c0_12, %c0_13] : memref<16x16x36xf32, #tpu.memory_space<vmem>>, vector<16x16x4xf32>
    tpu.vector_store %arg13[%c0_11, %c0_12, %c0_13], %5 {strides = array<i32>} : memref<16x16x36xf32, #tpu.memory_space<vmem>>, vector<16x16x4xf32>,
    %c0_14 = arith.constant 0 : index
    %c1_15 = arith.constant 1 : index
    %c0_16 = arith.constant 0 : index
    %7 = vector.load %arg12[%c0_14, %c1_15, %c0_16] : memref<18x18x4xf32, #tpu.memory_space<vmem>>, vector<16x16x4xf32>
    %c0_17 = arith.constant 0 : index
    %c0_18 = arith.constant 0 : index
    %c4 = arith.constant 4 : index
    %8 = vector.load %arg13[%c0_17, %c0_18, %c4] : memref<16x16x36xf32, #tpu.memory_space<vmem>>, vector<16x16x4xf32>
    tpu.vector_store %arg13[%c0_17, %c0_18, %c4], %7 {strides = array<i32>} : memref<16x16x36xf32, #tpu.memory_space<vmem>>, vector<16x16x4xf32>,
    %c0_19 = arith.constant 0 : index
    %c2 = arith.constant 2 : index
    %c0_20 = arith.constant 0 : index
    %9 = vector.load %arg12[%c0_19, %c2, %c0_20] : memref<18x18x4xf32, #tpu.memory_space<vmem>>, vector<16x16x4xf32>
    %c0_21 = arith.constant 0 : index
    %c0_22 = arith.constant 0 : index
    %c8 = arith.constant 8 : index
    %10 = vector.load %arg13[%c0_21, %c0_22, %c8] : memref<16x16x36xf32, #tpu.memory_space<vmem>>, vector<16x16x4xf32>
    tpu.vector_store %arg13[%c0_21, %c0_22, %c8], %9 {strides = array<i32>} : memref<16x16x36xf32, #tpu.memory_space<vmem>>, vector<16x16x4xf32>,
    %c1_23 = arith.constant 1 : index
    %c0_24 = arith.constant 0 : index
    %c0_25 = arith.constant 0 : index
    %11 = vector.load %arg12[%c1_23, %c0_24, %c0_25] : memref<18x18x4xf32, #tpu.memory_space<vmem>>, vector<16x16x4xf32>
    %c0_26 = arith.constant 0 : index
    %c0_27 = arith.constant 0 : index
    %c12 = arith.constant 12 : index
    %12 = vector.load %arg13[%c0_26, %c0_27, %c12] : memref<16x16x36xf32, #tpu.memory_space<vmem>>, vector<16x16x4xf32>
    tpu.vector_store %arg13[%c0_26, %c0_27, %c12], %11 {strides = array<i32>} : memref<16x16x36xf32, #tpu.memory_space<vmem>>, vector<16x16x4xf32>,
    %c1_28 = arith.constant 1 : index
    %c1_29 = arith.constant 1 : index
    %c0_30 = arith.constant 0 : index
    %13 = vector.load %arg12[%c1_28, %c1_29, %c0_30] : memref<18x18x4xf32, #tpu.memory_space<vmem>>, vector<16x16x4xf32>
    %c0_31 = arith.constant 0 : index
    %c0_32 = arith.constant 0 : index
    %c16 = arith.constant 16 : index
    %14 = vector.load %arg13[%c0_31, %c0_32, %c16] : memref<16x16x36xf32, #tpu.memory_space<vmem>>, vector<16x16x4xf32>
    tpu.vector_store %arg13[%c0_31, %c0_32, %c16], %13 {strides = array<i32>} : memref<16x16x36xf32, #tpu.memory_space<vmem>>, vector<16x16x4xf32>,
    %c1_33 = arith.constant 1 : index
    %c2_34 = arith.constant 2 : index
    %c0_35 = arith.constant 0 : index
    %15 = vector.load %arg12[%c1_33, %c2_34, %c0_35] : memref<18x18x4xf32, #tpu.memory_space<vmem>>, vector<16x16x4xf32>
    %c0_36 = arith.constant 0 : index
    %c0_37 = arith.constant 0 : index
    %c20 = arith.constant 20 : index
    %16 = vector.load %arg13[%c0_36, %c0_37, %c20] : memref<16x16x36xf32, #tpu.memory_space<vmem>>, vector<16x16x4xf32>
    tpu.vector_store %arg13[%c0_36, %c0_37, %c20], %15 {strides = array<i32>} : memref<16x16x36xf32, #tpu.memory_space<vmem>>, vector<16x16x4xf32>,
    %c2_38 = arith.constant 2 : index
    %c0_39 = arith.constant 0 : index
    %c0_40 = arith.constant 0 : index
    %17 = vector.load %arg12[%c2_38, %c0_39, %c0_40] : memref<18x18x4xf32, #tpu.memory_space<vmem>>, vector<16x16x4xf32>
    %c0_41 = arith.constant 0 : index
    %c0_42 = arith.constant 0 : index
    %c24 = arith.constant 24 : index
    %18 = vector.load %arg13[%c0_41, %c0_42, %c24] : memref<16x16x36xf32, #tpu.memory_space<vmem>>, vector<16x16x4xf32>
    tpu.vector_store %arg13[%c0_41, %c0_42, %c24], %17 {strides = array<i32>} : memref<16x16x36xf32, #tpu.memory_space<vmem>>, vector<16x16x4xf32>,
    %c2_43 = arith.constant 2 : index
    %c1_44 = arith.constant 1 : index
    %c0_45 = arith.constant 0 : index
    %19 = vector.load %arg12[%c2_43, %c1_44, %c0_45] : memref<18x18x4xf32, #tpu.memory_space<vmem>>, vector<16x16x4xf32>
    %c0_46 = arith.constant 0 : index
    %c0_47 = arith.constant 0 : index
    %c28 = arith.constant 28 : index
    %20 = vector.load %arg13[%c0_46, %c0_47, %c28] : memref<16x16x36xf32, #tpu.memory_space<vmem>>, vector<16x16x4xf32>
    tpu.vector_store %arg13[%c0_46, %c0_47, %c28], %19 {strides = array<i32>} : memref<16x16x36xf32, #tpu.memory_space<vmem>>, vector<16x16x4xf32>,
    %c2_48 = arith.constant 2 : index
    %c2_49 = arith.constant 2 : index
    %c0_50 = arith.constant 0 : index
    %21 = vector.load %arg12[%c2_48, %c2_49, %c0_50] : memref<18x18x4xf32, #tpu.memory_space<vmem>>, vector<16x16x4xf32>
    %c0_51 = arith.constant 0 : index
    %c0_52 = arith.constant 0 : index
    %c32 = arith.constant 32 : index
    %22 = vector.load %arg13[%c0_51, %c0_52, %c32] : memref<16x16x36xf32, #tpu.memory_space<vmem>>, vector<16x16x4xf32>
    tpu.vector_store %arg13[%c0_51, %c0_52, %c32], %21 {strides = array<i32>} : memref<16x16x36xf32, #tpu.memory_space<vmem>>, vector<16x16x4xf32>,
    %c0_53 = arith.constant 0 : index
    %c0_54 = arith.constant 0 : index
    %c0_55 = arith.constant 0 : index
    %23 = vector.load %arg13[%c0_53, %c0_54, %c0_55] : memref<16x16x36xf32, #tpu.memory_space<vmem>>, vector<16x16x36xf32>
    %24 = vector.shape_cast %23 : vector<16x16x36xf32> to vector<256x36xf32>
    %c0_56 = arith.constant 0 : index
    %c0_57 = arith.constant 0 : index
    %25 = vector.load %arg2[%c0_56, %c0_57] : memref<36x16xf32, #tpu.memory_space<vmem>>, vector<36x16xf32>
    %cst_58 = arith.constant dense<0.000000e+00> : vector<256x16xf32>
    %26 = tpu.matmul %24, %25, %cst_58 {dimension_numbers = #tpu.dot_dimension_numbers<[1], [0], [0], [1], [0, 0, 1, 1], [], []>} : vector<256x36xf32>, vector<36x16xf32>, vector<256x16xf32> -> vector<256x16xf32>
    %c0_59 = arith.constant 0 : index
    %c0_60 = arith.constant 0 : index
    %27 = vector.load %arg3[%c0_59, %c0_60] : memref<1x16xf32, #tpu.memory_space<vmem>>, vector<1x16xf32>
    %28 = vector.broadcast %27 : vector<1x16xf32> to vector<256x16xf32>
    %29 = arith.mulf %26, %28 : vector<256x16xf32>
    %c0_61 = arith.constant 0 : index
    %c0_62 = arith.constant 0 : index
    %30 = vector.load %arg4[%c0_61, %c0_62] : memref<1x16xf32, #tpu.memory_space<vmem>>, vector<1x16xf32>
    %31 = vector.broadcast %30 : vector<1x16xf32> to vector<256x16xf32>
    %32 = arith.addf %29, %31 : vector<256x16xf32>
    %cst_63 = arith.constant 0.000000e+00 : f32
    %33 = vector.broadcast %cst_63 : f32 to vector<256x16xf32>
    %34 = arith.maximumf %32, %33 : vector<256x16xf32>
    %cst_64 = arith.constant 0.000000e+00 : f32
    %35 = vector.broadcast %cst_64 : f32 to vector<18x18x16xf32>
    %c0_65 = arith.constant 0 : index
    %c0_66 = arith.constant 0 : index
    %c0_67 = arith.constant 0 : index
    %36 = vector.load %arg14[%c0_65, %c0_66, %c0_67] : memref<18x18x16xf32, #tpu.memory_space<vmem>>, vector<18x18x16xf32>
    tpu.vector_store %arg14[%c0_65, %c0_66, %c0_67], %35 {strides = array<i32>} : memref<18x18x16xf32, #tpu.memory_space<vmem>>, vector<18x18x16xf32>,
    %37 = vector.shape_cast %34 : vector<256x16xf32> to vector<16x16x16xf32>
    %c1_68 = arith.constant 1 : index
    %c1_69 = arith.constant 1 : index
    %c0_70 = arith.constant 0 : index
    %38 = vector.load %arg14[%c1_68, %c1_69, %c0_70] : memref<18x18x16xf32, #tpu.memory_space<vmem>>, vector<16x16x16xf32>
    tpu.vector_store %arg14[%c1_68, %c1_69, %c0_70], %37 {strides = array<i32>} : memref<18x18x16xf32, #tpu.memory_space<vmem>>, vector<16x16x16xf32>,
    %c0_71 = arith.constant 0 : index
    %c0_72 = arith.constant 0 : index
    %c0_73 = arith.constant 0 : index
    %39 = vector.load %arg14[%c0_71, %c0_72, %c0_73] : memref<18x18x16xf32, #tpu.memory_space<vmem>>, vector<16x16x16xf32>
    %c0_74 = arith.constant 0 : index
    %c0_75 = arith.constant 0 : index
    %c0_76 = arith.constant 0 : index
    %40 = vector.load %arg15[%c0_74, %c0_75, %c0_76] : memref<16x16x144xf32, #tpu.memory_space<vmem>>, vector<16x16x16xf32>
    tpu.vector_store %arg15[%c0_74, %c0_75, %c0_76], %39 {strides = array<i32>} : memref<16x16x144xf32, #tpu.memory_space<vmem>>, vector<16x16x16xf32>,
    %c0_77 = arith.constant 0 : index
    %c1_78 = arith.constant 1 : index
    %c0_79 = arith.constant 0 : index
    %41 = vector.load %arg14[%c0_77, %c1_78, %c0_79] : memref<18x18x16xf32, #tpu.memory_space<vmem>>, vector<16x16x16xf32>
    %c0_80 = arith.constant 0 : index
    %c0_81 = arith.constant 0 : index
    %c16_82 = arith.constant 16 : index
    %42 = vector.load %arg15[%c0_80, %c0_81, %c16_82] : memref<16x16x144xf32, #tpu.memory_space<vmem>>, vector<16x16x16xf32>
    tpu.vector_store %arg15[%c0_80, %c0_81, %c16_82], %41 {strides = array<i32>} : memref<16x16x144xf32, #tpu.memory_space<vmem>>, vector<16x16x16xf32>,
    %c0_83 = arith.constant 0 : index
    %c2_84 = arith.constant 2 : index
    %c0_85 = arith.constant 0 : index
    %43 = vector.load %arg14[%c0_83, %c2_84, %c0_85] : memref<18x18x16xf32, #tpu.memory_space<vmem>>, vector<16x16x16xf32>
    %c0_86 = arith.constant 0 : index
    %c0_87 = arith.constant 0 : index
    %c32_88 = arith.constant 32 : index
    %44 = vector.load %arg15[%c0_86, %c0_87, %c32_88] : memref<16x16x144xf32, #tpu.memory_space<vmem>>, vector<16x16x16xf32>
    tpu.vector_store %arg15[%c0_86, %c0_87, %c32_88], %43 {strides = array<i32>} : memref<16x16x144xf32, #tpu.memory_space<vmem>>, vector<16x16x16xf32>,
    %c1_89 = arith.constant 1 : index
    %c0_90 = arith.constant 0 : index
    %c0_91 = arith.constant 0 : index
    %45 = vector.load %arg14[%c1_89, %c0_90, %c0_91] : memref<18x18x16xf32, #tpu.memory_space<vmem>>, vector<16x16x16xf32>
    %c0_92 = arith.constant 0 : index
    %c0_93 = arith.constant 0 : index
    %c48 = arith.constant 48 : index
    %46 = vector.load %arg15[%c0_92, %c0_93, %c48] : memref<16x16x144xf32, #tpu.memory_space<vmem>>, vector<16x16x16xf32>
    tpu.vector_store %arg15[%c0_92, %c0_93, %c48], %45 {strides = array<i32>} : memref<16x16x144xf32, #tpu.memory_space<vmem>>, vector<16x16x16xf32>,
    %c1_94 = arith.constant 1 : index
    %c1_95 = arith.constant 1 : index
    %c0_96 = arith.constant 0 : index
    %47 = vector.load %arg14[%c1_94, %c1_95, %c0_96] : memref<18x18x16xf32, #tpu.memory_space<vmem>>, vector<16x16x16xf32>
    %c0_97 = arith.constant 0 : index
    %c0_98 = arith.constant 0 : index
    %c64 = arith.constant 64 : index
    %48 = vector.load %arg15[%c0_97, %c0_98, %c64] : memref<16x16x144xf32, #tpu.memory_space<vmem>>, vector<16x16x16xf32>
    tpu.vector_store %arg15[%c0_97, %c0_98, %c64], %47 {strides = array<i32>} : memref<16x16x144xf32, #tpu.memory_space<vmem>>, vector<16x16x16xf32>,
    %c1_99 = arith.constant 1 : index
    %c2_100 = arith.constant 2 : index
    %c0_101 = arith.constant 0 : index
    %49 = vector.load %arg14[%c1_99, %c2_100, %c0_101] : memref<18x18x16xf32, #tpu.memory_space<vmem>>, vector<16x16x16xf32>
    %c0_102 = arith.constant 0 : index
    %c0_103 = arith.constant 0 : index
    %c80 = arith.constant 80 : index
    %50 = vector.load %arg15[%c0_102, %c0_103, %c80] : memref<16x16x144xf32, #tpu.memory_space<vmem>>, vector<16x16x16xf32>
    tpu.vector_store %arg15[%c0_102, %c0_103, %c80], %49 {strides = array<i32>} : memref<16x16x144xf32, #tpu.memory_space<vmem>>, vector<16x16x16xf32>,
    %c2_104 = arith.constant 2 : index
    %c0_105 = arith.constant 0 : index
    %c0_106 = arith.constant 0 : index
    %51 = vector.load %arg14[%c2_104, %c0_105, %c0_106] : memref<18x18x16xf32, #tpu.memory_space<vmem>>, vector<16x16x16xf32>
    %c0_107 = arith.constant 0 : index
    %c0_108 = arith.constant 0 : index
    %c96 = arith.constant 96 : index
    %52 = vector.load %arg15[%c0_107, %c0_108, %c96] : memref<16x16x144xf32, #tpu.memory_space<vmem>>, vector<16x16x16xf32>
    tpu.vector_store %arg15[%c0_107, %c0_108, %c96], %51 {strides = array<i32>} : memref<16x16x144xf32, #tpu.memory_space<vmem>>, vector<16x16x16xf32>,
    %c2_109 = arith.constant 2 : index
    %c1_110 = arith.constant 1 : index
    %c0_111 = arith.constant 0 : index
    %53 = vector.load %arg14[%c2_109, %c1_110, %c0_111] : memref<18x18x16xf32, #tpu.memory_space<vmem>>, vector<16x16x16xf32>
    %c0_112 = arith.constant 0 : index
    %c0_113 = arith.constant 0 : index
    %c112 = arith.constant 112 : index
    %54 = vector.load %arg15[%c0_112, %c0_113, %c112] : memref<16x16x144xf32, #tpu.memory_space<vmem>>, vector<16x16x16xf32>
    tpu.vector_store %arg15[%c0_112, %c0_113, %c112], %53 {strides = array<i32>} : memref<16x16x144xf32, #tpu.memory_space<vmem>>, vector<16x16x16xf32>,
    %c2_114 = arith.constant 2 : index
    %c2_115 = arith.constant 2 : index
    %c0_116 = arith.constant 0 : index
    %55 = vector.load %arg14[%c2_114, %c2_115, %c0_116] : memref<18x18x16xf32, #tpu.memory_space<vmem>>, vector<16x16x16xf32>
    %c0_117 = arith.constant 0 : index
    %c0_118 = arith.constant 0 : index
    %c128 = arith.constant 128 : index
    %56 = vector.load %arg15[%c0_117, %c0_118, %c128] : memref<16x16x144xf32, #tpu.memory_space<vmem>>, vector<16x16x16xf32>
    tpu.vector_store %arg15[%c0_117, %c0_118, %c128], %55 {strides = array<i32>} : memref<16x16x144xf32, #tpu.memory_space<vmem>>, vector<16x16x16xf32>,
    %c0_119 = arith.constant 0 : index
    %c0_120 = arith.constant 0 : index
    %c0_121 = arith.constant 0 : index
    %57 = vector.load %arg15[%c0_119, %c0_120, %c0_121] : memref<16x16x144xf32, #tpu.memory_space<vmem>>, vector<16x16x144xf32>
    %58 = vector.shape_cast %57 : vector<16x16x144xf32> to vector<256x144xf32>
    %c0_122 = arith.constant 0 : index
    %c0_123 = arith.constant 0 : index
    %59 = vector.load %arg5[%c0_122, %c0_123] : memref<144x128xf32, #tpu.memory_space<vmem>>, vector<144x128xf32>
    %cst_124 = arith.constant dense<0.000000e+00> : vector<256x128xf32>
    %60 = tpu.matmul %58, %59, %cst_124 {dimension_numbers = #tpu.dot_dimension_numbers<[1], [0], [0], [1], [0, 0, 1, 1], [], []>} : vector<256x144xf32>, vector<144x128xf32>, vector<256x128xf32> -> vector<256x128xf32>
    %c0_125 = arith.constant 0 : index
    %c0_126 = arith.constant 0 : index
    %61 = vector.load %arg6[%c0_125, %c0_126] : memref<1x128xf32, #tpu.memory_space<vmem>>, vector<1x128xf32>
    %62 = vector.broadcast %61 : vector<1x128xf32> to vector<256x128xf32>
    %63 = arith.mulf %60, %62 : vector<256x128xf32>
    %c0_127 = arith.constant 0 : index
    %c0_128 = arith.constant 0 : index
    %64 = vector.load %arg7[%c0_127, %c0_128] : memref<1x128xf32, #tpu.memory_space<vmem>>, vector<1x128xf32>
    %65 = vector.broadcast %64 : vector<1x128xf32> to vector<256x128xf32>
    %66 = arith.addf %63, %65 : vector<256x128xf32>
    %c1_129 = arith.constant 1 : index
    %c1_130 = arith.constant 1 : index
    %c0_131 = arith.constant 0 : index
    %67 = vector.load %arg12[%c1_129, %c1_130, %c0_131] : memref<18x18x4xf32, #tpu.memory_space<vmem>>, vector<16x16x4xf32>
    %68 = vector.shape_cast %67 : vector<16x16x4xf32> to vector<256x4xf32>
    %c0_132 = arith.constant 0 : index
    %c0_133 = arith.constant 0 : index
    %69 = vector.load %arg8[%c0_132, %c0_133] : memref<4x128xf32, #tpu.memory_space<vmem>>, vector<4x128xf32>
    %cst_134 = arith.constant dense<0.000000e+00> : vector<256x128xf32>
    %70 = tpu.matmul %68, %69, %cst_134 {dimension_numbers = #tpu.dot_dimension_numbers<[1], [0], [0], [1], [0, 0, 1, 1], [], []>} : vector<256x4xf32>, vector<4x128xf32>, vector<256x128xf32> -> vector<256x128xf32>
    %c0_135 = arith.constant 0 : index
    %c0_136 = arith.constant 0 : index
    %71 = vector.load %arg9[%c0_135, %c0_136] : memref<1x128xf32, #tpu.memory_space<vmem>>, vector<1x128xf32>
    %72 = vector.broadcast %71 : vector<1x128xf32> to vector<256x128xf32>
    %73 = arith.mulf %70, %72 : vector<256x128xf32>
    %c0_137 = arith.constant 0 : index
    %c0_138 = arith.constant 0 : index
    %74 = vector.load %arg10[%c0_137, %c0_138] : memref<1x128xf32, #tpu.memory_space<vmem>>, vector<1x128xf32>
    %75 = vector.broadcast %74 : vector<1x128xf32> to vector<256x128xf32>
    %76 = arith.addf %73, %75 : vector<256x128xf32>
    %77 = arith.addf %66, %76 : vector<256x128xf32>
    %cst_139 = arith.constant 0.000000e+00 : f32
    %78 = vector.broadcast %cst_139 : f32 to vector<256x128xf32>
    %79 = arith.maximumf %77, %78 : vector<256x128xf32>
    %80 = vector.shape_cast %79 : vector<256x128xf32> to vector<16x16x128xf32>
    %c0_140 = arith.constant 0 : index
    %c0_141 = arith.constant 0 : index
    %c0_142 = arith.constant 0 : index
    %c0_143 = arith.constant 0 : index
    %81 = vector.load %arg11[%c0_140, %c0_141, %c0_142, %c0_143] : memref<1x16x16x128xf32, #tpu.memory_space<vmem>>, vector<1x16x16x128xf32>
    %82 = vector.shape_cast %81 : vector<1x16x16x128xf32> to vector<16x16x128xf32>
    %83 = vector.shape_cast %80 : vector<16x16x128xf32> to vector<1x16x16x128xf32>
    tpu.vector_store %arg11[%c0_140, %c0_141, %c0_142, %c0_143], %83 {strides = array<i32>} : memref<1x16x16x128xf32, #tpu.memory_space<vmem>>, vector<1x16x16x128xf32>,
    return
  }
  func.func @transform_0(%arg0: i32) -> (i32, i32, i32, i32) {
    %c0_i32 = arith.constant 0 : i32
    %c0_i32_0 = arith.constant 0 : i32
    %c0_i32_1 = arith.constant 0 : i32
    %c0_i32_2 = arith.constant 0 : i32
    return %arg0, %c0_i32, %c0_i32_0, %c0_i32_1 : i32, i32, i32, i32
  }
  func.func @transform_1(%arg0: i32) -> (i32, i32) {
    %c0_i32 = arith.constant 0 : i32
    %c0_i32_0 = arith.constant 0 : i32
    %c0_i32_1 = arith.constant 0 : i32
    return %c0_i32, %c0_i32_0 : i32, i32
  }
  func.func @transform_2(%arg0: i32) -> (i32, i32) {
    %c0_i32 = arith.constant 0 : i32
    %c0_i32_0 = arith.constant 0 : i32
    %c0_i32_1 = arith.constant 0 : i32
    return %c0_i32, %c0_i32_0 : i32, i32
  }
  func.func @transform_3(%arg0: i32) -> (i32, i32) {
    %c0_i32 = arith.constant 0 : i32
    %c0_i32_0 = arith.constant 0 : i32
    %c0_i32_1 = arith.constant 0 : i32
    return %c0_i32, %c0_i32_0 : i32, i32
  }
  func.func @transform_4(%arg0: i32) -> (i32, i32) {
    %c0_i32 = arith.constant 0 : i32
    %c0_i32_0 = arith.constant 0 : i32
    %c0_i32_1 = arith.constant 0 : i32
    return %c0_i32, %c0_i32_0 : i32, i32
  }
  func.func @transform_5(%arg0: i32) -> (i32, i32) {
    %c0_i32 = arith.constant 0 : i32
    %c0_i32_0 = arith.constant 0 : i32
    %c0_i32_1 = arith.constant 0 : i32
    return %c0_i32, %c0_i32_0 : i32, i32
  }
  func.func @transform_6(%arg0: i32) -> (i32, i32) {
    %c0_i32 = arith.constant 0 : i32
    %c0_i32_0 = arith.constant 0 : i32
    %c0_i32_1 = arith.constant 0 : i32
    return %c0_i32, %c0_i32_0 : i32, i32
  }
  func.func @transform_7(%arg0: i32) -> (i32, i32) {
    %c0_i32 = arith.constant 0 : i32
    %c0_i32_0 = arith.constant 0 : i32
    %c0_i32_1 = arith.constant 0 : i32
    return %c0_i32, %c0_i32_0 : i32, i32
  }
  func.func @transform_8(%arg0: i32) -> (i32, i32) {
    %c0_i32 = arith.constant 0 : i32
    %c0_i32_0 = arith.constant 0 : i32
    %c0_i32_1 = arith.constant 0 : i32
    return %c0_i32, %c0_i32_0 : i32, i32
  }
  func.func @transform_9(%arg0: i32) -> (i32, i32) {
    %c0_i32 = arith.constant 0 : i32
    %c0_i32_0 = arith.constant 0 : i32
    %c0_i32_1 = arith.constant 0 : i32
    return %c0_i32, %c0_i32_0 : i32, i32
  }
  func.func @transform_10(%arg0: i32) -> (i32, i32, i32, i32) {
    %c0_i32 = arith.constant 0 : i32
    %c0_i32_0 = arith.constant 0 : i32
    %c0_i32_1 = arith.constant 0 : i32
    %c0_i32_2 = arith.constant 0 : i32
    return %arg0, %c0_i32, %c0_i32_0, %c0_i32_1 : i32, i32, i32, i32
  }
}

</mosaic_0001>

<bundles_post_ra>
// kernel: tpu_custom_call.1
= control target key start
LH: loop header
LB: loop body
LE: loop exit
PB: predicated region body
PF: predicated region fallthrough
CT: control target
= control target key end

     0   :  { %15 = vsyncpa [#allocation7], 0  ;;  %s8477_s0 = inlined_call_operand.vmem [shape: f32[2,16,16,4], index: 0, kind: input, shape index: {}]   ;;  %s8478_s1 = inlined_call_operand.vmem [shape: f32[36,16], index: 1, kind: input, shape index: {}]   ;;  %s8479_s2 = inlined_call_operand.vmem [shape: f32[1,16], index: 2, kind: input, shape index: {}]   ;;  %s8480_s3 = inlined_call_operand.vmem [shape: f32[1,16], index: 3, kind: input, shape index: {}]   ;;  %s8481_s4 = inlined_call_operand.vmem [shape: f32[144,128], index: 4, kind: input, shape index: {}]   ;;  %s8482_s5 = inlined_call_operand.vmem [shape: f32[1,128], index: 5, kind: input, shape index: {}]   ;;  %s8483_s6 = inlined_call_operand.vmem [shape: f32[1,128], index: 6, kind: input, shape index: {}]   ;;  %s8484_s7 = inlined_call_operand.vmem [shape: f32[4,128], index: 7, kind: input, shape index: {}]   ;;  %s8485_s8 = inlined_call_operand.vmem [shape: f32[1,128], index: 8, kind: input, shape index: {}]   ;;  %s8486_s9 = inlined_call_operand.vmem [shape: f32[1,128], index: 9, kind: input, shape index: {}]   ;;  %s8487_s10 = inlined_call_operand.hbm [shape: f32[2,16,16,128], index: 10, kind: output, shape index: {}]  }
   0x1   :  { %17 = vsyncpa [#allocation7 + $0x1], 0  ;;  %s5760_s13 = smov 0   ;;  %s5762_s14 = smov 0  }
   0x2   :  { %s5764_s15 = smov 0   ;;  %s5766_s16 = smov 0  }
   0x3 LB: > { %s5781_s17 = sadd.s32 4294967295, %s5686_s16   ;;  %s5218_s18 = sadd.s32 4294967294, %s5686_s16   ;;  %s5686_s16 = sphi %s5766_s16, %s8543_s16   ;;  %s5682_s15 = sphi %s5764_s15, %s8542_s15   ;;  %s5678_s14 = sphi %s5762_s14, %s8541_s14   ;;  %s5674_s13 = sphi %s5760_s13, %s8540_s13  }
   0x4   : > { %s5785_s19 = sadd.s32 1, %s5686_s16   ;;  %s245_s20 = sadd.s32 1, %s5682_s15 }
   0x5   : > { %s242_s21 = ssub.s32 %s5686_s16, %s5785_s19  ;;  %p255_p0 = scmp.ne.s32.totalorder %s5682_s15, %s5678_s14 }
   0x6   : > { %p243_p1 = scmp.eq.s32.totalorder %s242_s21, 0  ;;  %p256_p2 = scmp.eq.s32.totalorder %s5781_s17, 1 }
   0x7   : > { %p261_p3 = scmp.ne.s32.totalorder %s5678_s14, %s5674_s13  ;;  %p262_p4 = scmp.eq.s32.totalorder %s5218_s18, 1 }
   0x8   : > { %s5796_s22 = scalar_select %p243_p1, %s5682_s15, %s245_s20  }
   0x9   : > { %p5798_p5 = por %p256_p2, %p255_p0  ;;  %p5802_p6 = por %p262_p4, %p261_p3 }
   0xa   : > { %p5221_p7 = scmp.ge.s32.totalorder %s5686_s16, 1  ;;  %p315_p8 = scmp.lt.s32.totalorder %s5686_s16, 3 }
   0xc   : > { %p316_p9 = pnand %p5221_p7, %p315_p8 }
   0xe   : > { %319 = sbr.rel (%p316_p9) target bundleno = 1582 (0x62e), region = 60 }
  0x15   : > { %vm358_vm0 = vcmask 31744   ;;  %p353_p10 = scmp.lt.s32.totalorder %s5781_s17, 1  ;;  %vm361_vm1 = vcmask 25600   ;;  %v8488_v0 = vmov 0.0   ;;  %s5689_s30 = smov 4   ;;  %vm703_vm2 = vcmask 64544  }
  0x16   : > { %359 = vst.msk [vmem:[#allocation2] sm:$0xff] %vm358_vm0, %v8488_v0  ;;  %360 = vst.msk [vmem:[#allocation2 + $0x8] sm:$0xff] %vm358_vm0, %v8488_v0  ;;  %s8509_s11 = smov 8   ;;  %s5691_s12 = smov 12   ;;  %vm896_vm3 = vcmask 97344   ;;  %vm1089_vm4 = vcmask 130144  }
  0x17   : > { %363 = vst.msk [vmem:[#allocation2 + $0x18] sm:$0xff] %vm358_vm0, %v8488_v0  ;;  %364 = vst.msk [vmem:[#allocation2 + $0x20] sm:$0xff] %vm358_vm0, %v8488_v0  ;;  %s354_s25 = scalar_select %p353_p10, %s5781_s17, 1  ;;  %vm2222_vm5 = vcmask 1043456   ;;  %vm1282_vm6 = vcmask 162944   ;;  %vm1475_vm7 = vcmask 195744  }
  0x18   : > { %366 = vst.msk [vmem:[#allocation2 + $0x30] sm:$0xff] %vm358_vm0, %v8488_v0  ;;  %367 = vst.msk [vmem:[#allocation2 + $0x38] sm:$0xff] %vm358_vm0, %v8488_v0  ;;  %s5692_s18 = smov 16   ;;  %s5693_s20 = smov 20   ;;  %vm1669_vm8 = vcmask 228544   ;;  %vm1862_vm9 = vcmask 261344  }
  0x19   : > { %369 = vst.msk [vmem:[#allocation2 + $0x48] sm:$0xff] %vm358_vm0, %v8488_v0  ;;  %370 = vst.msk [vmem:[#allocation2 + $0x50] sm:$0xff] %vm358_vm0, %v8488_v0  ;;  %s5334_s26 = sshll.u32 %s354_s25, 8  ;;  %s5694_s28 = smov 24   ;;  %vm2055_vm10 = vcmask 294144   ;;  %vm2125_vm11 = vcmask 293888  }
  0x1a   : > { %372 = vst.msk [vmem:[#allocation2 + $0x60] sm:$0xff] %vm358_vm0, %v8488_v0  ;;  %373 = vst.msk [vmem:[#allocation2 + $0x68] sm:$0xff] %vm358_vm0, %v8488_v0  ;;  %s5923_s29 = scalar_lea.vmem %s8477_s0, %s5334_s26  ;;  %s5695_s25 = smov 28   ;;  %vm2561_vm12 = vcmask 130048   ;;  %vm2564_vm13 = vcmask 123904   ;;  %vm2874_vm14 = vcmask 261248  }
  0x1b   : > { %375 = vst.msk [vmem:[#allocation2 + $0x78] sm:$0xff] %vm358_vm0, %v8488_v0  ;;  %376 = vst.msk [vmem:[#allocation2 + $0x80] sm:$0xff] %vm358_vm0, %v8488_v0  ;;  %v414_v1 = vld [vmem:[%s5923_s29] sm:$0xff]  ;;  %v415_v2 = vld [vmem:[%s5923_s29 + $0x8] sm:$0xff]  ;;  %s5696_s26 = smov 32   ;;  %s5698_s21 = smov 48  }
  0x1c   : > { %378 = vst.msk [vmem:[#allocation2 + $0x90] sm:$0xff] %vm358_vm0, %v8488_v0  ;;  %379 = vst.msk [vmem:[#allocation2 + $0x98] sm:$0xff] %vm358_vm0, %v8488_v0  ;;  %v416_v3 = vld [vmem:[%s5923_s29 + $0x10] sm:$0xff]  ;;  %v417_v4 = vld [vmem:[%s5923_s29 + $0x18] sm:$0xff]  ;;  %vm3067_vm15 = vcmask 392448  }
  0x1d   : > { %381 = vst.msk [vmem:[#allocation2 + $0xa8] sm:$0xff] %vm358_vm0, %v8488_v0  ;;  %382 = vst.msk [vmem:[#allocation2 + $0xb0] sm:$0xff] %vm358_vm0, %v8488_v0  ;;  %v418_v5 = vld [vmem:[%s5923_s29 + $0x20] sm:$0xff]  ;;  %v419_v6 = vld [vmem:[%s5923_s29 + $0x28] sm:$0xff] }
  0x1e   : > { %384 = vst.msk [vmem:[#allocation2 + $0xc0] sm:$0xff] %vm358_vm0, %v8488_v0  ;;  %385 = vst.msk [vmem:[#allocation2 + $0xc8] sm:$0xff] %vm358_vm0, %v8488_v0  ;;  %v543_v7 = vld [vmem:[#allocation2 + $0x1] sm:$0xff]  ;;  %v420_v9 = vld [vmem:[%s5923_s29 + $0x30] sm:$0xff] }
  0x1f   : > { %387 = vst.msk [vmem:[#allocation2 + $0xd8] sm:$0xff] %vm358_vm0, %v8488_v0  ;;  %388 = vst.msk [vmem:[#allocation2 + $0xe0] sm:$0xff] %vm358_vm0, %v8488_v0  ;;  %607 = vrot.lane.b32.xlu0 %v543_v7, %s5689_s30  ;;  %v421_v10 = vld [vmem:[%s5923_s29 + $0x38] sm:$0xff]  ;;  %v422_v11 = vld [vmem:[%s5923_s29 + $0x40] sm:$0xff] }
  0x20   : > { %390 = vst.msk [vmem:[#allocation2 + $0xf0] sm:$0xff] %vm358_vm0, %v8488_v0  ;;  %391 = vst.msk [vmem:[#allocation2 + $0xf8] sm:$0xff] %vm358_vm0, %v8488_v0  ;;  %v423_v12 = vld [vmem:[%s5923_s29 + $0x48] sm:$0xff]  ;;  %v424_v13 = vld [vmem:[%s5923_s29 + $0x50] sm:$0xff] }
  0x21   : > { %393 = vst.msk [vmem:[#allocation2 + $0x108] sm:$0xff] %vm358_vm0, %v8488_v0  ;;  %394 = vst.msk [vmem:[#allocation2 + $0x110] sm:$0xff] %vm358_vm0, %v8488_v0  ;;  %v425_v14 = vld [vmem:[%s5923_s29 + $0x58] sm:$0xff]  ;;  %v426_v15 = vld [vmem:[%s5923_s29 + $0x60] sm:$0xff] }
  0x22   : > { %396 = vst.msk [vmem:[#allocation2 + $0x120] sm:$0xff] %vm358_vm0, %v8488_v0  ;;  %397 = vst.msk [vmem:[#allocation2 + $0x128] sm:$0xff] %vm358_vm0, %v8488_v0  ;;  %v427_v16 = vld [vmem:[%s5923_s29 + $0x68] sm:$0xff]  ;;  %v428_v17 = vld [vmem:[%s5923_s29 + $0x70] sm:$0xff] }
  0x23   : > { %399 = vst.msk [vmem:[#allocation2 + $0x138] sm:$0xff] %vm358_vm0, %v8488_v0  ;;  %400 = vst.msk [vmem:[#allocation2 + $0x140] sm:$0xff] %vm358_vm0, %v8488_v0  ;;  %v429_v18 = vld [vmem:[%s5923_s29 + $0x78] sm:$0xff]  ;;  %v430_v19 = vld [vmem:[%s5923_s29 + $0x80] sm:$0xff] }
  0x24   : > { %402 = vst.msk [vmem:[#allocation2 + $0x150] sm:$0xff] %vm358_vm0, %v8488_v0  ;;  %403 = vst.msk [vmem:[#allocation2 + $0x158] sm:$0xff] %vm358_vm0, %v8488_v0  ;;  %v431_v20 = vld [vmem:[%s5923_s29 + $0x88] sm:$0xff]  ;;  %v432_v21 = vld [vmem:[%s5923_s29 + $0x90] sm:$0xff] }
  0x25   : > { %405 = vst.msk [vmem:[#allocation2 + $0x168] sm:$0xff] %vm358_vm0, %v8488_v0  ;;  %406 = vst.msk [vmem:[#allocation2 + $0x170] sm:$0xff] %vm358_vm0, %v8488_v0  ;;  %v433_v22 = vld [vmem:[%s5923_s29 + $0x98] sm:$0xff]  ;;  %v434_v23 = vld [vmem:[%s5923_s29 + $0xa0] sm:$0xff] }
  0x26   : > { %408 = vst.msk [vmem:[#allocation2 + $0x180] sm:$0xff] %vm358_vm0, %v8488_v0  ;;  %409 = vst.msk [vmem:[#allocation2 + $0x188] sm:$0xff] %vm358_vm0, %v8488_v0  ;;  %v435_v24 = vld [vmem:[%s5923_s29 + $0xa8] sm:$0xff]  ;;  %v436_v28 = vld [vmem:[%s5923_s29 + $0xb0] sm:$0xff] }
  0x27   : > { %411 = vst.msk [vmem:[#allocation2 + $0x198] sm:$0xff] %vm358_vm0, %v8488_v0  ;;  %412 = vst.msk [vmem:[#allocation2 + $0x1a0] sm:$0xff] %vm358_vm0, %v8488_v0  ;;  %v437_v29 = vld [vmem:[%s5923_s29 + $0xb8] sm:$0xff]  ;;  %v438_v33 = vld [vmem:[%s5923_s29 + $0xc0] sm:$0xff] }
  0x28   : > { %362 = vst.msk [vmem:[#allocation2 + $0x10] sm:$0x3] %vm361_vm1, %v8488_v0  ;;  %365 = vst.msk [vmem:[#allocation2 + $0x28] sm:$0x3] %vm361_vm1, %v8488_v0  ;;  %v439_v34 = vld [vmem:[%s5923_s29 + $0xc8] sm:$0xff]  ;;  %v440_v35 = vld [vmem:[%s5923_s29 + $0xd0] sm:$0xff] }
  0x29   : > { %368 = vst.msk [vmem:[#allocation2 + $0x40] sm:$0x3] %vm361_vm1, %v8488_v0  ;;  %371 = vst.msk [vmem:[#allocation2 + $0x58] sm:$0x3] %vm361_vm1, %v8488_v0  ;;  %v441_v36 = vld [vmem:[%s5923_s29 + $0xd8] sm:$0xff]  ;;  %v442_v37 = vld [vmem:[%s5923_s29 + $0xe0] sm:$0xff] }
  0x2a   : > { %374 = vst.msk [vmem:[#allocation2 + $0x70] sm:$0x3] %vm361_vm1, %v8488_v0  ;;  %377 = vst.msk [vmem:[#allocation2 + $0x88] sm:$0x3] %vm361_vm1, %v8488_v0  ;;  %v443_v38 = vld [vmem:[%s5923_s29 + $0xe8] sm:$0xff]  ;;  %v479_v45 = vld [vmem:[#allocation2] sm:$0xff] }
  0x2b   : > { %380 = vst.msk [vmem:[#allocation2 + $0xa0] sm:$0x3] %vm361_vm1, %v8488_v0  ;;  %383 = vst.msk [vmem:[#allocation2 + $0xb8] sm:$0x3] %vm361_vm1, %v8488_v0  ;;  %v480_v48 = vld [vmem:[#allocation2 + $0x8] sm:$0xff] }
  0x2c   : > { %386 = vst.msk [vmem:[#allocation2 + $0xd0] sm:$0x3] %vm361_vm1, %v8488_v0  ;;  %389 = vst.msk [vmem:[#allocation2 + $0xe8] sm:$0x3] %vm361_vm1, %v8488_v0 }
  0x2d   : > { %392 = vst.msk [vmem:[#allocation2 + $0x100] sm:$0x3] %vm361_vm1, %v8488_v0  ;;  %395 = vst.msk [vmem:[#allocation2 + $0x118] sm:$0x3] %vm361_vm1, %v8488_v0 }
  0x2e   : > { %398 = vst.msk [vmem:[#allocation2 + $0x130] sm:$0x3] %vm361_vm1, %v8488_v0  ;;  %401 = vst.msk [vmem:[#allocation2 + $0x148] sm:$0x3] %vm361_vm1, %v8488_v0 }
  0x2f   : > { %404 = vst.msk [vmem:[#allocation2 + $0x160] sm:$0x3] %vm361_vm1, %v8488_v0  ;;  %407 = vst.msk [vmem:[#allocation2 + $0x178] sm:$0x3] %vm361_vm1, %v8488_v0  ;;  %v544_v8 = vld [vmem:[#allocation2 + $0x9] sm:$0xff] }
  0x30   : > { %410 = vst.msk [vmem:[#allocation2 + $0x190] sm:$0x3] %vm361_vm1, %v8488_v0  ;;  %413 = vst.msk [vmem:[#allocation2 + $0x1a8] sm:$0x3] %vm361_vm1, %v8488_v0  ;;  %609 = vrot.lane.b32.xlu0 %v544_v8, %s5689_s30  ;;  %vm3260_vm1 = vcmask 523648  }
  0x31   : > { %447 = vst.msk [vmem:[#allocation2 + $0x19] sm:$0xff] %vm358_vm0, %v414_v1  ;;  %448 = vst.msk [vmem:[#allocation2 + $0x21] sm:$0xff] %vm358_vm0, %v415_v2 }
  0x32   : > { %449 = vst.msk [vmem:[#allocation2 + $0x31] sm:$0xff] %vm358_vm0, %v416_v3  ;;  %450 = vst.msk [vmem:[#allocation2 + $0x39] sm:$0xff] %vm358_vm0, %v417_v4 }
  0x33   : > { %451 = vst.msk [vmem:[#allocation2 + $0x49] sm:$0xff] %vm358_vm0, %v418_v5  ;;  %452 = vst.msk [vmem:[#allocation2 + $0x51] sm:$0xff] %vm358_vm0, %v419_v6 }
  0x34   : > { %453 = vst.msk [vmem:[#allocation2 + $0x61] sm:$0xff] %vm358_vm0, %v420_v9  ;;  %454 = vst.msk [vmem:[#allocation2 + $0x69] sm:$0xff] %vm358_vm0, %v421_v10 }
  0x35   : > { %455 = vst.msk [vmem:[#allocation2 + $0x79] sm:$0xff] %vm358_vm0, %v422_v11  ;;  %456 = vst.msk [vmem:[#allocation2 + $0x81] sm:$0xff] %vm358_vm0, %v423_v12 }
  0x36   : > { %457 = vst.msk [vmem:[#allocation2 + $0x91] sm:$0xff] %vm358_vm0, %v424_v13  ;;  %458 = vst.msk [vmem:[#allocation2 + $0x99] sm:$0xff] %vm358_vm0, %v425_v14 }
  0x37   : > { %459 = vst.msk [vmem:[#allocation2 + $0xa9] sm:$0xff] %vm358_vm0, %v426_v15  ;;  %460 = vst.msk [vmem:[#allocation2 + $0xb1] sm:$0xff] %vm358_vm0, %v427_v16 }
  0x38   : > { %461 = vst.msk [vmem:[#allocation2 + $0xc1] sm:$0xff] %vm358_vm0, %v428_v17  ;;  %462 = vst.msk [vmem:[#allocation2 + $0xc9] sm:$0xff] %vm358_vm0, %v429_v18  ;;  %v5968_v25 = vld [vmem:[#allocation2 + $0x19] sm:$0xff]  ;;  %v5977_v27 = vld [vmem:[#allocation2 + $0x21] sm:$0xff] }
  0x39   : > { %463 = vst.msk [vmem:[#allocation2 + $0xd9] sm:$0xff] %vm358_vm0, %v430_v19  ;;  %464 = vst.msk [vmem:[#allocation2 + $0xe1] sm:$0xff] %vm358_vm0, %v431_v20  ;;  %v5970_v26 = vld [vmem:[#allocation2 + $0x31] sm:$0xff]  ;;  %611 = vrot.lane.b32.xlu1 %v5968_v25, %s5689_s30  ;;  %v5989_v31 = vld [vmem:[#allocation2 + $0x39] sm:$0xff] }
  0x3a   : > { %465 = vst.msk [vmem:[#allocation2 + $0xf1] sm:$0xff] %vm358_vm0, %v432_v21  ;;  %466 = vst.msk [vmem:[#allocation2 + $0xf9] sm:$0xff] %vm358_vm0, %v433_v22  ;;  %615 = vrot.lane.b32.xlu0 %v5970_v26, %s5689_s30  ;;  %v5985_v30 = vld [vmem:[#allocation2 + $0x49] sm:$0xff]  ;;  %v6006_v39 = vld [vmem:[#allocation2 + $0x51] sm:$0xff] }
  0x3b   : > { %467 = vst.msk [vmem:[#allocation2 + $0x109] sm:$0xff] %vm358_vm0, %v434_v23  ;;  %468 = vst.msk [vmem:[#allocation2 + $0x111] sm:$0xff] %vm358_vm0, %v435_v24  ;;  %v5993_v32 = vld [vmem:[#allocation2 + $0x61] sm:$0xff]  ;;  %v6017_v41 = vld [vmem:[#allocation2 + $0x69] sm:$0xff] }
  0x3c   : > { %469 = vst.msk [vmem:[#allocation2 + $0x121] sm:$0xff] %vm358_vm0, %v436_v28  ;;  %470 = vst.msk [vmem:[#allocation2 + $0x129] sm:$0xff] %vm358_vm0, %v437_v29  ;;  %v6013_v40 = vld [vmem:[#allocation2 + $0x79] sm:$0xff]  ;;  %v6025_v43 = vld [vmem:[#allocation2 + $0x81] sm:$0xff] }
  0x3d   : > { %613 = vrot.lane.b32.xlu1 %v5977_v27, %s5689_s30  ;;  %471 = vst.msk [vmem:[#allocation2 + $0x139] sm:$0xff] %vm358_vm0, %v438_v33  ;;  %472 = vst.msk [vmem:[#allocation2 + $0x141] sm:$0xff] %vm358_vm0, %v439_v34  ;;  %v6021_v42 = vld [vmem:[#allocation2 + $0x91] sm:$0xff]  ;;  %v6033_v46 = vld [vmem:[#allocation2 + $0x99] sm:$0xff] }
  0x3e   : > { %619 = vrot.lane.b32.xlu0 %v5985_v30, %s5689_s30  ;;  %473 = vst.msk [vmem:[#allocation2 + $0x151] sm:$0xff] %vm358_vm0, %v440_v35  ;;  %474 = vst.msk [vmem:[#allocation2 + $0x159] sm:$0xff] %vm358_vm0, %v441_v36  ;;  %v6029_v44 = vld [vmem:[#allocation2 + $0xa9] sm:$0xff]  ;;  %v6036_v47 = vld [vmem:[#allocation2 + $0x18] sm:$0xff] }
  0x3f   : > { %475 = vst.msk [vmem:[#allocation2 + $0x169] sm:$0xff] %vm358_vm0, %v442_v37  ;;  %476 = vst.msk [vmem:[#allocation2 + $0x171] sm:$0xff] %vm358_vm0, %v443_v38  ;;  %v6043_v49 = vld [vmem:[#allocation2 + $0x20] sm:$0xff]  ;;  %v6045_v50 = vld [vmem:[#allocation2 + $0x30] sm:$0xff] }
  0x40   : > { %511 = vst.msk [vmem:[#allocation3] sm:$0xff] %vm358_vm0, %v479_v45  ;;  %513 = vst.msk [vmem:[#allocation3 + $0x10] sm:$0xff] %vm358_vm0, %v6036_v47  ;;  %v6047_v51 = vld [vmem:[#allocation2 + $0xc1] sm:$0xff]  ;;  %v6053_v52 = vld [vmem:[#allocation2 + $0x38] sm:$0xff] }
  0x41   : > { %617 = vrot.lane.b32.xlu1 %v5989_v31, %s5689_s30  ;;  %512 = vst.msk [vmem:[#allocation3 + $0x8] sm:$0xff] %vm358_vm0, %v480_v48  ;;  %514 = vst.msk [vmem:[#allocation3 + $0x18] sm:$0xff] %vm358_vm0, %v6043_v49  ;;  %v6057_v53 = vld [vmem:[#allocation2 + $0xb1] sm:$0xff]  ;;  %v6061_v54 = vld [vmem:[#allocation2 + $0x48] sm:$0xff] }
  0x42   : > { %623 = vrot.lane.b32.xlu0 %v5993_v32, %s5689_s30  ;;  %515 = vst.msk [vmem:[#allocation3 + $0x20] sm:$0xff] %vm358_vm0, %v6045_v50  ;;  %516 = vst.msk [vmem:[#allocation3 + $0x28] sm:$0xff] %vm358_vm0, %v6053_v52  ;;  %v6063_v55 = vld [vmem:[#allocation2 + $0x50] sm:$0xff]  ;;  %v6065_v56 = vld [vmem:[#allocation2 + $0xd9] sm:$0xff] }
  0x43   : > { %517 = vst.msk [vmem:[#allocation3 + $0x30] sm:$0xff] %vm358_vm0, %v6061_v54  ;;  %518 = vst.msk [vmem:[#allocation3 + $0x38] sm:$0xff] %vm358_vm0, %v6063_v55  ;;  %v6071_v57 = vld [vmem:[#allocation2 + $0x60] sm:$0xff]  ;;  %v6073_v58 = vld [vmem:[#allocation2 + $0x68] sm:$0xff] }
  0x44   : > { %v6075_v59 = vld [vmem:[#allocation2 + $0x78] sm:$0xff]  ;;  %519 = vst.msk [vmem:[#allocation3 + $0x40] sm:$0xff] %vm358_vm0, %v6071_v57  ;;  %520 = vst.msk [vmem:[#allocation3 + $0x48] sm:$0xff] %vm358_vm0, %v6073_v58  ;;  %v6085_v60 = vld [vmem:[#allocation2 + $0x80] sm:$0xff] }
  0x45   : > { %621 = vrot.lane.b32.xlu1 %v6006_v39, %s5689_s30  ;;  %521 = vst.msk [vmem:[#allocation3 + $0x50] sm:$0xff] %vm358_vm0, %v6075_v59  ;;  %v6087_v61 = vld [vmem:[#allocation2 + $0x90] sm:$0xff]  ;;  %v6089_v62 = vld [vmem:[#allocation2 + $0x98] sm:$0xff]  ;;  %522 = vst.msk [vmem:[#allocation3 + $0x58] sm:$0xff] %vm358_vm0, %v6085_v60 }
  0x46   : > { %627 = vrot.lane.b32.xlu0 %v6013_v40, %s5689_s30  ;;  %v6091_v63 = vld [vmem:[#allocation2 + $0xc9] sm:$0xff]  ;;  %523 = vst.msk [vmem:[#allocation3 + $0x60] sm:$0xff] %vm358_vm0, %v6087_v61  ;;  %524 = vst.msk [vmem:[#allocation3 + $0x68] sm:$0xff] %vm358_vm0, %v6089_v62  ;;  %v6103_v3 = vld [vmem:[#allocation2 + $0xc0] sm:$0xff] }
  0x47   : > { %v6099_v1 = vld [vmem:[#allocation2 + $0xa8] sm:$0xff]  ;;  %v6101_v2 = vld [vmem:[#allocation2 + $0xb0] sm:$0xff]  ;;  %527 = vst.msk [vmem:[#allocation3 + $0x80] sm:$0xff] %vm358_vm0, %v6103_v3  ;;  %v6115_v5 = vld [vmem:[#allocation2 + $0xd8] sm:$0xff] }
  0x48   : > { %525 = vst.msk [vmem:[#allocation3 + $0x70] sm:$0xff] %vm358_vm0, %v6099_v1  ;;  %526 = vst.msk [vmem:[#allocation3 + $0x78] sm:$0xff] %vm358_vm0, %v6101_v2  ;;  %v6113_v4 = vld [vmem:[#allocation2 + $0xc8] sm:$0xff]  ;;  %v6117_v6 = vld [vmem:[#allocation2 + $0xe0] sm:$0xff] }
  0x49   : > { %625 = vrot.lane.b32.xlu1 %v6017_v41, %s5689_s30  ;;  %528 = vst.msk [vmem:[#allocation3 + $0x88] sm:$0xff] %vm358_vm0, %v6113_v4  ;;  %529 = vst.msk [vmem:[#allocation3 + $0x90] sm:$0xff] %vm358_vm0, %v6115_v5  ;;  %v6125_v7 = vld [vmem:[#allocation2 + $0xf0] sm:$0xff]  ;;  %v6127_v8 = vld [vmem:[#allocation2 + $0xf8] sm:$0xff] }
  0x4a   : > { %631 = vrot.lane.b32.xlu0 %v6021_v42, %s5689_s30  ;;  %530 = vst.msk [vmem:[#allocation3 + $0x98] sm:$0xff] %vm358_vm0, %v6117_v6  ;;  %v6129_v9 = vld [vmem:[#allocation2 + $0x108] sm:$0xff]  ;;  %531 = vst.msk [vmem:[#allocation3 + $0xa0] sm:$0xff] %vm358_vm0, %v6125_v7  ;;  %v6139_v10 = vld [vmem:[#allocation2 + $0x110] sm:$0xff] }
  0x4b   : > { %532 = vst.msk [vmem:[#allocation3 + $0xa8] sm:$0xff] %vm358_vm0, %v6127_v8  ;;  %533 = vst.msk [vmem:[#allocation3 + $0xb0] sm:$0xff] %vm358_vm0, %v6129_v9  ;;  %v6141_v11 = vld [vmem:[#allocation2 + $0xf1] sm:$0xff]  ;;  %v6145_v12 = vld [vmem:[#allocation2 + $0x120] sm:$0xff] }
  0x4c   : > { %534 = vst.msk [vmem:[#allocation3 + $0xb8] sm:$0xff] %vm358_vm0, %v6139_v10  ;;  %535 = vst.msk [vmem:[#allocation3 + $0xc0] sm:$0xff] %vm358_vm0, %v6145_v12  ;;  %v6151_v13 = vld [vmem:[#allocation2 + $0x128] sm:$0xff]  ;;  %v6161_v16 = vld [vmem:[#allocation2 + $0x138] sm:$0xff] }
  0x4d   : > { %629 = vrot.lane.b32.xlu1 %v6025_v43, %s5689_s30  ;;  %v6153_v14 = vld [vmem:[#allocation2 + $0xe1] sm:$0xff]  ;;  %536 = vst.msk [vmem:[#allocation3 + $0xc8] sm:$0xff] %vm358_vm0, %v6151_v13  ;;  %v6159_v15 = vld [vmem:[#allocation2 + $0x109] sm:$0xff]  ;;  %537 = vst.msk [vmem:[#allocation3 + $0xd0] sm:$0xff] %vm358_vm0, %v6161_v16 }
  0x4e   : > { %635 = vrot.lane.b32.xlu0 %v6029_v44, %s5689_s30  ;;  %v6167_v17 = vld [vmem:[#allocation2 + $0x140] sm:$0xff]  ;;  %v6177_v20 = vld [vmem:[#allocation2 + $0x150] sm:$0xff]  ;;  %v6183_v21 = vld [vmem:[#allocation2 + $0x158] sm:$0xff] }
  0x4f   : > { %v6169_v18 = vld [vmem:[#allocation2 + $0xf9] sm:$0xff]  ;;  %538 = vst.msk [vmem:[#allocation3 + $0xd8] sm:$0xff] %vm358_vm0, %v6167_v17  ;;  %v6175_v19 = vld [vmem:[#allocation2 + $0x121] sm:$0xff]  ;;  %539 = vst.msk [vmem:[#allocation3 + $0xe0] sm:$0xff] %vm358_vm0, %v6177_v20 }
  0x50   : > { %v6185_v22 = vld [vmem:[#allocation2 + $0x111] sm:$0xff]  ;;  %540 = vst.msk [vmem:[#allocation3 + $0xe8] sm:$0xff] %vm358_vm0, %v6183_v21  ;;  %v6191_v23 = vld [vmem:[#allocation2 + $0x139] sm:$0xff]  ;;  %v6193_v24 = vld [vmem:[#allocation2 + $0x168] sm:$0xff] }
  0x51   : > { %633 = vrot.lane.b32.xlu1 %v6033_v46, %s5689_s30  ;;  %541 = vst.msk [vmem:[#allocation3 + $0xf0] sm:$0xff] %vm358_vm0, %v6193_v24  ;;  %v6199_v28 = vld [vmem:[#allocation2 + $0x170] sm:$0xff]  ;;  %v6211_v34 = vld [vmem:[#allocation2 + $0x141] sm:$0xff]  ;;  %v445_v37 = vld [vmem:[%s5923_s29 + $0xf8] sm:$0xff] }
  0x52   : > { %639 = vrot.lane.b32.xlu0 %v6047_v51, %s5689_s30  ;;  %v6201_v29 = vld [vmem:[#allocation2 + $0x129] sm:$0xff]  ;;  %542 = vst.msk [vmem:[#allocation3 + $0xf8] sm:$0xff] %vm358_vm0, %v6199_v28  ;;  %v6207_v33 = vld [vmem:[#allocation2 + $0x151] sm:$0xff]  ;;  %8513 = vst [vmem:[#allocation10_spill] sm:$0xff] %v6211_v34 }
  0x53   : > { %8512 = vst [vmem:[#allocation9_spill] sm:$0xff] %v6207_v33  ;;  %v444_v35 = vld [vmem:[%s5923_s29 + $0xf0] sm:$0xff]  ;;  %478 = vst.msk [vmem:[#allocation2 + $0x189] sm:$0xff] %vm358_vm0, %v445_v37  ;;  %v6223_v38 = vld [vmem:[#allocation2 + $0x159] sm:$0xff] }
  0x54   : > { %477 = vst.msk [vmem:[#allocation2 + $0x181] sm:$0xff] %vm358_vm0, %v444_v35  ;;  %v6217_v36 = vld [vmem:[#allocation2 + $0x169] sm:$0xff]  ;;  %8515 = vst [vmem:[#allocation12_spill] sm:$0xff] %v6223_v38  ;;  %v6229_v48 = vld [vmem:[#allocation2 + $0x171] sm:$0xff] }
  0x55   : > { %637 = vrot.lane.b32.xlu1 %v6057_v53, %s5689_s30  ;;  %8514 = vst [vmem:[#allocation11_spill] sm:$0xff] %v6217_v36  ;;  %v736_v45 = vld [vmem:[#allocation2 + $0x2] sm:$0xff]  ;;  %8516 = vst [vmem:[#allocation13_spill] sm:$0xff] %v6229_v48  ;;  %v6232_v35 = vld [vmem:[#allocation2 + $0x1a] sm:$0xff] }
  0x56   : > { %643 = vrot.lane.b32.xlu0 %v6065_v56, %s5689_s30  ;;  %8517 = vst [vmem:[#allocation14_spill] sm:$0xff] %v6232_v35  ;;  %v737_v37 = vld [vmem:[#allocation2 + $0xa] sm:$0xff]  ;;  %v6238_v0 = vld [vmem:[#allocation2 + $0x32] sm:$0xff] }
  0x57   : > { %8518 = vst [vmem:[#allocation15_spill] sm:$0xff] %v6238_v0 }
  0x59   : > { %641 = vrot.lane.b32.xlu1 %v6091_v63, %s5689_s30 }
  0x5a   : > { %647 = vrot.lane.b32.xlu0 %v6141_v11, %s5689_s30 }
  0x5d   : > { %645 = vrot.lane.b32.xlu1 %v6153_v14, %s5689_s30 }
  0x5e   : > { %651 = vrot.lane.b32.xlu0 %v6159_v15, %s5689_s30 }
  0x61   : > { %649 = vrot.lane.b32.xlu1 %v6169_v18, %s5689_s30 }
  0x62   : > { %655 = vrot.lane.b32.xlu0 %v6175_v19, %s5689_s30 }
  0x65   : > { %653 = vrot.lane.b32.xlu1 %v6185_v22, %s5689_s30 }
  0x66   : > { %659 = vrot.lane.b32.xlu0 %v6191_v23, %s5689_s30 }
  0x69   : > { %657 = vrot.lane.b32.xlu1 %v6201_v29, %s5689_s30 }
  0x6a   : > { %663 = vrot.lane.b32.xlu0 %v6207_v33, %s5689_s30  ;;  %v753_v33 = vld [vmem:[#allocation2 + $0xca] sm:$0xff] }
  0x6d   : > { %661 = vrot.lane.b32.xlu1 %v6211_v34, %s5689_s30  ;;  %v749_v34 = vld [vmem:[#allocation2 + $0x9a] sm:$0xff] }
  0x6e   : > { %667 = vrot.lane.b32.xlu0 %v6217_v36, %s5689_s30  ;;  %v6241_v36 = vld [vmem:[#allocation2 + $0x22] sm:$0xff] }
  0x6f   : > { %8519 = vst [vmem:[#allocation16_spill] sm:$0xff] %v6241_v36 }
  0x71   : > { %665 = vrot.lane.b32.xlu1 %v6223_v38, %s5689_s30  ;;  %v6245_v38 = vld [vmem:[#allocation2 + $0x4a] sm:$0xff] }
  0x72   : > { %800 = vrot.lane.b32.xlu0 %v736_v45, %s8509_s11  ;;  %8520 = vst [vmem:[#allocation17_spill] sm:$0xff] %v6245_v38  ;;  %v6249_v45 = vld [vmem:[#allocation2 + $0x3a] sm:$0xff] }
  0x73   : > { %8521 = vst [vmem:[#allocation18_spill] sm:$0xff] %v6249_v45 }
  0x75   : > { %669 = vrot.lane.b32.xlu1 %v6229_v48, %s5689_s30  ;;  %v748_v48 = vld [vmem:[#allocation2 + $0x92] sm:$0xff]  ;;  %s5700_s30 = smov 64  }
  0x76   : > { %804 = vrot.lane.b32.xlu0 %v6232_v35, %s8509_s11  ;;  %v6253_v35 = vld [vmem:[#allocation2 + $0x62] sm:$0xff] }
  0x77   : > { %8522 = vst [vmem:[#allocation19_spill] sm:$0xff] %v6253_v35 }
  0x79   : > { %802 = vrot.lane.b32.xlu1 %v737_v37, %s8509_s11  ;;  %v6257_v37 = vld [vmem:[#allocation2 + $0x52] sm:$0xff] }
  0x7a   : > { %808 = vrot.lane.b32.xlu0 %v6238_v0, %s8509_s11  ;;  %8523 = vst [vmem:[#allocation20_spill] sm:$0xff] %v6257_v37  ;;  %v746_v0 = vld [vmem:[#allocation2 + $0x7a] sm:$0xff] }
  0x7d   : > { %806 = vrot.lane.b32.xlu1 %v6241_v36, %s8509_s11  ;;  %v6263_v36 = vld [vmem:[#allocation2 + $0x6a] sm:$0xff] }
  0x7e   : > { %812 = vrot.lane.b32.xlu0 %v6245_v38, %s8509_s11  ;;  %8524 = vst [vmem:[#allocation21_spill] sm:$0xff] %v6263_v36  ;;  %v747_v38 = vld [vmem:[#allocation2 + $0x82] sm:$0xff] }
  0x81   : > { %810 = vrot.lane.b32.xlu1 %v6249_v45, %s8509_s11  ;;  %v750_v45 = vld [vmem:[#allocation2 + $0xaa] sm:$0xff] }
  0x82   : > { %816 = vrot.lane.b32.xlu0 %v6253_v35, %s8509_s11  ;;  %v752_v35 = vld [vmem:[#allocation2 + $0xc2] sm:$0xff] }
  0x85   : > { %814 = vrot.lane.b32.xlu1 %v6257_v37, %s8509_s11  ;;  %v751_v37 = vld [vmem:[#allocation2 + $0xb2] sm:$0xff] }
  0x86   : > { %820 = vrot.lane.b32.xlu0 %v746_v0, %s8509_s11  ;;  %v754_v0 = vld [vmem:[#allocation2 + $0xda] sm:$0xff] }
  0x89   : > { %818 = vrot.lane.b32.xlu1 %v6263_v36, %s8509_s11  ;;  %v756_v36 = vld [vmem:[#allocation2 + $0xf2] sm:$0xff] }
  0x8a   : > { %824 = vrot.lane.b32.xlu0 %v748_v48, %s8509_s11  ;;  %v755_v48 = vld [vmem:[#allocation2 + $0xe2] sm:$0xff] }
  0x8d   : > { %822 = vrot.lane.b32.xlu1 %v747_v38, %s8509_s11  ;;  %v758_v38 = vld [vmem:[#allocation2 + $0x10a] sm:$0xff] }
  0x8e   : > { %828 = vrot.lane.b32.xlu0 %v750_v45, %s8509_s11  ;;  %v757_v45 = vld [vmem:[#allocation2 + $0xfa] sm:$0xff] }
  0x91   : > { %826 = vrot.lane.b32.xlu1 %v749_v34, %s8509_s11  ;;  %v760_v34 = vld [vmem:[#allocation2 + $0x122] sm:$0xff] }
  0x92   : > { %832 = vrot.lane.b32.xlu0 %v752_v35, %s8509_s11  ;;  %v759_v35 = vld [vmem:[#allocation2 + $0x112] sm:$0xff] }
  0x95   : > { %830 = vrot.lane.b32.xlu1 %v751_v37, %s8509_s11  ;;  %v762_v37 = vld [vmem:[#allocation2 + $0x13a] sm:$0xff] }
  0x96   : > { %836 = vrot.lane.b32.xlu0 %v754_v0, %s8509_s11  ;;  %v764_v0 = vld [vmem:[#allocation2 + $0x152] sm:$0xff] }
  0x99   : > { %834 = vrot.lane.b32.xlu1 %v753_v33, %s8509_s11  ;;  %v608_v33 = vpop.permute.xlu0 %607 }
  0x9a   : > { %840 = vrot.lane.b32.xlu0 %v756_v36, %s8509_s11  ;;  %704 = vst.msk [vmem:[#allocation3] sm:$0xff] %vm703_vm2, %v608_v33  ;;  %v761_v36 = vld [vmem:[#allocation2 + $0x12a] sm:$0xff]  ;;  %v765_v33 = vld [vmem:[#allocation2 + $0x15a] sm:$0xff] }
  0x9d   : > { %838 = vrot.lane.b32.xlu1 %v755_v48, %s8509_s11 }
  0x9e   : > { %844 = vrot.lane.b32.xlu0 %v758_v38, %s8509_s11  ;;  %v763_v38 = vld [vmem:[#allocation2 + $0x142] sm:$0xff] }
  0xa1   : > { %842 = vrot.lane.b32.xlu1 %v757_v45, %s8509_s11 }
  0xa2   : > { %848 = vrot.lane.b32.xlu0 %v760_v34, %s8509_s11  ;;  %v610_v48 = vpop.permute.xlu0 %609  ;;  %v766_v34 = vld [vmem:[#allocation2 + $0x16a] sm:$0xff] }
  0xa3   : > { %705 = vst.msk [vmem:[#allocation3 + $0x8] sm:$0xff] %vm703_vm2, %v610_v48 }
  0xa5   : > { %846 = vrot.lane.b32.xlu1 %v759_v35, %s8509_s11 }
  0xa6   : > { %852 = vrot.lane.b32.xlu0 %v762_v37, %s8509_s11 }
  0xa9   : > { %850 = vrot.lane.b32.xlu1 %v761_v36, %s8509_s11 }
  0xaa   : > { %856 = vrot.lane.b32.xlu0 %v764_v0, %s8509_s11  ;;  %v767_v0 = vld [vmem:[#allocation2 + $0x172] sm:$0xff] }
  0xab   : > { %v612_v45 = vpop.permute.xlu1 %611 }
  0xac   : > { %706 = vst.msk [vmem:[#allocation3 + $0x10] sm:$0xff] %vm703_vm2, %v612_v45  ;;  %v616_v35 = vpop.permute.xlu0 %615 }
  0xad   : > { %854 = vrot.lane.b32.xlu1 %v763_v38, %s8509_s11  ;;  %708 = vst.msk [vmem:[#allocation3 + $0x20] sm:$0xff] %vm703_vm2, %v616_v35 }
  0xae   : > { %860 = vrot.lane.b32.xlu0 %v766_v34, %s8509_s11 }
  0xaf   : > { %v614_v37 = vpop.permute.xlu1 %613 }
  0xb0   : > { %707 = vst.msk [vmem:[#allocation3 + $0x18] sm:$0xff] %vm703_vm2, %v614_v37  ;;  %v620_v36 = vpop.permute.xlu0 %619 }
  0xb1   : > { %858 = vrot.lane.b32.xlu1 %v765_v33, %s8509_s11  ;;  %710 = vst.msk [vmem:[#allocation3 + $0x30] sm:$0xff] %vm703_vm2, %v620_v36 }
  0xb2   : > { %993 = vrot.lane.b32.xlu0 %v6036_v47, %s5691_s12 }
  0xb3   : > { %v618_v48 = vpop.permute.xlu1 %617 }
  0xb4   : > { %709 = vst.msk [vmem:[#allocation3 + $0x28] sm:$0xff] %vm703_vm2, %v618_v48  ;;  %v624_v38 = vpop.permute.xlu0 %623 }
  0xb5   : > { %862 = vrot.lane.b32.xlu1 %v767_v0, %s8509_s11  ;;  %712 = vst.msk [vmem:[#allocation3 + $0x40] sm:$0xff] %vm703_vm2, %v624_v38 }
  0xb6   : > { %997 = vrot.lane.b32.xlu0 %v6045_v50, %s5691_s12 }
  0xb7   : > { %v622_v45 = vpop.permute.xlu1 %621 }
  0xb8   : > { %711 = vst.msk [vmem:[#allocation3 + $0x38] sm:$0xff] %vm703_vm2, %v622_v45  ;;  %v628_v34 = vpop.permute.xlu0 %627 }
  0xb9   : > { %995 = vrot.lane.b32.xlu1 %v6043_v49, %s5691_s12  ;;  %714 = vst.msk [vmem:[#allocation3 + $0x50] sm:$0xff] %vm703_vm2, %v628_v34 }
  0xba   : > { %1001 = vrot.lane.b32.xlu0 %v6061_v54, %s5691_s12 }
  0xbb   : > { %v626_v47 = vpop.permute.xlu1 %625 }
  0xbc   : > { %713 = vst.msk [vmem:[#allocation3 + $0x48] sm:$0xff] %vm703_vm2, %v626_v47  ;;  %v632_v35 = vpop.permute.xlu0 %631 }
  0xbd   : > { %999 = vrot.lane.b32.xlu1 %v6053_v52, %s5691_s12  ;;  %716 = vst.msk [vmem:[#allocation3 + $0x60] sm:$0xff] %vm703_vm2, %v632_v35 }
  0xbe   : > { %1005 = vrot.lane.b32.xlu0 %v6071_v57, %s5691_s12 }
  0xbf   : > { %v630_v33 = vpop.permute.xlu1 %629 }
  0xc0   : > { %715 = vst.msk [vmem:[#allocation3 + $0x58] sm:$0xff] %vm703_vm2, %v630_v33  ;;  %v636_v49 = vpop.permute.xlu0 %635 }
  0xc1   : > { %1003 = vrot.lane.b32.xlu1 %v6063_v55, %s5691_s12  ;;  %718 = vst.msk [vmem:[#allocation3 + $0x70] sm:$0xff] %vm703_vm2, %v636_v49 }
  0xc2   : > { %1009 = vrot.lane.b32.xlu0 %v6075_v59, %s5691_s12 }
  0xc3   : > { %v634_v37 = vpop.permute.xlu1 %633 }
  0xc4   : > { %717 = vst.msk [vmem:[#allocation3 + $0x68] sm:$0xff] %vm703_vm2, %v634_v37  ;;  %v640_v36 = vpop.permute.xlu0 %639 }
  0xc5   : > { %1007 = vrot.lane.b32.xlu1 %v6073_v58, %s5691_s12  ;;  %720 = vst.msk [vmem:[#allocation3 + $0x80] sm:$0xff] %vm703_vm2, %v640_v36 }
  0xc6   : > { %1013 = vrot.lane.b32.xlu0 %v6087_v61, %s5691_s12 }
  0xc7   : > { %v638_v0 = vpop.permute.xlu1 %637 }
  0xc8   : > { %719 = vst.msk [vmem:[#allocation3 + $0x78] sm:$0xff] %vm703_vm2, %v638_v0  ;;  %v644_v48 = vpop.permute.xlu0 %643 }
  0xc9   : > { %1011 = vrot.lane.b32.xlu1 %v6085_v60, %s5691_s12  ;;  %722 = vst.msk [vmem:[#allocation3 + $0x90] sm:$0xff] %vm703_vm2, %v644_v48 }
  0xca   : > { %1017 = vrot.lane.b32.xlu0 %v6099_v1, %s5691_s12 }
  0xcb   : > { %v642_v38 = vpop.permute.xlu1 %641 }
  0xcc   : > { %721 = vst.msk [vmem:[#allocation3 + $0x88] sm:$0xff] %vm703_vm2, %v642_v38  ;;  %v648_v45 = vpop.permute.xlu0 %647 }
  0xcd   : > { %1015 = vrot.lane.b32.xlu1 %v6089_v62, %s5691_s12  ;;  %724 = vst.msk [vmem:[#allocation3 + $0xa0] sm:$0xff] %vm703_vm2, %v648_v45 }
  0xce   : > { %1021 = vrot.lane.b32.xlu0 %v6103_v3, %s5691_s12 }
  0xcf   : > { %v646_v34 = vpop.permute.xlu1 %645 }
  0xd0   : > { %723 = vst.msk [vmem:[#allocation3 + $0x98] sm:$0xff] %vm703_vm2, %v646_v34  ;;  %v652_v47 = vpop.permute.xlu0 %651 }
  0xd1   : > { %1019 = vrot.lane.b32.xlu1 %v6101_v2, %s5691_s12  ;;  %726 = vst.msk [vmem:[#allocation3 + $0xb0] sm:$0xff] %vm703_vm2, %v652_v47 }
  0xd2   : > { %1025 = vrot.lane.b32.xlu0 %v6115_v5, %s5691_s12 }
  0xd3   : > { %v650_v35 = vpop.permute.xlu1 %649 }
  0xd4   : > { %725 = vst.msk [vmem:[#allocation3 + $0xa8] sm:$0xff] %vm703_vm2, %v650_v35  ;;  %v656_v33 = vpop.permute.xlu0 %655  ;;  %v8525_v35 = vld [vmem:[#allocation9_spill] sm:$0xff] }
  0xd5   : > { %1023 = vrot.lane.b32.xlu1 %v6113_v4, %s5691_s12  ;;  %728 = vst.msk [vmem:[#allocation3 + $0xc0] sm:$0xff] %vm703_vm2, %v656_v33 }
  0xd6   : > { %1029 = vrot.lane.b32.xlu0 %v6125_v7, %s5691_s12 }
  0xd7   : > { %v654_v49 = vpop.permute.xlu1 %653 }
  0xd8   : > { %727 = vst.msk [vmem:[#allocation3 + $0xb8] sm:$0xff] %vm703_vm2, %v654_v49  ;;  %v660_v37 = vpop.permute.xlu0 %659  ;;  %v8527_v49 = vld [vmem:[#allocation11_spill] sm:$0xff] }
  0xd9   : > { %1027 = vrot.lane.b32.xlu1 %v6117_v6, %s5691_s12  ;;  %730 = vst.msk [vmem:[#allocation3 + $0xd0] sm:$0xff] %vm703_vm2, %v660_v37  ;;  %v8528_v37 = vld [vmem:[#allocation12_spill] sm:$0xff] }
  0xda   : > { %1033 = vrot.lane.b32.xlu0 %v6129_v9, %s5691_s12 }
  0xdb   : > { %v658_v36 = vpop.permute.xlu1 %657 }
  0xdc   : > { %729 = vst.msk [vmem:[#allocation3 + $0xc8] sm:$0xff] %vm703_vm2, %v658_v36  ;;  %v664_v0 = vpop.permute.xlu0 %663 }
  0xdd   : > { %1031 = vrot.lane.b32.xlu1 %v6127_v8, %s5691_s12  ;;  %732 = vst.msk [vmem:[#allocation3 + $0xe0] sm:$0xff] %vm703_vm2, %v664_v0 }
  0xde   : > { %1037 = vrot.lane.b32.xlu0 %v6145_v12, %s5691_s12 }
  0xdf   : > { %v662_v7 = vpop.permute.xlu1 %661 }
  0xe0   : > { %731 = vst.msk [vmem:[#allocation3 + $0xd8] sm:$0xff] %vm703_vm2, %v662_v7  ;;  %v668_v48 = vpop.permute.xlu0 %667  ;;  %v8529_v7 = vld [vmem:[#allocation13_spill] sm:$0xff] }
  0xe1   : > { %1035 = vrot.lane.b32.xlu1 %v6139_v10, %s5691_s12  ;;  %734 = vst.msk [vmem:[#allocation3 + $0xf0] sm:$0xff] %vm703_vm2, %v668_v48 }
  0xe2   : > { %1041 = vrot.lane.b32.xlu0 %v6161_v16, %s5691_s12 }
  0xe3   : > { %v666_v9 = vpop.permute.xlu1 %665 }
  0xe4   : > { %733 = vst.msk [vmem:[#allocation3 + $0xe8] sm:$0xff] %vm703_vm2, %v666_v9  ;;  %v801_v8 = vpop.permute.xlu0 %800  ;;  %v1153_v9 = vld [vmem:[#allocation2 + $0x189] sm:$0xff] }
  0xe5   : > { %1039 = vrot.lane.b32.xlu1 %v6151_v13, %s5691_s12  ;;  %897 = vst.msk [vmem:[#allocation3] sm:$0xff] %vm896_vm3, %v801_v8  ;;  %v959_v13 = vld [vmem:[#allocation2 + $0x180] sm:$0xff] }
  0xe6   : > { %1045 = vrot.lane.b32.xlu0 %v6177_v20, %s5691_s12 }
  0xe7   : > { %v670_v12 = vpop.permute.xlu1 %669 }
  0xe8   : > { %735 = vst.msk [vmem:[#allocation3 + $0xf8] sm:$0xff] %vm703_vm2, %v670_v12  ;;  %v805_v10 = vpop.permute.xlu0 %804  ;;  %v8530_v12 = vld [vmem:[#allocation14_spill] sm:$0xff]  ;;  %vm3453_vm2 = vcmask 654848  }
  0xe9   : > { %1043 = vrot.lane.b32.xlu1 %v6167_v17, %s5691_s12  ;;  %899 = vst.msk [vmem:[#allocation3 + $0x10] sm:$0xff] %vm896_vm3, %v805_v10 }
  0xea   : > { %1049 = vrot.lane.b32.xlu0 %v6193_v24, %s5691_s12  ;;  %v960_v24 = vld [vmem:[#allocation2 + $0x188] sm:$0xff] }
  0xeb   : > { %v803_v16 = vpop.permute.xlu1 %802 }
  0xec   : > { %898 = vst.msk [vmem:[#allocation3 + $0x8] sm:$0xff] %vm896_vm3, %v803_v16  ;;  %v809_v38 = vpop.permute.xlu0 %808  ;;  %v2120_v16 = vld [vmem:[%s8478_s1] sm:$0xff] }
  0xed   : > { %1047 = vrot.lane.b32.xlu1 %v6183_v21, %s5691_s12  ;;  %901 = vst.msk [vmem:[#allocation3 + $0x20] sm:$0xff] %vm896_vm3, %v809_v38 }
  0xee   : > { %1053 = vrot.lane.b32.xlu0 %v959_v13, %s5691_s12  ;;  %v2121_v13 = vld [vmem:[%s8478_s1 + $0x8] sm:$0xff] }
  0xef   : > { %v807_v20 = vpop.permute.xlu1 %806  ;;  %v5514_v38 = vpack.c.bf16 %v2121_v13, %v2120_v16  ;;  %v1710_v13 = vld [vmem:[#allocation2 + $0x91] sm:$0xff] }
  0xf0   : > { %900 = vst.msk [vmem:[#allocation3 + $0x18] sm:$0xff] %vm896_vm3, %v807_v20  ;;  %v813_v17 = vpop.permute.xlu0 %812 }
  0xf1   : > { %1051 = vrot.lane.b32.xlu1 %v6199_v28, %s5691_s12  ;;  %903 = vst.msk [vmem:[#allocation3 + $0x30] sm:$0xff] %vm896_vm3, %v813_v17  ;;  %v1702_v17 = vld [vmem:[#allocation2 + $0x31] sm:$0xff]  ;;  %5515 = vmatprep.subr.bf16.mxu0 %v5514_v38 }
  0xf2   : > { %1186 = vrot.lane.b32.xlu0 %v5968_v25, %s5692_s18  ;;  %5517 = vmatpush3.bf16.msra.mxu0 %v5514_v38 }
  0xf3   : > { %v811_v45 = vpop.permute.xlu1 %810 }
  0xf4   : > { %902 = vst.msk [vmem:[#allocation3 + $0x28] sm:$0xff] %vm896_vm3, %v811_v45  ;;  %v817_v21 = vpop.permute.xlu0 %816 }
  0xf5   : > { %1055 = vrot.lane.b32.xlu1 %v960_v24, %s5691_s12  ;;  %905 = vst.msk [vmem:[#allocation3 + $0x40] sm:$0xff] %vm896_vm3, %v817_v21  ;;  %v8531_v24 = vld [vmem:[#allocation16_spill] sm:$0xff]  ;;  %v2122_v21 = vld [vmem:[%s8478_s1 + $0x10] sm:$0xff]  ;;  %s5701_s12 = smov 96  }
  0xf6   : > { %1190 = vrot.lane.b32.xlu0 %v5970_v26, %s5692_s18 }
  0xf7   : > { %v815_v34 = vpop.permute.xlu1 %814 }
  0xf8   : > { %904 = vst.msk [vmem:[#allocation3 + $0x38] sm:$0xff] %vm896_vm3, %v815_v34  ;;  %v821_v28 = vpop.permute.xlu0 %820  ;;  %v2123_v34 = vld [vmem:[%s8478_s1 + $0x18] sm:$0xff] }
  0xf9   : > { %1188 = vrot.lane.b32.xlu1 %v5977_v27, %s5692_s18  ;;  %907 = vst.msk [vmem:[#allocation3 + $0x50] sm:$0xff] %vm896_vm3, %v821_v28 }
  0xfa   : > { %1194 = vrot.lane.b32.xlu0 %v5985_v30, %s5692_s18 }
  0xfb   : > { %v819_v25 = vpop.permute.xlu1 %818 }
  0xfc   : > { %906 = vst.msk [vmem:[#allocation3 + $0x48] sm:$0xff] %vm896_vm3, %v819_v25  ;;  %v825_v47 = vpop.permute.xlu0 %824 }
  0xfd   : > { %1192 = vrot.lane.b32.xlu1 %v5989_v31, %s5692_s18  ;;  %909 = vst.msk [vmem:[#allocation3 + $0x60] sm:$0xff] %vm896_vm3, %v825_v47  ;;  %v1703_v47 = vld [vmem:[#allocation2 + $0x39] sm:$0xff] }
  0xfe   : > { %1198 = vrot.lane.b32.xlu0 %v5993_v32, %s5692_s18 }
  0xff   : > { %v823_v26 = vpop.permute.xlu1 %822 }
 0x100   : > { %908 = vst.msk [vmem:[#allocation3 + $0x58] sm:$0xff] %vm896_vm3, %v823_v26  ;;  %v829_v27 = vpop.permute.xlu0 %828 }
 0x101   : > { %1196 = vrot.lane.b32.xlu1 %v6006_v39, %s5692_s18  ;;  %911 = vst.msk [vmem:[#allocation3 + $0x70] sm:$0xff] %vm896_vm3, %v829_v27  ;;  %v8532_v27 = vld [vmem:[#allocation15_spill] sm:$0xff] }
 0x102   : > { %1202 = vrot.lane.b32.xlu0 %v6013_v40, %s5692_s18 }
 0x103   : > { %v827_v30 = vpop.permute.xlu1 %826 }
 0x104   : > { %910 = vst.msk [vmem:[#allocation3 + $0x68] sm:$0xff] %vm896_vm3, %v827_v30  ;;  %v833_v31 = vpop.permute.xlu0 %832  ;;  %v2124_v30 = vld [vmem:[%s8478_s1 + $0x20] sm:$0xf] }
 0x105   : > { %1200 = vrot.lane.b32.xlu1 %v6017_v41, %s5692_s18  ;;  %913 = vst.msk [vmem:[#allocation3 + $0x80] sm:$0xff] %vm896_vm3, %v833_v31 }
 0x106   : > { %1206 = vrot.lane.b32.xlu0 %v6021_v42, %s5692_s18 }
 0x107   : > { %v831_v32 = vpop.permute.xlu1 %830 }
 0x108   : > { %912 = vst.msk [vmem:[#allocation3 + $0x78] sm:$0xff] %vm896_vm3, %v831_v32  ;;  %v837_v39 = vpop.permute.xlu0 %836  ;;  %v8533_v32 = vld [vmem:[#allocation18_spill] sm:$0xff] }
 0x109   : > { %1204 = vrot.lane.b32.xlu1 %v6025_v43, %s5692_s18  ;;  %915 = vst.msk [vmem:[#allocation3 + $0x90] sm:$0xff] %vm896_vm3, %v837_v39 }
 0x10a   : > { %1210 = vrot.lane.b32.xlu0 %v6029_v44, %s5692_s18 }
 0x10b   : > { %v835_v40 = vpop.permute.xlu1 %834 }
 0x10c   : > { %914 = vst.msk [vmem:[#allocation3 + $0x88] sm:$0xff] %vm896_vm3, %v835_v40  ;;  %v841_v41 = vpop.permute.xlu0 %840 }
 0x10d   : > { %1208 = vrot.lane.b32.xlu1 %v6033_v46, %s5692_s18  ;;  %917 = vst.msk [vmem:[#allocation3 + $0xa0] sm:$0xff] %vm896_vm3, %v841_v41  ;;  %v1704_v41 = vld [vmem:[#allocation2 + $0x49] sm:$0xff] }
 0x10e   : > { %1214 = vrot.lane.b32.xlu0 %v6047_v51, %s5692_s18 }
 0x10f   : > { %v839_v42 = vpop.permute.xlu1 %838 }
 0x110   : > { %916 = vst.msk [vmem:[#allocation3 + $0x98] sm:$0xff] %vm896_vm3, %v839_v42  ;;  %v845_v43 = vpop.permute.xlu0 %844 }
 0x111   : > { %1212 = vrot.lane.b32.xlu1 %v6057_v53, %s5692_s18  ;;  %919 = vst.msk [vmem:[#allocation3 + $0xb0] sm:$0xff] %vm896_vm3, %v845_v43 }
 0x112   : > { %1218 = vrot.lane.b32.xlu0 %v6065_v56, %s5692_s18 }
 0x113   : > { %v843_v44 = vpop.permute.xlu1 %842 }
 0x114   : > { %918 = vst.msk [vmem:[#allocation3 + $0xa8] sm:$0xff] %vm896_vm3, %v843_v44  ;;  %v849_v46 = vpop.permute.xlu0 %848 }
 0x115   : > { %1216 = vrot.lane.b32.xlu1 %v6091_v63, %s5692_s18  ;;  %921 = vst.msk [vmem:[#allocation3 + $0xc0] sm:$0xff] %vm896_vm3, %v849_v46 }
 0x116   : > { %1222 = vrot.lane.b32.xlu0 %v6141_v11, %s5692_s18 }
 0x117   : > { %v847_v51 = vpop.permute.xlu1 %846 }
 0x118   : > { %920 = vst.msk [vmem:[#allocation3 + $0xb8] sm:$0xff] %vm896_vm3, %v847_v51  ;;  %v853_v53 = vpop.permute.xlu0 %852  ;;  %v8534_v51 = vld [vmem:[#allocation17_spill] sm:$0xff] }
 0x119   : > { %1220 = vrot.lane.b32.xlu1 %v6153_v14, %s5692_s18  ;;  %923 = vst.msk [vmem:[#allocation3 + $0xd0] sm:$0xff] %vm896_vm3, %v853_v53 }
 0x11a   : > { %1226 = vrot.lane.b32.xlu0 %v6159_v15, %s5692_s18 }
 0x11b   : > { %v851_v56 = vpop.permute.xlu1 %850 }
 0x11c   : > { %922 = vst.msk [vmem:[#allocation3 + $0xc8] sm:$0xff] %vm896_vm3, %v851_v56  ;;  %v857_v63 = vpop.permute.xlu0 %856 }
 0x11d   : > { %1224 = vrot.lane.b32.xlu1 %v6169_v18, %s5692_s18  ;;  %925 = vst.msk [vmem:[#allocation3 + $0xe0] sm:$0xff] %vm896_vm3, %v857_v63  ;;  %v8535_v63 = vld [vmem:[#allocation20_spill] sm:$0xff] }
 0x11e   : > { %1230 = vrot.lane.b32.xlu0 %v6175_v19, %s5692_s18 }
 0x11f   : > { %v855_v11 = vpop.permute.xlu1 %854 }
 0x120   : > { %924 = vst.msk [vmem:[#allocation3 + $0xd8] sm:$0xff] %vm896_vm3, %v855_v11  ;;  %v861_v14 = vpop.permute.xlu0 %860 }
 0x121   : > { %1228 = vrot.lane.b32.xlu1 %v6185_v22, %s5692_s18  ;;  %927 = vst.msk [vmem:[#allocation3 + $0xf0] sm:$0xff] %vm896_vm3, %v861_v14  ;;  %v8526_v22 = vld [vmem:[#allocation10_spill] sm:$0xff] }
 0x122   : > { %1234 = vrot.lane.b32.xlu0 %v6191_v23, %s5692_s18  ;;  %v1706_v14 = vld [vmem:[#allocation2 + $0x61] sm:$0xff] }
 0x123   : > { %v859_v15 = vpop.permute.xlu1 %858 }
 0x124   : > { %926 = vst.msk [vmem:[#allocation3 + $0xe8] sm:$0xff] %vm896_vm3, %v859_v15  ;;  %v994_v18 = vpop.permute.xlu0 %993 }
 0x125   : > { %1232 = vrot.lane.b32.xlu1 %v6201_v29, %s5692_s18  ;;  %1090 = vst.msk [vmem:[#allocation3] sm:$0xff] %vm1089_vm4, %v994_v18  ;;  %v1152_v29 = vld [vmem:[#allocation2 + $0x181] sm:$0xff] }
 0x126   : > { %1238 = vrot.lane.b32.xlu0 %v8525_v35, %s5692_s18 }
 0x127   : > { %v863_v19 = vpop.permute.xlu1 %862 }
 0x128   : > { %928 = vst.msk [vmem:[#allocation3 + $0xf8] sm:$0xff] %vm896_vm3, %v863_v19  ;;  %v998_v33 = vpop.permute.xlu0 %997  ;;  %vm3646_vm3 = vcmask 786048  }
 0x129   : > { %1236 = vrot.lane.b32.xlu1 %v8526_v22, %s5692_s18  ;;  %1092 = vst.msk [vmem:[#allocation3 + $0x10] sm:$0xff] %vm1089_vm4, %v998_v33  ;;  %v8536_v22 = vld [vmem:[#allocation19_spill] sm:$0xff] }
 0x12a   : > { %1242 = vrot.lane.b32.xlu0 %v8527_v49, %s5692_s18  ;;  %v8537_v49 = vld [vmem:[#allocation21_spill] sm:$0xff] }
 0x12b   : > { %v996_v23 = vpop.permute.xlu1 %995 }
 0x12c   : > { %1091 = vst.msk [vmem:[#allocation3 + $0x8] sm:$0xff] %vm1089_vm4, %v996_v23  ;;  %v1002_v36 = vpop.permute.xlu0 %1001 }
 0x12d   : > { %1240 = vrot.lane.b32.xlu1 %v8528_v37, %s5692_s18  ;;  %1094 = vst.msk [vmem:[#allocation3 + $0x20] sm:$0xff] %vm1089_vm4, %v1002_v36  ;;  %v1708_v37 = vld [vmem:[#allocation2 + $0x79] sm:$0xff] }
 0x12e   : > { %1246 = vrot.lane.b32.xlu0 %v1152_v29, %s5692_s18 }
 0x12f   : > { %v1000_v0 = vpop.permute.xlu1 %999 }
 0x130   : > { %1093 = vst.msk [vmem:[#allocation3 + $0x18] sm:$0xff] %vm1089_vm4, %v1000_v0  ;;  %v1006_v48 = vpop.permute.xlu0 %1005 }
 0x131   : > { %1244 = vrot.lane.b32.xlu1 %v8529_v7, %s5692_s18  ;;  %1096 = vst.msk [vmem:[#allocation3 + $0x30] sm:$0xff] %vm1089_vm4, %v1006_v48  ;;  %v1901_v7 = vld [vmem:[#allocation2 + $0x7a] sm:$0xff] }
 0x132   : > { %1379 = vrot.lane.b32.xlu0 %v8530_v12, %s5693_s20  ;;  %v1902_v12 = vld [vmem:[#allocation2 + $0x82] sm:$0xff] }
 0x133   : > { %v1004_v8 = vpop.permute.xlu1 %1003 }
 0x134   : > { %1095 = vst.msk [vmem:[#allocation3 + $0x28] sm:$0xff] %vm1089_vm4, %v1004_v8  ;;  %v1010_v10 = vpop.permute.xlu0 %1009 }
 0x135   : > { %1248 = vrot.lane.b32.xlu1 %v1153_v9, %s5692_s18  ;;  %1098 = vst.msk [vmem:[#allocation3 + $0x40] sm:$0xff] %vm1089_vm4, %v1010_v10 }
 0x136   : > { %1573 = vrot.lane.b32.xlu0 %v6045_v50, %s5694_s28  ;;  %v5518_v50 = vpack.c.bf16 %v2123_v34, %v2122_v21  ;;  %v1904_v34 = vld [vmem:[#allocation2 + $0x9a] sm:$0xff] }
 0x137   : > { %v1008_v20 = vpop.permute.xlu1 %1007 }
 0x138   : > { %1097 = vst.msk [vmem:[#allocation3 + $0x38] sm:$0xff] %vm1089_vm4, %v1008_v20  ;;  %v1014_v45 = vpop.permute.xlu0 %1013  ;;  %5519 = vmatprep.subr.bf16.mxu0 %v5518_v50 }
 0x139   : > { %1381 = vrot.lane.b32.xlu1 %v8531_v24, %s5693_s20  ;;  %1100 = vst.msk [vmem:[#allocation3 + $0x50] sm:$0xff] %vm1089_vm4, %v1014_v45  ;;  %5521 = vmatpush3.bf16.msra.mxu0 %v5518_v50 }
 0x13a   : > { %1766 = vrot.lane.b32.xlu0 %v1702_v17, %s5695_s25  ;;  %5414 = vmatprep.subr.msk.mxu0 %vm2222_vm5, %v2124_v30  ;;  %v1903_v17 = vld [vmem:[#allocation2 + $0x92] sm:$0xff] }
 0x13b   : > { %v1012_v28 = vpop.permute.xlu1 %1011 }
 0x13c   : > { %1099 = vst.msk [vmem:[#allocation3 + $0x48] sm:$0xff] %vm1089_vm4, %v1012_v28  ;;  %v1018_v25 = vpop.permute.xlu0 %1017 }
 0x13d   : > { %1575 = vrot.lane.b32.xlu1 %v6053_v52, %s5694_s28  ;;  %1102 = vst.msk [vmem:[#allocation3 + $0x60] sm:$0xff] %vm1089_vm4, %v1018_v25  ;;  %5415 = vmatpush3.msk.msra.mxu0 %vm2222_vm5, %v2124_v30  ;;  %v1712_v25 = vld [vmem:[#allocation2 + $0xa9] sm:$0xff] }
 0x13e   : > { %1959 = vrot.lane.b32.xlu0 %v8532_v27, %s5696_s26 }
 0x13f   : > { %v1016_v26 = vpop.permute.xlu1 %1015 }
 0x140   : > { %1101 = vst.msk [vmem:[#allocation3 + $0x58] sm:$0xff] %vm1089_vm4, %v1016_v26  ;;  %v1022_v52 = vpop.permute.xlu0 %1021 }
 0x141   : > { %1768 = vrot.lane.b32.xlu1 %v1703_v47, %s5695_s25  ;;  %1104 = vst.msk [vmem:[#allocation3 + $0x70] sm:$0xff] %vm1089_vm4, %v1022_v52 }
 0x142   : > { %1961 = vrot.lane.b32.xlu0 %v8533_v32, %s5696_s26 }
 0x143   : > { %v1020_v31 = vpop.permute.xlu1 %1019 }
 0x144   : > { %1103 = vst.msk [vmem:[#allocation3 + $0x68] sm:$0xff] %vm1089_vm4, %v1020_v31  ;;  %v1026_v39 = vpop.permute.xlu0 %1025 }
 0x145   : > { %1383 = vrot.lane.b32.xlu1 %v8532_v27, %s5693_s20  ;;  %1106 = vst.msk [vmem:[#allocation3 + $0x80] sm:$0xff] %vm1089_vm4, %v1026_v39  ;;  %v1905_v27 = vld [vmem:[#allocation2 + $0xaa] sm:$0xff] }
 0x146   : > { %1577 = vrot.lane.b32.xlu0 %v6061_v54, %s5694_s28  ;;  %v1705_v54 = vld [vmem:[#allocation2 + $0x51] sm:$0xff] }
 0x147   : > { %v1024_v40 = vpop.permute.xlu1 %1023 }
 0x148   : > { %1105 = vst.msk [vmem:[#allocation3 + $0x78] sm:$0xff] %vm1089_vm4, %v1024_v40  ;;  %v1030_v42 = vpop.permute.xlu0 %1029 }
 0x149   : > { %1385 = vrot.lane.b32.xlu1 %v8533_v32, %s5693_s20  ;;  %1108 = vst.msk [vmem:[#allocation3 + $0x90] sm:$0xff] %vm1089_vm4, %v1030_v42  ;;  %v1906_v32 = vld [vmem:[#allocation2 + $0xb2] sm:$0xff] }
 0x14a   : > { %1770 = vrot.lane.b32.xlu0 %v1704_v41, %s5695_s25  ;;  %v1714_v41 = vld [vmem:[#allocation2 + $0xc1] sm:$0xff] }
 0x14b   : > { %v1028_v43 = vpop.permute.xlu1 %1027 }
 0x14c   : > { %1107 = vst.msk [vmem:[#allocation3 + $0x88] sm:$0xff] %vm1089_vm4, %v1028_v43  ;;  %v1034_v44 = vpop.permute.xlu0 %1033 }
 0x14d   : > { %1579 = vrot.lane.b32.xlu1 %v6063_v55, %s5694_s28  ;;  %1110 = vst.msk [vmem:[#allocation3 + $0xa0] sm:$0xff] %vm1089_vm4, %v1034_v44  ;;  %v1907_v44 = vld [vmem:[#allocation2 + $0xc2] sm:$0xff] }
 0x14e   : > { %1963 = vrot.lane.b32.xlu0 %v8534_v51, %s5696_s26 }
 0x14f   : > { %v1032_v46 = vpop.permute.xlu1 %1031 }
 0x150   : > { %1109 = vst.msk [vmem:[#allocation3 + $0x98] sm:$0xff] %vm1089_vm4, %v1032_v46  ;;  %v1038_v53 = vpop.permute.xlu0 %1037 }
 0x151   : > { %1772 = vrot.lane.b32.xlu1 %v1705_v54, %s5695_s25  ;;  %1112 = vst.msk [vmem:[#allocation3 + $0xb0] sm:$0xff] %vm1089_vm4, %v1038_v53  ;;  %v1908_v53 = vld [vmem:[#allocation2 + $0xca] sm:$0xff] }
 0x152   : > { %1965 = vrot.lane.b32.xlu0 %v8535_v63, %s5696_s26 }
 0x153   : > { %v1036_v56 = vpop.permute.xlu1 %1035 }
 0x154   : > { %1111 = vst.msk [vmem:[#allocation3 + $0xa8] sm:$0xff] %vm1089_vm4, %v1036_v56  ;;  %v1042_v55 = vpop.permute.xlu0 %1041 }
 0x155   : > { %1387 = vrot.lane.b32.xlu1 %v8534_v51, %s5693_s20  ;;  %1114 = vst.msk [vmem:[#allocation3 + $0xc0] sm:$0xff] %vm1089_vm4, %v1042_v55  ;;  %v1716_v55 = vld [vmem:[#allocation2 + $0xd9] sm:$0xff] }
 0x156   : > { %1581 = vrot.lane.b32.xlu0 %v6071_v57, %s5694_s28  ;;  %v1707_v57 = vld [vmem:[#allocation2 + $0x69] sm:$0xff] }
 0x157   : > { %v1040_v11 = vpop.permute.xlu1 %1039 }
 0x158   : > { %1113 = vst.msk [vmem:[#allocation3 + $0xb8] sm:$0xff] %vm1089_vm4, %v1040_v11  ;;  %v1046_v15 = vpop.permute.xlu0 %1045 }
 0x159   : > { %1389 = vrot.lane.b32.xlu1 %v8535_v63, %s5693_s20  ;;  %1116 = vst.msk [vmem:[#allocation3 + $0xd0] sm:$0xff] %vm1089_vm4, %v1046_v15  ;;  %v1909_v15 = vld [vmem:[#allocation2 + $0xda] sm:$0xff] }
 0x15a   : > { %1774 = vrot.lane.b32.xlu0 %v1706_v14, %s5695_s25 }
 0x15b   : > { %v1044_v18 = vpop.permute.xlu1 %1043 }
 0x15c   : > { %1115 = vst.msk [vmem:[#allocation3 + $0xc8] sm:$0xff] %vm1089_vm4, %v1044_v18  ;;  %v1050_v19 = vpop.permute.xlu0 %1049  ;;  %v1717_v18 = vld [vmem:[#allocation2 + $0xe1] sm:$0xff] }
 0x15d   : > { %1583 = vrot.lane.b32.xlu1 %v6073_v58, %s5694_s28  ;;  %1118 = vst.msk [vmem:[#allocation3 + $0xe0] sm:$0xff] %vm1089_vm4, %v1050_v19 }
 0x15e   : > { %1967 = vrot.lane.b32.xlu0 %v8536_v22, %s5696_s26 }
 0x15f   : > { %v1048_v35 = vpop.permute.xlu1 %1047 }
 0x160   : > { %1117 = vst.msk [vmem:[#allocation3 + $0xd8] sm:$0xff] %vm1089_vm4, %v1048_v35  ;;  %v1054_v33 = vpop.permute.xlu0 %1053  ;;  %v1910_v35 = vld [vmem:[#allocation2 + $0xe2] sm:$0xff] }
 0x161   : > { %1776 = vrot.lane.b32.xlu1 %v1707_v57, %s5695_s25  ;;  %1120 = vst.msk [vmem:[#allocation3 + $0xf0] sm:$0xff] %vm1089_vm4, %v1054_v33 }
 0x162   : > { %1969 = vrot.lane.b32.xlu0 %v8537_v49, %s5696_s26 }
 0x163   : > { %v1052_v23 = vpop.permute.xlu1 %1051 }
 0x164   : > { %1119 = vst.msk [vmem:[#allocation3 + $0xe8] sm:$0xff] %vm1089_vm4, %v1052_v23  ;;  %v1187_v58 = vpop.permute.xlu0 %1186 }
 0x165   : > { %1391 = vrot.lane.b32.xlu1 %v8536_v22, %s5693_s20  ;;  %1283 = vst.msk [vmem:[#allocation3] sm:$0xff] %vm1282_vm6, %v1187_v58 }
 0x166   : > { %1585 = vrot.lane.b32.xlu0 %v6075_v59, %s5694_s28  ;;  %v1709_v59 = vld [vmem:[#allocation2 + $0x81] sm:$0xff] }
 0x167   : > { %v1056_v29 = vpop.permute.xlu1 %1055 }
 0x168   : > { %1121 = vst.msk [vmem:[#allocation3 + $0xf8] sm:$0xff] %vm1089_vm4, %v1056_v29  ;;  %v1191_v36 = vpop.permute.xlu0 %1190  ;;  %vm3840_vm4 = vcmask 917248  }
 0x169   : > { %1393 = vrot.lane.b32.xlu1 %v8537_v49, %s5693_s20  ;;  %1285 = vst.msk [vmem:[#allocation3 + $0x10] sm:$0xff] %vm1282_vm6, %v1191_v36  ;;  %v1718_v49 = vld [vmem:[#allocation2 + $0xf1] sm:$0xff] }
 0x16a   : > { %1778 = vrot.lane.b32.xlu0 %v1708_v37, %s5695_s25  ;;  %v1526_v37 = vld [vmem:[#allocation2 + $0xf8] sm:$0xff] }
 0x16b   : > { %v1189_v0 = vpop.permute.xlu1 %1188 }
 0x16c   : > { %1284 = vst.msk [vmem:[#allocation3 + $0x8] sm:$0xff] %vm1282_vm6, %v1189_v0  ;;  %v1195_v48 = vpop.permute.xlu0 %1194  ;;  %v1911_v0 = vld [vmem:[#allocation2 + $0xf2] sm:$0xff] }
 0x16d   : > { %1587 = vrot.lane.b32.xlu1 %v6085_v60, %s5694_s28  ;;  %1287 = vst.msk [vmem:[#allocation3 + $0x20] sm:$0xff] %vm1282_vm6, %v1195_v48 }
 0x16e   : > { %1971 = vrot.lane.b32.xlu0 %v1901_v7, %s5696_s26 }
 0x16f   : > { %v1193_v9 = vpop.permute.xlu1 %1192 }
 0x170   : > { %1286 = vst.msk [vmem:[#allocation3 + $0x18] sm:$0xff] %vm1282_vm6, %v1193_v9  ;;  %v1199_v8 = vpop.permute.xlu0 %1198 }
 0x171   : > { %1780 = vrot.lane.b32.xlu1 %v1709_v59, %s5695_s25  ;;  %1289 = vst.msk [vmem:[#allocation3 + $0x30] sm:$0xff] %vm1282_vm6, %v1199_v8  ;;  %v1719_v59 = vld [vmem:[#allocation2 + $0xf9] sm:$0xff] }
 0x172   : > { %1395 = vrot.lane.b32.xlu0 %v1901_v7, %s5693_s20 }
 0x173   : > { %v1197_v10 = vpop.permute.xlu1 %1196 }
 0x174   : > { %1288 = vst.msk [vmem:[#allocation3 + $0x28] sm:$0xff] %vm1282_vm6, %v1197_v10  ;;  %v1203_v60 = vpop.permute.xlu0 %1202 }
 0x175   : > { %1973 = vrot.lane.b32.xlu1 %v1902_v12, %s5696_s26  ;;  %1291 = vst.msk [vmem:[#allocation3 + $0x40] sm:$0xff] %vm1282_vm6, %v1203_v60  ;;  %v1527_v60 = vld [vmem:[#allocation2 + $0x108] sm:$0xff] }
 0x176   : > { %1589 = vrot.lane.b32.xlu0 %v6087_v61, %s5694_s28  ;;  %v1711_v61 = vld [vmem:[#allocation2 + $0x99] sm:$0xff] }
 0x177   : > { %v1201_v16 = vpop.permute.xlu1 %1200 }
 0x178   : > { %1290 = vst.msk [vmem:[#allocation3 + $0x38] sm:$0xff] %vm1282_vm6, %v1201_v16  ;;  %v1207_v38 = vpop.permute.xlu0 %1206 }
 0x179   : > { %1397 = vrot.lane.b32.xlu1 %v1902_v12, %s5693_s20  ;;  %1293 = vst.msk [vmem:[#allocation3 + $0x50] sm:$0xff] %vm1282_vm6, %v1207_v38  ;;  %v1912_v12 = vld [vmem:[#allocation2 + $0xfa] sm:$0xff]  ;;  %v1720_v38 = vld [vmem:[#allocation2 + $0x109] sm:$0xff] }
 0x17a   : > { %1782 = vrot.lane.b32.xlu0 %v1710_v13, %s5695_s25 }
 0x17b   : > { %v1205_v20 = vpop.permute.xlu1 %1204 }
 0x17c   : > { %1292 = vst.msk [vmem:[#allocation3 + $0x48] sm:$0xff] %vm1282_vm6, %v1205_v20  ;;  %v1211_v24 = vpop.permute.xlu0 %1210 }
 0x17d   : > { %1591 = vrot.lane.b32.xlu1 %v6089_v62, %s5694_s28  ;;  %1295 = vst.msk [vmem:[#allocation3 + $0x60] sm:$0xff] %vm1282_vm6, %v1211_v24  ;;  %v1528_v24 = vld [vmem:[#allocation2 + $0x110] sm:$0xff] }
 0x17e   : > { %1975 = vrot.lane.b32.xlu0 %v1903_v17, %s5696_s26 }
 0x17f   : > { %v1209_v45 = vpop.permute.xlu1 %1208 }
 0x180   : > { %1294 = vst.msk [vmem:[#allocation3 + $0x58] sm:$0xff] %vm1282_vm6, %v1209_v45  ;;  %v1215_v21 = vpop.permute.xlu0 %1214  ;;  %v1913_v45 = vld [vmem:[#allocation2 + $0x10a] sm:$0xff] }
 0x181   : > { %1784 = vrot.lane.b32.xlu1 %v1711_v61, %s5695_s25  ;;  %1297 = vst.msk [vmem:[#allocation3 + $0x70] sm:$0xff] %vm1282_vm6, %v1215_v21 }
 0x182   : > { %1399 = vrot.lane.b32.xlu0 %v1903_v17, %s5693_s20 }
 0x183   : > { %v1213_v50 = vpop.permute.xlu1 %1212 }
 0x184   : > { %1296 = vst.msk [vmem:[#allocation3 + $0x68] sm:$0xff] %vm1282_vm6, %v1213_v50  ;;  %v1219_v62 = vpop.permute.xlu0 %1218  ;;  %v1721_v50 = vld [vmem:[#allocation2 + $0x111] sm:$0xff] }
 0x185   : > { %1977 = vrot.lane.b32.xlu1 %v1904_v34, %s5696_s26  ;;  %1299 = vst.msk [vmem:[#allocation3 + $0x80] sm:$0xff] %vm1282_vm6, %v1219_v62 }
 0x186   : > { %1593 = vrot.lane.b32.xlu0 %v6099_v1, %s5694_s28  ;;  %v1713_v1 = vld [vmem:[#allocation2 + $0xb1] sm:$0xff] }
 0x187   : > { %v1217_v28 = vpop.permute.xlu1 %1216 }
 0x188   : > { %1298 = vst.msk [vmem:[#allocation3 + $0x78] sm:$0xff] %vm1282_vm6, %v1217_v28  ;;  %v1223_v47 = vpop.permute.xlu0 %1222 }
 0x189   : > { %1401 = vrot.lane.b32.xlu1 %v1904_v34, %s5693_s20  ;;  %1301 = vst.msk [vmem:[#allocation3 + $0x90] sm:$0xff] %vm1282_vm6, %v1223_v47 }
 0x18a   : > { %1786 = vrot.lane.b32.xlu0 %v1712_v25, %s5695_s25  ;;  %v1914_v25 = vld [vmem:[#allocation2 + $0x112] sm:$0xff] }
 0x18b   : > { %v1221_v26 = vpop.permute.xlu1 %1220 }
 0x18c   : > { %1300 = vst.msk [vmem:[#allocation3 + $0x88] sm:$0xff] %vm1282_vm6, %v1221_v26  ;;  %v1227_v30 = vpop.permute.xlu0 %1226  ;;  %v1529_v26 = vld [vmem:[#allocation2 + $0x120] sm:$0xff] }
 0x18d   : > { %1595 = vrot.lane.b32.xlu1 %v6101_v2, %s5694_s28  ;;  %1303 = vst.msk [vmem:[#allocation3 + $0xa0] sm:$0xff] %vm1282_vm6, %v1227_v30 }
 0x18e   : > { %1979 = vrot.lane.b32.xlu0 %v1905_v27, %s5696_s26 }
 0x18f   : > { %v1225_v52 = vpop.permute.xlu1 %1224 }
 0x190   : > { %1302 = vst.msk [vmem:[#allocation3 + $0x98] sm:$0xff] %vm1282_vm6, %v1225_v52  ;;  %v1231_v31 = vpop.permute.xlu0 %1230 }
 0x191   : > { %1788 = vrot.lane.b32.xlu1 %v1713_v1, %s5695_s25  ;;  %1305 = vst.msk [vmem:[#allocation3 + $0xb0] sm:$0xff] %vm1282_vm6, %v1231_v31  ;;  %v1722_v1 = vld [vmem:[#allocation2 + $0x121] sm:$0xff] }
 0x192   : > { %1403 = vrot.lane.b32.xlu0 %v1905_v27, %s5693_s20 }
 0x193   : > { %v1229_v39 = vpop.permute.xlu1 %1228 }
 0x194   : > { %1304 = vst.msk [vmem:[#allocation3 + $0xa8] sm:$0xff] %vm1282_vm6, %v1229_v39  ;;  %v1235_v2 = vpop.permute.xlu0 %1234 }
 0x195   : > { %1981 = vrot.lane.b32.xlu1 %v1906_v32, %s5696_s26  ;;  %1307 = vst.msk [vmem:[#allocation3 + $0xc0] sm:$0xff] %vm1282_vm6, %v1235_v2  ;;  %v1915_v2 = vld [vmem:[#allocation2 + $0x122] sm:$0xff] }
 0x196   : > { %1597 = vrot.lane.b32.xlu0 %v6103_v3, %s5694_s28  ;;  %v1715_v3 = vld [vmem:[#allocation2 + $0xc9] sm:$0xff] }
 0x197   : > { %v1233_v40 = vpop.permute.xlu1 %1232 }
 0x198   : > { %1306 = vst.msk [vmem:[#allocation3 + $0xb8] sm:$0xff] %vm1282_vm6, %v1233_v40  ;;  %v1239_v42 = vpop.permute.xlu0 %1238 }
 0x199   : > { %1405 = vrot.lane.b32.xlu1 %v1906_v32, %s5693_s20  ;;  %1309 = vst.msk [vmem:[#allocation3 + $0xd0] sm:$0xff] %vm1282_vm6, %v1239_v42  ;;  %v1530_v32 = vld [vmem:[#allocation2 + $0x128] sm:$0xff] }
 0x19a   : > { %1790 = vrot.lane.b32.xlu0 %v1714_v41, %s5695_s25  ;;  %v1723_v42 = vld [vmem:[#allocation2 + $0x129] sm:$0xff] }
 0x19b   : > { %v1237_v43 = vpop.permute.xlu1 %1236 }
 0x19c   : > { %1308 = vst.msk [vmem:[#allocation3 + $0xc8] sm:$0xff] %vm1282_vm6, %v1237_v43  ;;  %v1243_v54 = vpop.permute.xlu0 %1242 }
 0x19d   : > { %1599 = vrot.lane.b32.xlu1 %v6113_v4, %s5694_s28  ;;  %1311 = vst.msk [vmem:[#allocation3 + $0xe0] sm:$0xff] %vm1282_vm6, %v1243_v54  ;;  %v1916_v54 = vld [vmem:[#allocation2 + $0x12a] sm:$0xff] }
 0x19e   : > { %1983 = vrot.lane.b32.xlu0 %v1907_v44, %s5696_s26 }
 0x19f   : > { %v1241_v46 = vpop.permute.xlu1 %1240 }
 0x1a0   : > { %1310 = vst.msk [vmem:[#allocation3 + $0xd8] sm:$0xff] %vm1282_vm6, %v1241_v46  ;;  %v1247_v51 = vpop.permute.xlu0 %1246  ;;  %v1531_v46 = vld [vmem:[#allocation2 + $0x138] sm:$0xff] }
 0x1a1   : > { %1792 = vrot.lane.b32.xlu1 %v1715_v3, %s5695_s25  ;;  %1313 = vst.msk [vmem:[#allocation3 + $0xf0] sm:$0xff] %vm1282_vm6, %v1247_v51 }
 0x1a2   : > { %1407 = vrot.lane.b32.xlu0 %v1907_v44, %s5693_s20 }
 0x1a3   : > { %v1245_v56 = vpop.permute.xlu1 %1244 }
 0x1a4   : > { %1312 = vst.msk [vmem:[#allocation3 + $0xe8] sm:$0xff] %vm1282_vm6, %v1245_v56  ;;  %v1380_v4 = vpop.permute.xlu0 %1379  ;;  %v1724_v56 = vld [vmem:[#allocation2 + $0x139] sm:$0xff] }
 0x1a5   : > { %1985 = vrot.lane.b32.xlu1 %v1908_v53, %s5696_s26  ;;  %1476 = vst.msk [vmem:[#allocation3] sm:$0xff] %vm1475_vm7, %v1380_v4 }
 0x1a6   : > { %1601 = vrot.lane.b32.xlu0 %v6115_v5, %s5694_s28 }
 0x1a7   : > { %v1249_v63 = vpop.permute.xlu1 %1248 }
 0x1a8   : > { %1314 = vst.msk [vmem:[#allocation3 + $0xf8] sm:$0xff] %vm1282_vm6, %v1249_v63  ;;  %v1574_v11 = vpop.permute.xlu0 %1573  ;;  %vm4033_vm6 = vcmask 1048448  }
 0x1a9   : > { %1409 = vrot.lane.b32.xlu1 %v1908_v53, %s5693_s20  ;;  %1670 = vst.msk [vmem:[#allocation3] sm:$0xff] %vm1669_vm8, %v1574_v11 }
 0x1aa   : > { %1794 = vrot.lane.b32.xlu0 %v1716_v55, %s5695_s25  ;;  %v1532_v55 = vld [vmem:[#allocation2 + $0x140] sm:$0xff] }
 0x1ab   : > { %v1382_v14 = vpop.permute.xlu1 %1381 }
 0x1ac   : > { %1477 = vst.msk [vmem:[#allocation3 + $0x8] sm:$0xff] %vm1475_vm7, %v1382_v14  ;;  %v1767_v5 = vpop.permute.xlu0 %1766  ;;  %v1917_v14 = vld [vmem:[#allocation2 + $0x13a] sm:$0xff] }
 0x1ad   : > { %1603 = vrot.lane.b32.xlu1 %v6117_v6, %s5694_s28  ;;  %1863 = vst.msk [vmem:[#allocation3] sm:$0xff] %vm1862_vm9, %v1767_v5  ;;  %v1525_v6 = vld [vmem:[#allocation2 + $0xf0] sm:$0xff]  ;;  %v1725_v5 = vld [vmem:[#allocation2 + $0x141] sm:$0xff] }
 0x1ae   : > { %1987 = vrot.lane.b32.xlu0 %v1909_v15, %s5696_s26 }
 0x1af   : > { %v1576_v19 = vpop.permute.xlu1 %1575 }
 0x1b0   : > { %1671 = vst.msk [vmem:[#allocation3 + $0x8] sm:$0xff] %vm1669_vm8, %v1576_v19  ;;  %v1960_v57 = vpop.permute.xlu0 %1959 }
 0x1b1   : > { %1796 = vrot.lane.b32.xlu1 %v1717_v18, %s5695_s25  ;;  %2056 = vst.msk [vmem:[#allocation3] sm:$0xff] %vm2055_vm10, %v1960_v57 }
 0x1b2   : > { %1411 = vrot.lane.b32.xlu0 %v1909_v15, %s5693_s20 }
 0x1b3   : > { %v1769_v22 = vpop.permute.xlu1 %1768 }
 0x1b4   : > { %1864 = vst.msk [vmem:[#allocation3 + $0x8] sm:$0xff] %vm1862_vm9, %v1769_v22  ;;  %v1962_v33 = vpop.permute.xlu0 %1961 }
 0x1b5   : > { %1989 = vrot.lane.b32.xlu1 %v1910_v35, %s5696_s26  ;;  %2057 = vst.msk [vmem:[#allocation3 + $0x8] sm:$0xff] %vm2055_vm10, %v1962_v33 }
 0x1b6   : > { %1605 = vrot.lane.b32.xlu0 %v1525_v6, %s5694_s28  ;;  %v1533_v6 = vld [vmem:[#allocation2 + $0x150] sm:$0xff] }
 0x1b7   : > { %v1384_v23 = vpop.permute.xlu1 %1383 }
 0x1b8   : > { %1478 = vst.msk [vmem:[#allocation3 + $0x10] sm:$0xff] %vm1475_vm7, %v1384_v23  ;;  %v1578_v58 = vpop.permute.xlu0 %1577  ;;  %v2088_v29 = vld [vmem:[#allocation3] sm:$0xff] }
 0x1b9   : > { %1413 = vrot.lane.b32.xlu1 %v1910_v35, %s5693_s20  ;;  %1672 = vst.msk [vmem:[#allocation3 + $0x10] sm:$0xff] %vm1669_vm8, %v1578_v58  ;;  %5416 = vmatprep.mubr.msk.f32.mxu0 %vm2125_vm11, %v2088_v29  ;;  %v1918_v35 = vld [vmem:[#allocation2 + $0x142] sm:$0xff] }
 0x1ba   : > { %1798 = vrot.lane.b32.xlu0 %v1718_v49, %s5695_s25  ;;  %v1726_v49 = vld [vmem:[#allocation2 + $0x151] sm:$0xff] }
 0x1bb   : > { %v1386_v36 = vpop.permute.xlu1 %1385 }
 0x1bc   : > { %1479 = vst.msk [vmem:[#allocation3 + $0x18] sm:$0xff] %vm1475_vm7, %v1386_v36  ;;  %v1771_v7 = vpop.permute.xlu0 %1770  ;;  %v2089_v48 = vld [vmem:[#allocation3 + $0x8] sm:$0xff] }
 0x1bd   : > { %1607 = vrot.lane.b32.xlu1 %v1526_v37, %s5694_s28  ;;  %1865 = vst.msk [vmem:[#allocation3 + $0x10] sm:$0xff] %vm1862_vm9, %v1771_v7  ;;  %5417 = vmatmul.mubr.msk.f32.vlgmr.msra.gmra.mrb[0].mxu0 %vm2125_vm11, %v2089_v48  ;;  %v1534_v37 = vld [vmem:[#allocation2 + $0x158] sm:$0xff] }
 0x1be   : > { %1991 = vrot.lane.b32.xlu0 %v1911_v0, %s5696_s26  ;;  %v1727_v48 = vld [vmem:[#allocation2 + $0x159] sm:$0xff] }
 0x1bf   : > { %v1580_v9 = vpop.permute.xlu1 %1579 }
 0x1c0   : > { %1673 = vst.msk [vmem:[#allocation3 + $0x18] sm:$0xff] %vm1669_vm8, %v1580_v9  ;;  %v1964_v8 = vpop.permute.xlu0 %1963 }
 0x1c1   : > { %1800 = vrot.lane.b32.xlu1 %v1719_v59, %s5695_s25  ;;  %2058 = vst.msk [vmem:[#allocation3 + $0x10] sm:$0xff] %vm2055_vm10, %v1964_v8 }
 0x1c2   : > { %1415 = vrot.lane.b32.xlu0 %v1911_v0, %s5693_s20  ;;  %v1919_v0 = vld [vmem:[#allocation2 + $0x152] sm:$0xff] }
 0x1c3   : > { %v1773_v10 = vpop.permute.xlu1 %1772 }
 0x1c4   : > { %1866 = vst.msk [vmem:[#allocation3 + $0x18] sm:$0xff] %vm1862_vm9, %v1773_v10  ;;  %v1966_v16 = vpop.permute.xlu0 %1965 }
 0x1c5   : > { %1993 = vrot.lane.b32.xlu1 %v1912_v12, %s5696_s26  ;;  %2059 = vst.msk [vmem:[#allocation3 + $0x18] sm:$0xff] %vm2055_vm10, %v1966_v16 }
 0x1c6   : > { %1609 = vrot.lane.b32.xlu0 %v1527_v60, %s5694_s28  ;;  %v1535_v60 = vld [vmem:[#allocation2 + $0x168] sm:$0xff] }
 0x1c7   : > { %v1388_v13 = vpop.permute.xlu1 %1387 }
 0x1c8   : > { %1480 = vst.msk [vmem:[#allocation3 + $0x20] sm:$0xff] %vm1475_vm7, %v1388_v13  ;;  %v1582_v20 = vpop.permute.xlu0 %1581  ;;  %v2090_v17 = vld [vmem:[#allocation3 + $0x10] sm:$0xff] }
 0x1c9   : > { %1417 = vrot.lane.b32.xlu1 %v1912_v12, %s5693_s20  ;;  %1674 = vst.msk [vmem:[#allocation3 + $0x20] sm:$0xff] %vm1669_vm8, %v1582_v20  ;;  %5419 = vmatprep.mubr.msk.f32.mxu0 %vm2125_vm11, %v2090_v17  ;;  %v1920_v12 = vld [vmem:[#allocation2 + $0x15a] sm:$0xff] }
 0x1ca   : > { %1802 = vrot.lane.b32.xlu0 %v1720_v38, %s5695_s25  ;;  %v1728_v38 = vld [vmem:[#allocation2 + $0x169] sm:$0xff] }
 0x1cb   : > { %v1390_v61 = vpop.permute.xlu1 %1389 }
 0x1cc   : > { %1481 = vst.msk [vmem:[#allocation3 + $0x28] sm:$0xff] %vm1475_vm7, %v1390_v61  ;;  %v1775_v21 = vpop.permute.xlu0 %1774  ;;  %v2091_v34 = vld [vmem:[#allocation3 + $0x18] sm:$0xff] }
 0x1cd   : > { %1611 = vrot.lane.b32.xlu1 %v1528_v24, %s5694_s28  ;;  %1867 = vst.msk [vmem:[#allocation3 + $0x20] sm:$0xff] %vm1862_vm9, %v1775_v21  ;;  %5420 = vmatmul.mubr.msk.f32.gmra.mrb[2].mxu0 %vm2125_vm11, %v2091_v34  ;;  %v1536_v24 = vld [vmem:[#allocation2 + $0x170] sm:$0xff] }
 0x1ce   : > { %1995 = vrot.lane.b32.xlu0 %v1913_v45, %s5696_s26  ;;  %v1729_v34 = vld [vmem:[#allocation2 + $0x171] sm:$0xff] }
 0x1cf   : > { %v1584_v62 = vpop.permute.xlu1 %1583 }
 0x1d0   : > { %1675 = vst.msk [vmem:[#allocation3 + $0x28] sm:$0xff] %vm1669_vm8, %v1584_v62  ;;  %v1968_v28 = vpop.permute.xlu0 %1967 }
 0x1d1   : > { %1804 = vrot.lane.b32.xlu1 %v1721_v50, %s5695_s25  ;;  %2060 = vst.msk [vmem:[#allocation3 + $0x20] sm:$0xff] %vm2055_vm10, %v1968_v28 }
 0x1d2   : > { %1419 = vrot.lane.b32.xlu0 %v1913_v45, %s5693_s20  ;;  %v1921_v45 = vld [vmem:[#allocation2 + $0x16a] sm:$0xff] }
 0x1d3   : > { %v1777_v47 = vpop.permute.xlu1 %1776 }
 0x1d4   : > { %1868 = vst.msk [vmem:[#allocation3 + $0x28] sm:$0xff] %vm1862_vm9, %v1777_v47  ;;  %v1970_v27 = vpop.permute.xlu0 %1969 }
 0x1d5   : > { %1997 = vrot.lane.b32.xlu1 %v1914_v25, %s5696_s26  ;;  %2061 = vst.msk [vmem:[#allocation3 + $0x28] sm:$0xff] %vm2055_vm10, %v1970_v27 }
 0x1d6   : > { %1613 = vrot.lane.b32.xlu0 %v1529_v26, %s5694_s28  ;;  %v1537_v26 = vld [vmem:[#allocation2 + $0x180] sm:$0xff] }
 0x1d7   : > { %v1392_v30 = vpop.permute.xlu1 %1391 }
 0x1d8   : > { %1482 = vst.msk [vmem:[#allocation3 + $0x30] sm:$0xff] %vm1475_vm7, %v1392_v30  ;;  %v1586_v52 = vpop.permute.xlu0 %1585  ;;  %v2092_v31 = vld [vmem:[#allocation3 + $0x20] sm:$0xff] }
 0x1d9   : > { %1421 = vrot.lane.b32.xlu1 %v1914_v25, %s5693_s20  ;;  %1676 = vst.msk [vmem:[#allocation3 + $0x30] sm:$0xff] %vm1669_vm8, %v1586_v52  ;;  %5422 = vmatprep.mubr.msk.f32.mxu0 %vm2125_vm11, %v2092_v31  ;;  %v6765_v25 = vld [vmem:[#allocation2 + $0x172] sm:$0xff]  ;;  %v1730_v52 = vld [vmem:[#allocation2 + $0x181] sm:$0xff] }
 0x1da   : > { %1806 = vrot.lane.b32.xlu0 %v1722_v1, %s5695_s25  ;;  %v8538_v1 = vmov 0.0  }
 0x1db   : > { %v1394_v39 = vpop.permute.xlu1 %1393  ;;  %2567 = vst.msk [vmem:[#allocation4 + $0x20] sm:$0xff] %vm2561_vm12, %v8538_v1  ;;  %2562 = vst.msk [vmem:[#allocation4] sm:$0xff] %vm2561_vm12, %v8538_v1 }
 0x1dc   : > { %1483 = vst.msk [vmem:[#allocation3 + $0x38] sm:$0xff] %vm1475_vm7, %v1394_v39  ;;  %v1779_v40 = vpop.permute.xlu0 %1778  ;;  %v2093_v41 = vld [vmem:[#allocation3 + $0x28] sm:$0xff]  ;;  %v1538_v39 = vld [vmem:[#allocation2 + $0x188] sm:$0xff] }
 0x1dd   : > { %1615 = vrot.lane.b32.xlu1 %v1530_v32, %s5694_s28  ;;  %1869 = vst.msk [vmem:[#allocation3 + $0x30] sm:$0xff] %vm1862_vm9, %v1779_v40  ;;  %5423 = vmatmul.mubr.msk.f32.gmra.mrb[4].mxu0 %vm2125_vm11, %v2093_v41  ;;  %v1923_v40 = vld [vmem:[#allocation2 + $0x182] sm:$0xff] }
 0x1de   : > { %1999 = vrot.lane.b32.xlu0 %v1915_v2, %s5696_s26  ;;  %2568 = vst.msk [vmem:[#allocation4 + $0x28] sm:$0x3] %vm2564_vm13, %v8538_v1  ;;  %2565 = vst.msk [vmem:[#allocation4 + $0x10] sm:$0x3] %vm2564_vm13, %v8538_v1 }
 0x1df   : > { %v1588_v43 = vpop.permute.xlu1 %1587  ;;  %2563 = vst.msk [vmem:[#allocation4 + $0x8] sm:$0xff] %vm2561_vm12, %v8538_v1  ;;  %2566 = vst.msk [vmem:[#allocation4 + $0x18] sm:$0xff] %vm2561_vm12, %v8538_v1 }
 0x1e0   : > { %1677 = vst.msk [vmem:[#allocation3 + $0x38] sm:$0xff] %vm1669_vm8, %v1588_v43  ;;  %v1972_v44 = vpop.permute.xlu0 %1971 }
 0x1e1   : > { %1808 = vrot.lane.b32.xlu1 %v1723_v42, %s5695_s25  ;;  %2062 = vst.msk [vmem:[#allocation3 + $0x30] sm:$0xff] %vm2055_vm10, %v1972_v44  ;;  %v1731_v42 = vld [vmem:[#allocation2 + $0x189] sm:$0xff] }
 0x1e2   : > { %1423 = vrot.lane.b32.xlu0 %v1915_v2, %s5693_s20  ;;  %2569 = vst.msk [vmem:[#allocation4 + $0x30] sm:$0xff] %vm2561_vm12, %v8538_v1  ;;  %2570 = vst.msk [vmem:[#allocation4 + $0x38] sm:$0xff] %vm2561_vm12, %v8538_v1 }
 0x1e3   : > { %v1781_v3 = vpop.permute.xlu1 %1780  ;;  %2571 = vst.msk [vmem:[#allocation4 + $0x40] sm:$0x3] %vm2564_vm13, %v8538_v1  ;;  %2574 = vst.msk [vmem:[#allocation4 + $0x58] sm:$0x3] %vm2564_vm13, %v8538_v1 }
 0x1e4   : > { %1870 = vst.msk [vmem:[#allocation3 + $0x38] sm:$0xff] %vm1862_vm9, %v1781_v3  ;;  %v1396_v51 = vpop.permute.xlu0 %1395  ;;  %v1924_v3 = vld [vmem:[#allocation2 + $0x18a] sm:$0xff] }
 0x1e5   : > { %2001 = vrot.lane.b32.xlu1 %v1916_v54, %s5696_s26  ;;  %1484 = vst.msk [vmem:[#allocation3 + $0x40] sm:$0xff] %vm1475_vm7, %v1396_v51  ;;  %v1539_v51 = vld [vmem:[#allocation2 + $0x198] sm:$0xff] }
 0x1e6   : > { %1617 = vrot.lane.b32.xlu0 %v1531_v46, %s5694_s28  ;;  %2572 = vst.msk [vmem:[#allocation4 + $0x48] sm:$0xff] %vm2561_vm12, %v8538_v1  ;;  %2573 = vst.msk [vmem:[#allocation4 + $0x50] sm:$0xff] %vm2561_vm12, %v8538_v1 }
 0x1e7   : > { %v1974_v53 = vpop.permute.xlu1 %1973  ;;  %2575 = vst.msk [vmem:[#allocation4 + $0x60] sm:$0xff] %vm2561_vm12, %v8538_v1  ;;  %2576 = vst.msk [vmem:[#allocation4 + $0x68] sm:$0xff] %vm2561_vm12, %v8538_v1 }
 0x1e8   : > { %2063 = vst.msk [vmem:[#allocation3 + $0x38] sm:$0xff] %vm2055_vm10, %v1974_v53  ;;  %v1590_v4 = vpop.permute.xlu0 %1589  ;;  %v2094_v63 = vld [vmem:[#allocation3 + $0x30] sm:$0xff] }
 0x1e9   : > { %1425 = vrot.lane.b32.xlu1 %v1916_v54, %s5693_s20  ;;  %1678 = vst.msk [vmem:[#allocation3 + $0x40] sm:$0xff] %vm1669_vm8, %v1590_v4  ;;  %5425 = vmatprep.mubr.msk.f32.mxu0 %vm2125_vm11, %v2094_v63  ;;  %v1732_v4 = vld [vmem:[#allocation2 + $0x199] sm:$0xff] }
 0x1ea   : > { %1810 = vrot.lane.b32.xlu0 %v1724_v56, %s5695_s25  ;;  %2577 = vst.msk [vmem:[#allocation4 + $0x70] sm:$0x3] %vm2564_vm13, %v8538_v1  ;;  %2580 = vst.msk [vmem:[#allocation4 + $0x88] sm:$0x3] %vm2564_vm13, %v8538_v1 }
 0x1eb   : > { %v1398_v11 = vpop.permute.xlu1 %1397  ;;  %2578 = vst.msk [vmem:[#allocation4 + $0x78] sm:$0xff] %vm2561_vm12, %v8538_v1  ;;  %2579 = vst.msk [vmem:[#allocation4 + $0x80] sm:$0xff] %vm2561_vm12, %v8538_v1 }
 0x1ec   : > { %1485 = vst.msk [vmem:[#allocation3 + $0x48] sm:$0xff] %vm1475_vm7, %v1398_v11  ;;  %v1783_v15 = vpop.permute.xlu0 %1782  ;;  %v1540_v11 = vld [vmem:[#allocation2 + $0x1a0] sm:$0xff] }
 0x1ed   : > { %1619 = vrot.lane.b32.xlu1 %v1532_v55, %s5694_s28  ;;  %1871 = vst.msk [vmem:[#allocation3 + $0x40] sm:$0xff] %vm1862_vm9, %v1783_v15  ;;  %v1925_v15 = vld [vmem:[#allocation2 + $0x19a] sm:$0xff] }
 0x1ee   : > { %2003 = vrot.lane.b32.xlu0 %v1917_v14, %s5696_s26  ;;  %2581 = vst.msk [vmem:[#allocation4 + $0x90] sm:$0xff] %vm2561_vm12, %v8538_v1  ;;  %2582 = vst.msk [vmem:[#allocation4 + $0x98] sm:$0xff] %vm2561_vm12, %v8538_v1 }
 0x1ef   : > { %v1592_v18 = vpop.permute.xlu1 %1591  ;;  %v2095_v19 = vld [vmem:[#allocation3 + $0x38] sm:$0xff]  ;;  %2583 = vst.msk [vmem:[#allocation4 + $0xa0] sm:$0x3] %vm2564_vm13, %v8538_v1  ;;  %2586 = vst.msk [vmem:[#allocation4 + $0xb8] sm:$0x3] %vm2564_vm13, %v8538_v1 }
 0x1f0   : > { %1679 = vst.msk [vmem:[#allocation3 + $0x48] sm:$0xff] %vm1669_vm8, %v1592_v18  ;;  %5426 = vmatmul.mubr.msk.f32.gmra.mrb[6].mxu0 %vm2125_vm11, %v2095_v19  ;;  %v1976_v57 = vpop.permute.xlu0 %1975  ;;  %v1733_v18 = vld [vmem:[#allocation2 + $0x1a1] sm:$0xff] }
 0x1f1   : > { %1812 = vrot.lane.b32.xlu1 %v1725_v5, %s5695_s25  ;;  %2064 = vst.msk [vmem:[#allocation3 + $0x40] sm:$0xff] %vm2055_vm10, %v1976_v57 }
 0x1f2   : > { %1427 = vrot.lane.b32.xlu0 %v1917_v14, %s5693_s20  ;;  %2584 = vst.msk [vmem:[#allocation4 + $0xa8] sm:$0xff] %vm2561_vm12, %v8538_v1  ;;  %2585 = vst.msk [vmem:[#allocation4 + $0xb0] sm:$0xff] %vm2561_vm12, %v8538_v1 }
 0x1f3   : > { %v1785_v22 = vpop.permute.xlu1 %1784  ;;  %2587 = vst.msk [vmem:[#allocation4 + $0xc0] sm:$0xff] %vm2561_vm12, %v8538_v1  ;;  %2588 = vst.msk [vmem:[#allocation4 + $0xc8] sm:$0xff] %vm2561_vm12, %v8538_v1 }
 0x1f4   : > { %1872 = vst.msk [vmem:[#allocation3 + $0x48] sm:$0xff] %vm1862_vm9, %v1785_v22  ;;  %v1400_v33 = vpop.permute.xlu0 %1399 }
 0x1f5   : > { %2005 = vrot.lane.b32.xlu1 %v1918_v35, %s5696_s26  ;;  %1486 = vst.msk [vmem:[#allocation3 + $0x50] sm:$0xff] %vm1475_vm7, %v1400_v33 }
 0x1f6   : > { %1621 = vrot.lane.b32.xlu0 %v1533_v6, %s5694_s28  ;;  %2589 = vst.msk [vmem:[#allocation4 + $0xd0] sm:$0x3] %vm2564_vm13, %v8538_v1  ;;  %2592 = vst.msk [vmem:[#allocation4 + $0xe8] sm:$0x3] %vm2564_vm13, %v8538_v1  ;;  %v1926_v6 = vld [vmem:[#allocation2 + $0x1a2] sm:$0xff] }
 0x1f7   : > { %v1978_v23 = vpop.permute.xlu1 %1977  ;;  %2590 = vst.msk [vmem:[#allocation4 + $0xd8] sm:$0xff] %vm2561_vm12, %v8538_v1  ;;  %2591 = vst.msk [vmem:[#allocation4 + $0xe0] sm:$0xff] %vm2561_vm12, %v8538_v1 }
 0x1f8   : > { %2065 = vst.msk [vmem:[#allocation3 + $0x48] sm:$0xff] %vm2055_vm10, %v1978_v23  ;;  %v1594_v58 = vpop.permute.xlu0 %1593  ;;  %v2096_v29 = vld [vmem:[#allocation3 + $0x40] sm:$0xff] }
 0x1f9   : > { %1429 = vrot.lane.b32.xlu1 %v1918_v35, %s5693_s20  ;;  %1680 = vst.msk [vmem:[#allocation3 + $0x50] sm:$0xff] %vm1669_vm8, %v1594_v58  ;;  %5428 = vmatprep.mubr.msk.f32.mxu0 %vm2125_vm11, %v2096_v29  ;;  %v2714_v35 = vld [vmem:[#allocation4 + $0x1] sm:$0xff] }
 0x1fa   : > { %1814 = vrot.lane.b32.xlu0 %v1726_v49, %s5695_s25  ;;  %2593 = vst.msk [vmem:[#allocation4 + $0xf0] sm:$0xff] %vm2561_vm12, %v8538_v1  ;;  %2594 = vst.msk [vmem:[#allocation4 + $0xf8] sm:$0xff] %vm2561_vm12, %v8538_v1  ;;  %v2715_v49 = vld [vmem:[#allocation4 + $0x9] sm:$0xff] }
 0x1fb   : > { %v1402_v36 = vpop.permute.xlu1 %1401  ;;  %2595 = vst.msk [vmem:[#allocation4 + $0x100] sm:$0x3] %vm2564_vm13, %v8538_v1  ;;  %2598 = vst.msk [vmem:[#allocation4 + $0x118] sm:$0x3] %vm2564_vm13, %v8538_v1 }
 0x1fc   : > { %1487 = vst.msk [vmem:[#allocation3 + $0x58] sm:$0xff] %vm1475_vm7, %v1402_v36  ;;  %v1787_v7 = vpop.permute.xlu0 %1786 }
 0x1fd   : > { %1623 = vrot.lane.b32.xlu1 %v1534_v37, %s5694_s28  ;;  %1873 = vst.msk [vmem:[#allocation3 + $0x50] sm:$0xff] %vm1862_vm9, %v1787_v7 }
 0x1fe   : > { %2007 = vrot.lane.b32.xlu0 %v1919_v0, %s5696_s26  ;;  %2596 = vst.msk [vmem:[#allocation4 + $0x108] sm:$0xff] %vm2561_vm12, %v8538_v1  ;;  %2597 = vst.msk [vmem:[#allocation4 + $0x110] sm:$0xff] %vm2561_vm12, %v8538_v1 }
 0x1ff   : > { %v1596_v59 = vpop.permute.xlu1 %1595  ;;  %v2097_v9 = vld [vmem:[#allocation3 + $0x48] sm:$0xff]  ;;  %2599 = vst.msk [vmem:[#allocation4 + $0x120] sm:$0xff] %vm2561_vm12, %v8538_v1  ;;  %2600 = vst.msk [vmem:[#allocation4 + $0x128] sm:$0xff] %vm2561_vm12, %v8538_v1 }
 0x200   : > { %1681 = vst.msk [vmem:[#allocation3 + $0x58] sm:$0xff] %vm1669_vm8, %v1596_v59  ;;  %5429 = vmatmul.mubr.msk.f32.gmra.mrb[8].mxu0 %vm2125_vm11, %v2097_v9  ;;  %v1980_v8 = vpop.permute.xlu0 %1979 }
 0x201   : > { %1816 = vrot.lane.b32.xlu1 %v1727_v48, %s5695_s25  ;;  %2066 = vst.msk [vmem:[#allocation3 + $0x50] sm:$0xff] %vm2055_vm10, %v1980_v8 }
 0x202   : > { %1431 = vrot.lane.b32.xlu0 %v1919_v0, %s5693_s20  ;;  %2601 = vst.msk [vmem:[#allocation4 + $0x130] sm:$0x3] %vm2564_vm13, %v8538_v1  ;;  %2604 = vst.msk [vmem:[#allocation4 + $0x148] sm:$0x3] %vm2564_vm13, %v8538_v1 }
 0x203   : > { %v1789_v10 = vpop.permute.xlu1 %1788  ;;  %2602 = vst.msk [vmem:[#allocation4 + $0x138] sm:$0xff] %vm2561_vm12, %v8538_v1  ;;  %2603 = vst.msk [vmem:[#allocation4 + $0x140] sm:$0xff] %vm2561_vm12, %v8538_v1 }
 0x204   : > { %1874 = vst.msk [vmem:[#allocation3 + $0x58] sm:$0xff] %vm1862_vm9, %v1789_v10  ;;  %v1404_v16 = vpop.permute.xlu0 %1403 }
 0x205   : > { %2009 = vrot.lane.b32.xlu1 %v1920_v12, %s5696_s26  ;;  %1488 = vst.msk [vmem:[#allocation3 + $0x60] sm:$0xff] %vm1475_vm7, %v1404_v16 }
 0x206   : > { %1625 = vrot.lane.b32.xlu0 %v1535_v60, %s5694_s28  ;;  %2605 = vst.msk [vmem:[#allocation4 + $0x150] sm:$0xff] %vm2561_vm12, %v8538_v1  ;;  %2606 = vst.msk [vmem:[#allocation4 + $0x158] sm:$0xff] %vm2561_vm12, %v8538_v1 }
 0x207   : > { %v1982_v13 = vpop.permute.xlu1 %1981  ;;  %2607 = vst.msk [vmem:[#allocation4 + $0x160] sm:$0x3] %vm2564_vm13, %v8538_v1  ;;  %2610 = vst.msk [vmem:[#allocation4 + $0x178] sm:$0x3] %vm2564_vm13, %v8538_v1 }
 0x208   : > { %2067 = vst.msk [vmem:[#allocation3 + $0x58] sm:$0xff] %vm2055_vm10, %v1982_v13  ;;  %v1598_v20 = vpop.permute.xlu0 %1597  ;;  %v2098_v17 = vld [vmem:[#allocation3 + $0x50] sm:$0xff] }
 0x209   : > { %1433 = vrot.lane.b32.xlu1 %v1920_v12, %s5693_s20  ;;  %1682 = vst.msk [vmem:[#allocation3 + $0x60] sm:$0xff] %vm1669_vm8, %v1598_v20  ;;  %5431 = vmatprep.mubr.msk.f32.mxu0 %vm2125_vm11, %v2098_v17 }
 0x20a   : > { %1818 = vrot.lane.b32.xlu0 %v1728_v38, %s5695_s25  ;;  %2608 = vst.msk [vmem:[#allocation4 + $0x168] sm:$0xff] %vm2561_vm12, %v8538_v1  ;;  %2609 = vst.msk [vmem:[#allocation4 + $0x170] sm:$0xff] %vm2561_vm12, %v8538_v1 }
 0x20b   : > { %v1406_v61 = vpop.permute.xlu1 %1405  ;;  %2611 = vst.msk [vmem:[#allocation4 + $0x180] sm:$0xff] %vm2561_vm12, %v8538_v1  ;;  %2612 = vst.msk [vmem:[#allocation4 + $0x188] sm:$0xff] %vm2561_vm12, %v8538_v1 }
 0x20c   : > { %1489 = vst.msk [vmem:[#allocation3 + $0x68] sm:$0xff] %vm1475_vm7, %v1406_v61  ;;  %v1791_v21 = vpop.permute.xlu0 %1790 }
 0x20d   : > { %1627 = vrot.lane.b32.xlu1 %v1536_v24, %s5694_s28  ;;  %1875 = vst.msk [vmem:[#allocation3 + $0x60] sm:$0xff] %vm1862_vm9, %v1791_v21 }
 0x20e   : > { %2011 = vrot.lane.b32.xlu0 %v1921_v45, %s5696_s26  ;;  %2613 = vst.msk [vmem:[#allocation4 + $0x190] sm:$0x3] %vm2564_vm13, %v8538_v1  ;;  %2616 = vst.msk [vmem:[#allocation4 + $0x1a8] sm:$0x3] %vm2564_vm13, %v8538_v1 }
 0x20f   : > { %v1600_v50 = vpop.permute.xlu1 %1599  ;;  %v2099_v62 = vld [vmem:[#allocation3 + $0x58] sm:$0xff]  ;;  %2614 = vst.msk [vmem:[#allocation4 + $0x198] sm:$0xff] %vm2561_vm12, %v8538_v1  ;;  %2615 = vst.msk [vmem:[#allocation4 + $0x1a0] sm:$0xff] %vm2561_vm12, %v8538_v1 }
 0x210   : > { %1683 = vst.msk [vmem:[#allocation3 + $0x68] sm:$0xff] %vm1669_vm8, %v1600_v50  ;;  %5432 = vmatmul.mubr.msk.f32.gmra.mrb[10].mxu0 %vm2125_vm11, %v2099_v62  ;;  %v1984_v28 = vpop.permute.xlu0 %1983 }
 0x211   : > { %1820 = vrot.lane.b32.xlu1 %v1729_v34, %s5695_s25  ;;  %2068 = vst.msk [vmem:[#allocation3 + $0x60] sm:$0xff] %vm2055_vm10, %v1984_v28 }
 0x212   : > { %1435 = vrot.lane.b32.xlu0 %v1921_v45, %s5693_s20 }
 0x213   : > { %v1793_v47 = vpop.permute.xlu1 %1792 }
 0x214   : > { %1876 = vst.msk [vmem:[#allocation3 + $0x68] sm:$0xff] %vm1862_vm9, %v1793_v47  ;;  %v1408_v27 = vpop.permute.xlu0 %1407 }
 0x215   : > { %2013 = vrot.lane.b32.xlu1 %v6765_v25, %s5696_s26  ;;  %1490 = vst.msk [vmem:[#allocation3 + $0x70] sm:$0xff] %vm1475_vm7, %v1408_v27 }
 0x216   : > { %1629 = vrot.lane.b32.xlu0 %v1537_v26, %s5694_s28 }
 0x217   : > { %v1986_v30 = vpop.permute.xlu1 %1985 }
 0x218   : > { %2069 = vst.msk [vmem:[#allocation3 + $0x68] sm:$0xff] %vm2055_vm10, %v1986_v30  ;;  %v1602_v31 = vpop.permute.xlu0 %1601  ;;  %v2100_v32 = vld [vmem:[#allocation3 + $0x60] sm:$0xff] }
 0x219   : > { %1437 = vrot.lane.b32.xlu1 %v6765_v25, %s5693_s20  ;;  %1684 = vst.msk [vmem:[#allocation3 + $0x70] sm:$0xff] %vm1669_vm8, %v1602_v31  ;;  %5434 = vmatprep.mubr.msk.f32.mxu0 %vm2125_vm11, %v2100_v32 }
 0x21a   : > { %1822 = vrot.lane.b32.xlu0 %v1730_v52, %s5695_s25 }
 0x21b   : > { %v1410_v2 = vpop.permute.xlu1 %1409 }
 0x21c   : > { %1491 = vst.msk [vmem:[#allocation3 + $0x78] sm:$0xff] %vm1475_vm7, %v1410_v2  ;;  %v1795_v41 = vpop.permute.xlu0 %1794 }
 0x21d   : > { %1631 = vrot.lane.b32.xlu1 %v1538_v39, %s5694_s28  ;;  %1877 = vst.msk [vmem:[#allocation3 + $0x70] sm:$0xff] %vm1862_vm9, %v1795_v41 }
 0x21e   : > { %2015 = vrot.lane.b32.xlu0 %v1923_v40, %s5696_s26 }
 0x21f   : > { %v1604_v43 = vpop.permute.xlu1 %1603  ;;  %v2101_v44 = vld [vmem:[#allocation3 + $0x68] sm:$0xff] }
 0x220   : > { %1685 = vst.msk [vmem:[#allocation3 + $0x78] sm:$0xff] %vm1669_vm8, %v1604_v43  ;;  %5435 = vmatmul.mubr.msk.f32.gmra.mrb[12].mxu0 %vm2125_vm11, %v2101_v44  ;;  %v1988_v54 = vpop.permute.xlu0 %1987 }
 0x221   : > { %1824 = vrot.lane.b32.xlu1 %v1731_v42, %s5695_s25  ;;  %2070 = vst.msk [vmem:[#allocation3 + $0x70] sm:$0xff] %vm2055_vm10, %v1988_v54 }
 0x222   : > { %1439 = vrot.lane.b32.xlu0 %v1923_v40, %s5693_s20 }
 0x223   : > { %v1797_v46 = vpop.permute.xlu1 %1796 }
 0x224   : > { %1878 = vst.msk [vmem:[#allocation3 + $0x78] sm:$0xff] %vm1862_vm9, %v1797_v46  ;;  %v1412_v53 = vpop.permute.xlu0 %1411 }
 0x225   : > { %2017 = vrot.lane.b32.xlu1 %v1924_v3, %s5696_s26  ;;  %1492 = vst.msk [vmem:[#allocation3 + $0x80] sm:$0xff] %vm1475_vm7, %v1412_v53 }
 0x226   : > { %1633 = vrot.lane.b32.xlu0 %v1539_v51, %s5694_s28 }
 0x227   : > { %v1990_v56 = vpop.permute.xlu1 %1989 }
 0x228   : > { %2071 = vst.msk [vmem:[#allocation3 + $0x78] sm:$0xff] %vm2055_vm10, %v1990_v56  ;;  %v1606_v63 = vpop.permute.xlu0 %1605  ;;  %v2102_v55 = vld [vmem:[#allocation3 + $0x70] sm:$0xff] }
 0x229   : > { %1441 = vrot.lane.b32.xlu1 %v1924_v3, %s5693_s20  ;;  %1686 = vst.msk [vmem:[#allocation3 + $0x80] sm:$0xff] %vm1669_vm8, %v1606_v63  ;;  %5437 = vmatprep.mubr.msk.f32.mxu0 %vm2125_vm11, %v2102_v55 }
 0x22a   : > { %1826 = vrot.lane.b32.xlu0 %v1732_v4, %s5695_s25 }
 0x22b   : > { %v1414_v14 = vpop.permute.xlu1 %1413 }
 0x22c   : > { %1493 = vst.msk [vmem:[#allocation3 + $0x88] sm:$0xff] %vm1475_vm7, %v1414_v14  ;;  %v1799_v5 = vpop.permute.xlu0 %1798 }
 0x22d   : > { %1635 = vrot.lane.b32.xlu1 %v1540_v11, %s5694_s28  ;;  %1879 = vst.msk [vmem:[#allocation3 + $0x80] sm:$0xff] %vm1862_vm9, %v1799_v5  ;;  %s5699_s28 = smov 80  }
 0x22e   : > { %2019 = vrot.lane.b32.xlu0 %v1925_v15, %s5696_s26 }
 0x22f   : > { %v1608_v19 = vpop.permute.xlu1 %1607  ;;  %v2103_v57 = vld [vmem:[#allocation3 + $0x78] sm:$0xff] }
 0x230   : > { %1687 = vst.msk [vmem:[#allocation3 + $0x88] sm:$0xff] %vm1669_vm8, %v1608_v19  ;;  %5438 = vmatmul.mubr.msk.f32.gmra.mrb[14].mxu0 %vm2125_vm11, %v2103_v57  ;;  %v1992_v22 = vpop.permute.xlu0 %1991 }
 0x231   : > { %1828 = vrot.lane.b32.xlu1 %v1733_v18, %s5695_s25  ;;  %2072 = vst.msk [vmem:[#allocation3 + $0x80] sm:$0xff] %vm2055_vm10, %v1992_v22  ;;  %v6976_v18 = vld [vmem:[%s8479_s2] ss:$0 sm:$0xff]  ;;  %s5702_s25 = smov 112  }
 0x232   : > { %2778 = vrot.lane.b32.xlu0 %v2714_v35, %s5692_s18  ;;  %v6983_v22 = vld [vmem:[%s8480_s3] ss:$0 sm:$0xff] }
 0x233   : > { %v1801_v33 = vpop.permute.xlu1 %1800 }
 0x234   : > { %1880 = vst.msk [vmem:[#allocation3 + $0x88] sm:$0xff] %vm1862_vm9, %v1801_v33  ;;  %v1416_v23 = vpop.permute.xlu0 %1415 }
 0x235   : > { %2021 = vrot.lane.b32.xlu1 %v1926_v6, %s5696_s26  ;;  %1494 = vst.msk [vmem:[#allocation3 + $0x90] sm:$0xff] %vm1475_vm7, %v1416_v23 }
 0x237   : > { %v1994_v58 = vpop.permute.xlu1 %1993 }
 0x238   : > { %2073 = vst.msk [vmem:[#allocation3 + $0x88] sm:$0xff] %vm2055_vm10, %v1994_v58  ;;  %v1610_v29 = vpop.permute.xlu0 %1609  ;;  %v2104_v37 = vld [vmem:[#allocation3 + $0x80] sm:$0xff]  ;;  %v2651_v58 = vld [vmem:[#allocation4 + $0x8] sm:$0xff] }
 0x239   : > { %2780 = vrot.lane.b32.xlu1 %v2715_v49, %s5692_s18  ;;  %1688 = vst.msk [vmem:[#allocation3 + $0x90] sm:$0xff] %vm1669_vm8, %v1610_v29  ;;  %5440 = vmatprep.mubr.msk.f32.mxu0 %vm2125_vm11, %v2104_v37  ;;  %v2650_v49 = vld [vmem:[#allocation4] sm:$0xff] }
 0x23a   : > { %2682 = vst.msk [vmem:[#allocation5] sm:$0xff] %vm2561_vm12, %v2650_v49  ;;  %2683 = vst.msk [vmem:[#allocation5 + $0x10] sm:$0xff] %vm2561_vm12, %v2651_v58 }
 0x23b   : > { %v1418_v36 = vpop.permute.xlu1 %1417 }
 0x23c   : > { %1495 = vst.msk [vmem:[#allocation3 + $0x98] sm:$0xff] %vm1475_vm7, %v1418_v36  ;;  %v1803_v0 = vpop.permute.xlu0 %1802 }
 0x23d   : > { %1881 = vst.msk [vmem:[#allocation3 + $0x90] sm:$0xff] %vm1862_vm9, %v1803_v0 }
 0x23f   : > { %v1612_v7 = vpop.permute.xlu1 %1611  ;;  %v2105_v48 = vld [vmem:[#allocation3 + $0x88] sm:$0xff] }
 0x240   : > { %1689 = vst.msk [vmem:[#allocation3 + $0x98] sm:$0xff] %vm1669_vm8, %v1612_v7  ;;  %5441 = vmatmul.mubr.msk.f32.gmra.mrb[16].mxu0 %vm2125_vm11, %v2105_v48  ;;  %v1996_v59 = vpop.permute.xlu0 %1995 }
 0x241   : > { %2074 = vst.msk [vmem:[#allocation3 + $0x90] sm:$0xff] %vm2055_vm10, %v1996_v59 }
 0x243   : > { %v1805_v9 = vpop.permute.xlu1 %1804 }
 0x244   : > { %1882 = vst.msk [vmem:[#allocation3 + $0x98] sm:$0xff] %vm1862_vm9, %v1805_v9  ;;  %v1420_v8 = vpop.permute.xlu0 %1419 }
 0x245   : > { %1496 = vst.msk [vmem:[#allocation3 + $0xa0] sm:$0xff] %vm1475_vm7, %v1420_v8 }
 0x247   : > { %v1998_v12 = vpop.permute.xlu1 %1997 }
 0x248   : > { %2075 = vst.msk [vmem:[#allocation3 + $0x98] sm:$0xff] %vm2055_vm10, %v1998_v12  ;;  %v2106_v10 = vld [vmem:[#allocation3 + $0x90] sm:$0xff]  ;;  %v1614_v60 = vpop.permute.xlu0 %1613 }
 0x249   : > { %5443 = vmatprep.mubr.msk.f32.mxu0 %vm2125_vm11, %v2106_v10  ;;  %1690 = vst.msk [vmem:[#allocation3 + $0xa0] sm:$0xff] %vm1669_vm8, %v1614_v60 }
 0x24b   : > { %v1422_v16 = vpop.permute.xlu1 %1421 }
 0x24c   : > { %1497 = vst.msk [vmem:[#allocation3 + $0xa8] sm:$0xff] %vm1475_vm7, %v1422_v16  ;;  %v1807_v13 = vpop.permute.xlu0 %1806 }
 0x24d   : > { %1883 = vst.msk [vmem:[#allocation3 + $0xa0] sm:$0xff] %vm1862_vm9, %v1807_v13 }
 0x24f   : > { %v2107_v38 = vld [vmem:[#allocation3 + $0x98] sm:$0xff]  ;;  %v1616_v20 = vpop.permute.xlu1 %1615 }
 0x250   : > { %5444 = vmatmul.mubr.msk.f32.gmra.mrb[18].mxu0 %vm2125_vm11, %v2107_v38  ;;  %1691 = vst.msk [vmem:[#allocation3 + $0xa8] sm:$0xff] %vm1669_vm8, %v1616_v20  ;;  %v2000_v17 = vpop.permute.xlu0 %1999 }
 0x251   : > { %2076 = vst.msk [vmem:[#allocation3 + $0xa0] sm:$0xff] %vm2055_vm10, %v2000_v17 }
 0x253   : > { %v1809_v24 = vpop.permute.xlu1 %1808 }
 0x254   : > { %1884 = vst.msk [vmem:[#allocation3 + $0xa8] sm:$0xff] %vm1862_vm9, %v1809_v24  ;;  %v1424_v61 = vpop.permute.xlu0 %1423 }
 0x255   : > { %1498 = vst.msk [vmem:[#allocation3 + $0xb0] sm:$0xff] %vm1475_vm7, %v1424_v61 }
 0x257   : > { %v2002_v45 = vpop.permute.xlu1 %2001 }
 0x258   : > { %2077 = vst.msk [vmem:[#allocation3 + $0xa8] sm:$0xff] %vm2055_vm10, %v2002_v45  ;;  %v1618_v21 = vpop.permute.xlu0 %1617  ;;  %v2108_v34 = vld [vmem:[#allocation3 + $0xa0] sm:$0xff] }
 0x259   : > { %1692 = vst.msk [vmem:[#allocation3 + $0xb0] sm:$0xff] %vm1669_vm8, %v1618_v21  ;;  %5446 = vmatprep.mubr.msk.f32.mxu0 %vm2125_vm11, %v2108_v34 }
 0x25b   : > { %v1426_v50 = vpop.permute.xlu1 %1425 }
 0x25c   : > { %1499 = vst.msk [vmem:[#allocation3 + $0xb8] sm:$0xff] %vm1475_vm7, %v1426_v50  ;;  %v1811_v62 = vpop.permute.xlu0 %1810 }
 0x25d   : > { %1885 = vst.msk [vmem:[#allocation3 + $0xb0] sm:$0xff] %vm1862_vm9, %v1811_v62 }
 0x25f   : > { %v1620_v28 = vpop.permute.xlu1 %1619  ;;  %v2109_v25 = vld [vmem:[#allocation3 + $0xa8] sm:$0xff] }
 0x260   : > { %1693 = vst.msk [vmem:[#allocation3 + $0xb8] sm:$0xff] %vm1669_vm8, %v1620_v28  ;;  %5447 = vmatmul.mubr.msk.f32.gmra.mrb[20].mxu0 %vm2125_vm11, %v2109_v25  ;;  %v2004_v47 = vpop.permute.xlu0 %2003 }
 0x261   : > { %2078 = vst.msk [vmem:[#allocation3 + $0xb0] sm:$0xff] %vm2055_vm10, %v2004_v47 }
 0x263   : > { %v1813_v26 = vpop.permute.xlu1 %1812 }
 0x264   : > { %1886 = vst.msk [vmem:[#allocation3 + $0xb8] sm:$0xff] %vm1862_vm9, %v1813_v26  ;;  %v1428_v27 = vpop.permute.xlu0 %1427 }
 0x265   : > { %1500 = vst.msk [vmem:[#allocation3 + $0xc0] sm:$0xff] %vm1475_vm7, %v1428_v27 }
 0x267   : > { %v2006_v30 = vpop.permute.xlu1 %2005 }
 0x268   : > { %2079 = vst.msk [vmem:[#allocation3 + $0xb8] sm:$0xff] %vm2055_vm10, %v2006_v30  ;;  %v1622_v1 = vpop.permute.xlu0 %1621  ;;  %v2110_v52 = vld [vmem:[#allocation3 + $0xb0] sm:$0xff] }
 0x269   : > { %1694 = vst.msk [vmem:[#allocation3 + $0xc0] sm:$0xff] %vm1669_vm8, %v1622_v1  ;;  %5449 = vmatprep.mubr.msk.f32.mxu0 %vm2125_vm11, %v2110_v52 }
 0x26b   : > { %v1430_v31 = vpop.permute.xlu1 %1429 }
 0x26c   : > { %1501 = vst.msk [vmem:[#allocation3 + $0xc8] sm:$0xff] %vm1475_vm7, %v1430_v31  ;;  %v1815_v32 = vpop.permute.xlu0 %1814 }
 0x26d   : > { %1887 = vst.msk [vmem:[#allocation3 + $0xc0] sm:$0xff] %vm1862_vm9, %v1815_v32 }
 0x26f   : > { %v1624_v39 = vpop.permute.xlu1 %1623  ;;  %v2111_v2 = vld [vmem:[#allocation3 + $0xb8] sm:$0xff] }
 0x270   : > { %1695 = vst.msk [vmem:[#allocation3 + $0xc8] sm:$0xff] %vm1669_vm8, %v1624_v39  ;;  %5450 = vmatmul.mubr.msk.f32.gmra.mrb[22].mxu0 %vm2125_vm11, %v2111_v2  ;;  %v2008_v40 = vpop.permute.xlu0 %2007 }
 0x271   : > { %2080 = vst.msk [vmem:[#allocation3 + $0xc0] sm:$0xff] %vm2055_vm10, %v2008_v40 }
 0x273   : > { %v1817_v41 = vpop.permute.xlu1 %1816 }
 0x274   : > { %1888 = vst.msk [vmem:[#allocation3 + $0xc8] sm:$0xff] %vm1862_vm9, %v1817_v41  ;;  %v1432_v42 = vpop.permute.xlu0 %1431 }
 0x275   : > { %1502 = vst.msk [vmem:[#allocation3 + $0xd0] sm:$0xff] %vm1475_vm7, %v1432_v42 }
 0x277   : > { %v2010_v43 = vpop.permute.xlu1 %2009 }
 0x278   : > { %2081 = vst.msk [vmem:[#allocation3 + $0xc8] sm:$0xff] %vm2055_vm10, %v2010_v43  ;;  %v1626_v44 = vpop.permute.xlu0 %1625  ;;  %v2112_v54 = vld [vmem:[#allocation3 + $0xc0] sm:$0xff] }
 0x279   : > { %1696 = vst.msk [vmem:[#allocation3 + $0xd0] sm:$0xff] %vm1669_vm8, %v1626_v44  ;;  %5452 = vmatprep.mubr.msk.f32.mxu0 %vm2125_vm11, %v2112_v54 }
 0x27b   : > { %v1434_v3 = vpop.permute.xlu1 %1433 }
 0x27c   : > { %1503 = vst.msk [vmem:[#allocation3 + $0xd8] sm:$0xff] %vm1475_vm7, %v1434_v3  ;;  %v1819_v46 = vpop.permute.xlu0 %1818 }
 0x27d   : > { %1889 = vst.msk [vmem:[#allocation3 + $0xd0] sm:$0xff] %vm1862_vm9, %v1819_v46 }
 0x27f   : > { %v1628_v51 = vpop.permute.xlu1 %1627  ;;  %v2113_v53 = vld [vmem:[#allocation3 + $0xc8] sm:$0xff] }
 0x280   : > { %1697 = vst.msk [vmem:[#allocation3 + $0xd8] sm:$0xff] %vm1669_vm8, %v1628_v51  ;;  %5453 = vmatmul.mubr.msk.f32.gmra.mrb[24].mxu0 %vm2125_vm11, %v2113_v53  ;;  %v2012_v56 = vpop.permute.xlu0 %2011 }
 0x281   : > { %2082 = vst.msk [vmem:[#allocation3 + $0xd0] sm:$0xff] %vm2055_vm10, %v2012_v56 }
 0x283   : > { %v1821_v4 = vpop.permute.xlu1 %1820 }
 0x284   : > { %1890 = vst.msk [vmem:[#allocation3 + $0xd8] sm:$0xff] %vm1862_vm9, %v1821_v4  ;;  %v1436_v63 = vpop.permute.xlu0 %1435 }
 0x285   : > { %1504 = vst.msk [vmem:[#allocation3 + $0xe0] sm:$0xff] %vm1475_vm7, %v1436_v63 }
 0x287   : > { %v2014_v55 = vpop.permute.xlu1 %2013 }
 0x288   : > { %2083 = vst.msk [vmem:[#allocation3 + $0xd8] sm:$0xff] %vm2055_vm10, %v2014_v55  ;;  %v1630_v11 = vpop.permute.xlu0 %1629  ;;  %v2114_v14 = vld [vmem:[#allocation3 + $0xd0] sm:$0xff] }
 0x289   : > { %1698 = vst.msk [vmem:[#allocation3 + $0xe0] sm:$0xff] %vm1669_vm8, %v1630_v11  ;;  %5455 = vmatprep.mubr.msk.f32.mxu0 %vm2125_vm11, %v2114_v14 }
 0x28b   : > { %v1438_v15 = vpop.permute.xlu1 %1437 }
 0x28c   : > { %1505 = vst.msk [vmem:[#allocation3 + $0xe8] sm:$0xff] %vm1475_vm7, %v1438_v15  ;;  %v1823_v5 = vpop.permute.xlu0 %1822 }
 0x28d   : > { %1891 = vst.msk [vmem:[#allocation3 + $0xe0] sm:$0xff] %vm1862_vm9, %v1823_v5 }
 0x28f   : > { %v1632_v19 = vpop.permute.xlu1 %1631  ;;  %v2115_v57 = vld [vmem:[#allocation3 + $0xd8] sm:$0xff] }
 0x290   : > { %1699 = vst.msk [vmem:[#allocation3 + $0xe8] sm:$0xff] %vm1669_vm8, %v1632_v19  ;;  %5456 = vmatmul.mubr.msk.f32.gmra.mrb[26].mxu0 %vm2125_vm11, %v2115_v57  ;;  %v5418_v35 = vpop.f32.mrb[0].mxu0  ;;  %v2016_v6 = vpop.permute.xlu0 %2015 }
 0x291   : > { %v2459_v33 = vmul.f32 %v5418_v35, %v6976_v18  ;;  %v2292_v23 = vpop.f32.mrb[1].mxu0  ;;  %2084 = vst.msk [vmem:[#allocation3 + $0xe0] sm:$0xff] %vm2055_vm10, %v2016_v6 }
 0x292   : > { %v2458_v29 = vmul.f32 %v6976_v18, %v2292_v23 }
 0x293   : > { %v1825_v37 = vpop.permute.xlu1 %1824  ;;  %v2498_v36 = vadd.f32 %v6983_v22, %v2459_v33 }
 0x294   : > { %1892 = vst.msk [vmem:[#allocation3 + $0xe8] sm:$0xff] %vm1862_vm9, %v1825_v37  ;;  %v2497_v0 = vadd.f32 %v6983_v22, %v2458_v29  ;;  %v1440_v7 = vpop.permute.xlu0 %1439 }
 0x295   : > { %v2530_v48 = vmax.f32 %v2498_v36, 0.0  ;;  %1506 = vst.msk [vmem:[#allocation3 + $0xf0] sm:$0xff] %vm1475_vm7, %v1440_v7 }
 0x296   : > { %v2529_v59 = vmax.f32 %v2497_v0, 0.0 }
 0x297   : > { %v2018_v9 = vpop.permute.xlu1 %2017  ;;  %2619 = vst.msk [vmem:[#allocation4 + $0x21] sm:$0xff] %vm2561_vm12, %v2530_v48 }
 0x298   : > { %2085 = vst.msk [vmem:[#allocation3 + $0xe8] sm:$0xff] %vm2055_vm10, %v2018_v9  ;;  %v1634_v8 = vpop.permute.xlu0 %1633  ;;  %v2116_v12 = vld [vmem:[#allocation3 + $0xe0] sm:$0xff] }
 0x299   : > { %2618 = vst.msk [vmem:[#allocation4 + $0x19] sm:$0xff] %vm2561_vm12, %v2529_v59  ;;  %5458 = vmatprep.mubr.msk.f32.mxu0 %vm2125_vm11, %v2116_v12 }
 0x29a   : > { %1700 = vst.msk [vmem:[#allocation3 + $0xf0] sm:$0xff] %vm1669_vm8, %v1634_v8 }
 0x29b   : > { %v1442_v10 = vpop.permute.xlu1 %1441 }
 0x29c   : > { %1507 = vst.msk [vmem:[#allocation3 + $0xf8] sm:$0xff] %vm1475_vm7, %v1442_v10  ;;  %v1827_v60 = vpop.permute.xlu0 %1826 }
 0x29d   : > { %1893 = vst.msk [vmem:[#allocation3 + $0xf0] sm:$0xff] %vm1862_vm9, %v1827_v60 }
 0x29e   : > { %v2717_v16 = vld [vmem:[#allocation4 + $0x21] sm:$0xff] }
 0x29f   : > { %v1636_v13 = vpop.permute.xlu1 %1635  ;;  %v2117_v38 = vld [vmem:[#allocation3 + $0xe8] sm:$0xff]  ;;  %2784 = vrot.lane.b32.xlu1 %v2717_v16, %s5692_s18 }
 0x2a0   : > { %v7001_v20 = vld [vmem:[#allocation4 + $0x19] sm:$0xff]  ;;  %1701 = vst.msk [vmem:[#allocation3 + $0xf8] sm:$0xff] %vm1669_vm8, %v1636_v13  ;;  %5459 = vmatmul.mubr.msk.f32.gmra.mrb[28].mxu0 %vm2125_vm11, %v2117_v38  ;;  %v5421_v61 = vpop.f32.mrb[2].mxu0  ;;  %v2020_v45 = vpop.permute.xlu0 %2019 }
 0x2a1   : > { %v7006_v17 = vld [vmem:[#allocation4 + $0x18] sm:$0xff]  ;;  %v7008_v24 = vld [vmem:[#allocation4 + $0x20] sm:$0xff]  ;;  %2782 = vrot.lane.b32.xlu0 %v7001_v20, %s5692_s18  ;;  %v2461_v21 = vmul.f32 %v5421_v61, %v6976_v18  ;;  %v2302_v34 = vpop.f32.mrb[3].mxu0  ;;  %2086 = vst.msk [vmem:[#allocation3 + $0xf0] sm:$0xff] %vm2055_vm10, %v2020_v45 }
 0x2a2   : > { %2684 = vst.msk [vmem:[#allocation5 + $0x20] sm:$0xff] %vm2561_vm12, %v7006_v17  ;;  %2685 = vst.msk [vmem:[#allocation5 + $0x30] sm:$0xff] %vm2561_vm12, %v7008_v24  ;;  %v2460_v50 = vmul.f32 %v6976_v18, %v2302_v34 }
 0x2a3   : > { %v1829_v62 = vpop.permute.xlu1 %1828  ;;  %v2500_v28 = vadd.f32 %v6983_v22, %v2461_v21 }
 0x2a4   : > { %1894 = vst.msk [vmem:[#allocation3 + $0xf8] sm:$0xff] %vm1862_vm9, %v1829_v62  ;;  %v2499_v25 = vadd.f32 %v6983_v22, %v2460_v50  ;;  %v2779_v47 = vpop.permute.xlu0 %2778 }
 0x2a5   : > { %v2532_v26 = vmax.f32 %v2500_v28, 0.0  ;;  %2875 = vst.msk [vmem:[#allocation5] sm:$0xff] %vm2874_vm14, %v2779_v47 }
 0x2a6   : > { %v2531_v27 = vmax.f32 %v2499_v25, 0.0 }
 0x2a7   : > { %v2022_v30 = vpop.permute.xlu1 %2021  ;;  %2621 = vst.msk [vmem:[#allocation4 + $0x39] sm:$0xff] %vm2561_vm12, %v2532_v26 }
 0x2a8   : > { %2087 = vst.msk [vmem:[#allocation3 + $0xf8] sm:$0xff] %vm2055_vm10, %v2022_v30  ;;  %v2118_v1 = vld [vmem:[#allocation3 + $0xf0] sm:$0xff] }
 0x2a9   : > { %2620 = vst.msk [vmem:[#allocation4 + $0x31] sm:$0xff] %vm2561_vm12, %v2531_v27  ;;  %5461 = vmatprep.mubr.msk.f32.mxu0 %vm2125_vm11, %v2118_v1 }
 0x2ab   : > { %v2781_v52 = vpop.permute.xlu1 %2780 }
 0x2ac   : > { %2876 = vst.msk [vmem:[#allocation5 + $0x10] sm:$0xff] %vm2874_vm14, %v2781_v52 }
 0x2ae   : > { %v7028_v31 = vld [vmem:[#allocation4 + $0x39] sm:$0xff] }
 0x2af   : > { %v2119_v32 = vld [vmem:[#allocation3 + $0xf8] sm:$0xff]  ;;  %2788 = vrot.lane.b32.xlu1 %v7028_v31, %s5692_s18 }
 0x2b0   : > { %v7032_v39 = vld [vmem:[#allocation4 + $0x31] sm:$0xff]  ;;  %5462 = vmatmul.mubr.msk.f32.gmra.mrb[30].mxu0 %vm2125_vm11, %v2119_v32  ;;  %v5424_v41 = vpop.f32.mrb[4].mxu0  ;;  %v4067_v54 = vld [vmem:[#allocation4 + $0x3a] sm:$0xff] }
 0x2b1   : > { %v7035_v2 = vld [vmem:[#allocation4 + $0x32] sm:$0xff]  ;;  %2786 = vrot.lane.b32.xlu0 %v7032_v39, %s5692_s18  ;;  %v2463_v43 = vmul.f32 %v5424_v41, %v6976_v18  ;;  %v2312_v44 = vpop.f32.mrb[5].mxu0  ;;  %4099 = vst.msk [vmem:[#allocation5 + $0x18] sm:$0xff] %vm2561_vm12, %v4067_v54 }
 0x2b2   : > { %v7037_v40 = vld [vmem:[#allocation4 + $0x38] sm:$0xff]  ;;  %4098 = vst.msk [vmem:[#allocation5 + $0x8] sm:$0xff] %vm2561_vm12, %v7035_v2  ;;  %v7045_v42 = vld [vmem:[#allocation4 + $0x30] sm:$0xff]  ;;  %v2462_v3 = vmul.f32 %v6976_v18, %v2312_v44 }
 0x2b3   : > { %2687 = vst.msk [vmem:[#allocation5 + $0x50] sm:$0xff] %vm2561_vm12, %v7037_v40  ;;  %2686 = vst.msk [vmem:[#allocation5 + $0x40] sm:$0xff] %vm2561_vm12, %v7045_v42  ;;  %v2502_v46 = vadd.f32 %v6983_v22, %v2463_v43 }
 0x2b4   : > { %v2501_v51 = vadd.f32 %v6983_v22, %v2462_v3 }
 0x2b5   : > { %v2534_v53 = vmax.f32 %v2502_v46, 0.0 }
 0x2b6   : > { %v2533_v56 = vmax.f32 %v2501_v51, 0.0 }
 0x2b7   : > { %2623 = vst.msk [vmem:[#allocation4 + $0x51] sm:$0xff] %vm2561_vm12, %v2534_v53 }
 0x2b8   : > { %2622 = vst.msk [vmem:[#allocation4 + $0x49] sm:$0xff] %vm2561_vm12, %v2533_v56 }
 0x2b9   : > { %v4131_v4 = vld [vmem:[#allocation5 + $0x8] sm:$0xff] }
 0x2ba   : > { %5260 = vmatprep.mubr.msk.f32.mxu0 %vm2561_vm12, %v4131_v4 }
 0x2be   : > { %v7057_v63 = vld [vmem:[#allocation4 + $0x51] sm:$0xff] }
 0x2bf   : > { %v7059_v55 = vld [vmem:[#allocation4 + $0x52] sm:$0xff]  ;;  %2792 = vrot.lane.b32.xlu1 %v7057_v63, %s5692_s18  ;;  %v7063_v11 = vld [vmem:[#allocation4 + $0x49] sm:$0xff] }
 0x2c0   : > { %4101 = vst.msk [vmem:[#allocation5 + $0x38] sm:$0xff] %vm2561_vm12, %v7059_v55  ;;  %v7067_v14 = vld [vmem:[#allocation4 + $0x50] sm:$0xff]  ;;  %v7069_v15 = vld [vmem:[#allocation4 + $0x48] sm:$0xff]  ;;  %2790 = vrot.lane.b32.xlu0 %v7063_v11, %s5692_s18 }
 0x2c1   : > { %2689 = vst.msk [vmem:[#allocation5 + $0x70] sm:$0xff] %vm2561_vm12, %v7067_v14  ;;  %2688 = vst.msk [vmem:[#allocation5 + $0x60] sm:$0xff] %vm2561_vm12, %v7069_v15  ;;  %v4068_v5 = vld [vmem:[#allocation4 + $0x4a] sm:$0xff] }
 0x2c2   : > { %4100 = vst.msk [vmem:[#allocation5 + $0x28] sm:$0xff] %vm2561_vm12, %v4068_v5 }
 0x2c3   : > { %v5427_v19 = vpop.f32.mrb[6].mxu0 }
 0x2c4   : > { %v2465_v57 = vmul.f32 %v5427_v19, %v6976_v18  ;;  %v2322_v35 = vpop.f32.mrb[7].mxu0 }
 0x2c5   : > { %v2464_v6 = vmul.f32 %v6976_v18, %v2322_v35 }
 0x2c6   : > { %v2504_v33 = vadd.f32 %v6983_v22, %v2465_v57 }
 0x2c7   : > { %v2503_v23 = vadd.f32 %v6983_v22, %v2464_v6  ;;  %v4137_v49 = vld [vmem:[#allocation5 + $0x38] sm:$0xff] }
 0x2c8   : > { %v2536_v58 = vmax.f32 %v2504_v33, 0.0  ;;  %5263 = vmatprep.mubr.msk.f32.mxu1 %vm2561_vm12, %v4137_v49 }
 0x2c9   : > { %v2535_v29 = vmax.f32 %v2503_v23, 0.0 }
 0x2ca   : > { %2625 = vst.msk [vmem:[#allocation4 + $0x69] sm:$0xff] %vm2561_vm12, %v2536_v58 }
 0x2cb   : > { %2624 = vst.msk [vmem:[#allocation4 + $0x61] sm:$0xff] %vm2561_vm12, %v2535_v29 }
 0x2d1   : > { %v7085_v37 = vld [vmem:[#allocation4 + $0x69] sm:$0xff] }
 0x2d2   : > { %v7087_v36 = vld [vmem:[#allocation4 + $0x6a] sm:$0xff]  ;;  %2796 = vrot.lane.b32.xlu1 %v7085_v37, %s5692_s18  ;;  %v7091_v0 = vld [vmem:[#allocation4 + $0x61] sm:$0xff] }
 0x2d3   : > { %v7093_v7 = vld [vmem:[#allocation4 + $0x68] sm:$0xff]  ;;  %v7095_v48 = vld [vmem:[#allocation4 + $0x60] sm:$0xff]  ;;  %4103 = vst.msk [vmem:[#allocation5 + $0x58] sm:$0xff] %vm2561_vm12, %v7087_v36  ;;  %2794 = vrot.lane.b32.xlu0 %v7091_v0, %s5692_s18  ;;  %v5430_v59 = vpop.f32.mrb[8].mxu0 }
 0x2d4   : > { %2691 = vst.msk [vmem:[#allocation5 + $0x90] sm:$0xff] %vm2561_vm12, %v7093_v7  ;;  %2690 = vst.msk [vmem:[#allocation5 + $0x80] sm:$0xff] %vm2561_vm12, %v7095_v48  ;;  %v7105_v9 = vld [vmem:[#allocation4 + $0x62] sm:$0xff]  ;;  %v2467_v8 = vmul.f32 %v5430_v59, %v6976_v18  ;;  %v2332_v12 = vpop.f32.mrb[9].mxu0 }
 0x2d5   : > { %4102 = vst.msk [vmem:[#allocation5 + $0x48] sm:$0xff] %vm2561_vm12, %v7105_v9  ;;  %v2466_v10 = vmul.f32 %v6976_v18, %v2332_v12 }
 0x2d6   : > { %v2506_v60 = vadd.f32 %v6983_v22, %v2467_v8 }
 0x2d7   : > { %v2505_v16 = vadd.f32 %v6983_v22, %v2466_v10 }
 0x2d8   : > { %v2538_v13 = vmax.f32 %v2506_v60, 0.0 }
 0x2d9   : > { %v2537_v38 = vmax.f32 %v2505_v16, 0.0 }
 0x2da   : > { %2627 = vst.msk [vmem:[#allocation4 + $0x81] sm:$0xff] %vm2561_vm12, %v2538_v13 }
 0x2db   : > { %2626 = vst.msk [vmem:[#allocation4 + $0x79] sm:$0xff] %vm2561_vm12, %v2537_v38 }
 0x2e1   : > { %v7115_v61 = vld [vmem:[#allocation4 + $0x81] sm:$0xff] }
 0x2e2   : > { %v7117_v45 = vld [vmem:[#allocation4 + $0x82] sm:$0xff]  ;;  %2800 = vrot.lane.b32.xlu1 %v7115_v61, %s5692_s18  ;;  %v7121_v21 = vld [vmem:[#allocation4 + $0x79] sm:$0xff] }
 0x2e3   : > { %v7123_v34 = vld [vmem:[#allocation4 + $0x80] sm:$0xff]  ;;  %v7125_v50 = vld [vmem:[#allocation4 + $0x78] sm:$0xff]  ;;  %4105 = vst.msk [vmem:[#allocation5 + $0x78] sm:$0xff] %vm2561_vm12, %v7117_v45  ;;  %2798 = vrot.lane.b32.xlu0 %v7121_v21, %s5692_s18  ;;  %v5433_v62 = vpop.f32.mrb[10].mxu0 }
 0x2e4   : > { %2693 = vst.msk [vmem:[#allocation5 + $0xb0] sm:$0xff] %vm2561_vm12, %v7123_v34  ;;  %2692 = vst.msk [vmem:[#allocation5 + $0xa0] sm:$0xff] %vm2561_vm12, %v7125_v50  ;;  %v7135_v28 = vld [vmem:[#allocation4 + $0x7a] sm:$0xff]  ;;  %v2469_v25 = vmul.f32 %v5433_v62, %v6976_v18  ;;  %v2342_v47 = vpop.f32.mrb[11].mxu0 }
 0x2e5   : > { %4104 = vst.msk [vmem:[#allocation5 + $0x68] sm:$0xff] %vm2561_vm12, %v7135_v28  ;;  %v2468_v26 = vmul.f32 %v6976_v18, %v2342_v47 }
 0x2e6   : > { %v2508_v27 = vadd.f32 %v6983_v22, %v2469_v25 }
 0x2e7   : > { %v2507_v30 = vadd.f32 %v6983_v22, %v2468_v26 }
 0x2e8   : > { %v2540_v1 = vmax.f32 %v2508_v27, 0.0 }
 0x2e9   : > { %v2539_v52 = vmax.f32 %v2507_v30, 0.0 }
 0x2ea   : > { %2629 = vst.msk [vmem:[#allocation4 + $0x99] sm:$0xff] %vm2561_vm12, %v2540_v1 }
 0x2eb   : > { %2628 = vst.msk [vmem:[#allocation4 + $0x91] sm:$0xff] %vm2561_vm12, %v2539_v52 }
 0x2f1   : > { %v7145_v32 = vld [vmem:[#allocation4 + $0x99] sm:$0xff] }
 0x2f2   : > { %v7147_v41 = vld [vmem:[#allocation4 + $0x9a] sm:$0xff]  ;;  %2804 = vrot.lane.b32.xlu1 %v7145_v32, %s5692_s18  ;;  %v7151_v43 = vld [vmem:[#allocation4 + $0x91] sm:$0xff] }
 0x2f3   : > { %v7153_v44 = vld [vmem:[#allocation4 + $0x98] sm:$0xff]  ;;  %v7155_v54 = vld [vmem:[#allocation4 + $0x90] sm:$0xff]  ;;  %4107 = vst.msk [vmem:[#allocation5 + $0x98] sm:$0xff] %vm2561_vm12, %v7147_v41  ;;  %2802 = vrot.lane.b32.xlu0 %v7151_v43, %s5692_s18  ;;  %v5436_v3 = vpop.f32.mrb[12].mxu0 }
 0x2f4   : > { %2695 = vst.msk [vmem:[#allocation5 + $0xd0] sm:$0xff] %vm2561_vm12, %v7153_v44  ;;  %2694 = vst.msk [vmem:[#allocation5 + $0xc0] sm:$0xff] %vm2561_vm12, %v7155_v54  ;;  %v7165_v46 = vld [vmem:[#allocation4 + $0x92] sm:$0xff]  ;;  %v2471_v51 = vmul.f32 %v5436_v3, %v6976_v18  ;;  %v2352_v53 = vpop.f32.mrb[13].mxu0 }
 0x2f5   : > { %4106 = vst.msk [vmem:[#allocation5 + $0x88] sm:$0xff] %vm2561_vm12, %v7165_v46  ;;  %v2470_v56 = vmul.f32 %v6976_v18, %v2352_v53 }
 0x2f6   : > { %v2510_v4 = vadd.f32 %v6983_v22, %v2471_v51 }
 0x2f7   : > { %v2509_v5 = vadd.f32 %v6983_v22, %v2470_v56 }
 0x2f8   : > { %v2542_v19 = vmax.f32 %v2510_v4, 0.0 }
 0x2f9   : > { %v2541_v57 = vmax.f32 %v2509_v5, 0.0  ;;  %v4194_v5 = vld [vmem:[%s8481_s4] sm:$0xff] }
 0x2fa   : > { %2631 = vst.msk [vmem:[#allocation4 + $0xb1] sm:$0xff] %vm2561_vm12, %v2542_v19  ;;  %v4195_v19 = vld [vmem:[%s8481_s4 + $0x8] sm:$0xff] }
 0x2fb   : > { %2630 = vst.msk [vmem:[#allocation4 + $0xa9] sm:$0xff] %vm2561_vm12, %v2541_v57 }
 0x301   : > { %v7175_v35 = vld [vmem:[#allocation4 + $0xb1] sm:$0xff] }
 0x302   : > { %v7177_v6 = vld [vmem:[#allocation4 + $0xb2] sm:$0xff]  ;;  %2808 = vrot.lane.b32.xlu1 %v7175_v35, %s5692_s18  ;;  %v7181_v33 = vld [vmem:[#allocation4 + $0xa9] sm:$0xff] }
 0x303   : > { %v7183_v23 = vld [vmem:[#allocation4 + $0xb0] sm:$0xff]  ;;  %v7185_v49 = vld [vmem:[#allocation4 + $0xa8] sm:$0xff]  ;;  %4109 = vst.msk [vmem:[#allocation5 + $0xb8] sm:$0xff] %vm2561_vm12, %v7177_v6  ;;  %2806 = vrot.lane.b32.xlu0 %v7181_v33, %s5692_s18  ;;  %v5439_v58 = vpop.f32.mrb[14].mxu0 }
 0x304   : > { %2697 = vst.msk [vmem:[#allocation5 + $0xf0] sm:$0xff] %vm2561_vm12, %v7183_v23  ;;  %2696 = vst.msk [vmem:[#allocation5 + $0xe0] sm:$0xff] %vm2561_vm12, %v7185_v49  ;;  %v7195_v29 = vld [vmem:[#allocation4 + $0xaa] sm:$0xff]  ;;  %v2473_v59 = vmul.f32 %v5439_v58, %v6976_v18  ;;  %v2362_v8 = vpop.f32.mrb[15].mxu0  ;;  %v5697_v58 = vmov 0.0|0.0  }
 0x305   : > { %4108 = vst.msk [vmem:[#allocation5 + $0xa8] sm:$0xff] %vm2561_vm12, %v7195_v29  ;;  %v2472_v12 = vmul.f32 %v6976_v18, %v2362_v8  ;;  %5549 = vmatprep.subr.bf16.mxu1 %v5697_v58  ;;  %5522 = vmatprep.subr.bf16.mxu0 %v5697_v58 }
 0x306   : > { %v2512_v10 = vadd.f32 %v6983_v22, %v2473_v59  ;;  %v5523_v59 = vpack.c.bf16 %v4195_v19, %v4194_v5 }
 0x307   : > { %v2511_v60 = vadd.f32 %v6983_v22, %v2472_v12  ;;  %v4196_v12 = vld [vmem:[%s8481_s4 + $0x10] sm:$0xff] }
 0x308   : > { %v2544_v16 = vmax.f32 %v2512_v10, 0.0  ;;  %5558 = vmatpush1.bf16.msra.mxu1 %v5523_v59  ;;  %5524 = vmatpush1.bf16.msra.mxu0 %v5523_v59  ;;  %v4197_v10 = vld [vmem:[%s8481_s4 + $0x18] sm:$0xff] }
 0x309   : > { %v2543_v13 = vmax.f32 %v2511_v60, 0.0  ;;  %5550 = vmatprep.subr.bf16.mxu1 %v5697_v58  ;;  %5525 = vmatprep.subr.bf16.mxu0 %v5697_v58  ;;  %v5526_v60 = vpack.c.bf16 %v4197_v10, %v4196_v12  ;;  %v4201_v12 = vld [vmem:[%s8481_s4 + $0x38] sm:$0xff] }
 0x30a   : > { %2633 = vst.msk [vmem:[#allocation4 + $0xc9] sm:$0xff] %vm2561_vm12, %v2544_v16  ;;  %v4198_v16 = vld [vmem:[%s8481_s4 + $0x20] sm:$0xff] }
 0x30b   : > { %2632 = vst.msk [vmem:[#allocation4 + $0xc1] sm:$0xff] %vm2561_vm12, %v2543_v13  ;;  %v4199_v13 = vld [vmem:[%s8481_s4 + $0x28] sm:$0xff] }
 0x30c   : > { %5559 = vmatpush1.bf16.msra.mxu1 %v5526_v60  ;;  %5527 = vmatpush1.bf16.msra.mxu0 %v5526_v60 }
 0x30d   : > { %5551 = vmatprep.subr.bf16.mxu1 %v5697_v58  ;;  %5528 = vmatprep.subr.bf16.mxu0 %v5697_v58 }
 0x311   : > { %v7205_v38 = vld [vmem:[#allocation4 + $0xc9] sm:$0xff]  ;;  %v2785_v47 = vpop.permute.xlu1 %2784 }
 0x312   : > { %v7207_v62 = vld [vmem:[#allocation4 + $0xca] sm:$0xff]  ;;  %2812 = vrot.lane.b32.xlu1 %v7205_v38, %s5692_s18  ;;  %v7211_v25 = vld [vmem:[#allocation4 + $0xc1] sm:$0xff]  ;;  %2878 = vst.msk [vmem:[#allocation5 + $0x30] sm:$0xff] %vm2874_vm14, %v2785_v47  ;;  %v5529_v47 = vpack.c.bf16 %v4199_v13, %v4198_v16 }
 0x313   : > { %v7213_v26 = vld [vmem:[#allocation4 + $0xc8] sm:$0xff]  ;;  %v7215_v27 = vld [vmem:[#allocation4 + $0xc0] sm:$0xff]  ;;  %4111 = vst.msk [vmem:[#allocation5 + $0xd8] sm:$0xff] %vm2561_vm12, %v7207_v62  ;;  %2810 = vrot.lane.b32.xlu0 %v7211_v25, %s5692_s18  ;;  %v5442_v30 = vpop.f32.mrb[16].mxu0  ;;  %v2783_v1 = vpop.permute.xlu0 %2782 }
 0x314   : > { %2699 = vst.msk [vmem:[#allocation5 + $0x110] sm:$0xff] %vm2561_vm12, %v7213_v26  ;;  %2698 = vst.msk [vmem:[#allocation5 + $0x100] sm:$0xff] %vm2561_vm12, %v7215_v27  ;;  %v7226_v52 = vld [vmem:[#allocation4 + $0xc2] sm:$0xff]  ;;  %v2475_v3 = vmul.f32 %v5442_v30, %v6976_v18  ;;  %v2372_v51 = vpop.f32.mrb[17].mxu0  ;;  %5560 = vmatpush1.bf16.msra.mxu1 %v5529_v47  ;;  %5530 = vmatpush1.bf16.msra.mxu0 %v5529_v47  ;;  %v4202_v47 = vld [vmem:[%s8481_s4 + $0x40] sm:$0xff] }
 0x315   : > { %2877 = vst.msk [vmem:[#allocation5 + $0x20] sm:$0xff] %vm2874_vm14, %v2783_v1  ;;  %v2474_v53 = vmul.f32 %v6976_v18, %v2372_v51  ;;  %5552 = vmatprep.subr.bf16.mxu1 %v5697_v58  ;;  %5531 = vmatprep.subr.bf16.mxu0 %v5697_v58 }
 0x316   : > { %4110 = vst.msk [vmem:[#allocation5 + $0xc8] sm:$0xff] %vm2561_vm12, %v7226_v52  ;;  %v2514_v56 = vadd.f32 %v6983_v22, %v2475_v3 }
 0x317   : > { %v2513_v4 = vadd.f32 %v6983_v22, %v2474_v53 }
 0x318   : > { %v2546_v57 = vmax.f32 %v2514_v56, 0.0 }
 0x319   : > { %v2545_v8 = vmax.f32 %v2513_v4, 0.0 }
 0x31a   : > { %2635 = vst.msk [vmem:[#allocation4 + $0xe1] sm:$0xff] %vm2561_vm12, %v2546_v57 }
 0x31b   : > { %2634 = vst.msk [vmem:[#allocation4 + $0xd9] sm:$0xff] %vm2561_vm12, %v2545_v8  ;;  %v4200_v8 = vld [vmem:[%s8481_s4 + $0x30] sm:$0xff] }
 0x31c   : > { %v5532_v60 = vpack.c.bf16 %v4201_v12, %v4200_v8  ;;  %v4205_v8 = vld [vmem:[%s8481_s4 + $0x58] sm:$0xff] }
 0x31e   : > { %5561 = vmatpush1.bf16.msra.mxu1 %v5532_v60  ;;  %5533 = vmatpush1.bf16.msra.mxu0 %v5532_v60  ;;  %v4207_v60 = vld [vmem:[%s8481_s4 + $0x68] sm:$0xff] }
 0x31f   : > { %5553 = vmatprep.subr.bf16.mxu1 %v5697_v58  ;;  %5534 = vmatprep.subr.bf16.mxu0 %v5697_v58 }
 0x321   : > { %v7261_v30 = vld [vmem:[#allocation4 + $0xe1] sm:$0xff]  ;;  %v2789_v51 = vpop.permute.xlu1 %2788 }
 0x322   : > { %v7263_v1 = vld [vmem:[#allocation4 + $0xe2] sm:$0xff]  ;;  %2816 = vrot.lane.b32.xlu1 %v7261_v30, %s5692_s18  ;;  %v7267_v3 = vld [vmem:[#allocation4 + $0xd9] sm:$0xff]  ;;  %2880 = vst.msk [vmem:[#allocation5 + $0x50] sm:$0xff] %vm2874_vm14, %v2789_v51 }
 0x323   : > { %v7269_v53 = vld [vmem:[#allocation4 + $0xe0] sm:$0xff]  ;;  %v7271_v56 = vld [vmem:[#allocation4 + $0xd8] sm:$0xff]  ;;  %4113 = vst.msk [vmem:[#allocation5 + $0xf8] sm:$0xff] %vm2561_vm12, %v7263_v1  ;;  %2814 = vrot.lane.b32.xlu0 %v7267_v3, %s5692_s18  ;;  %v5445_v4 = vpop.f32.mrb[18].mxu0  ;;  %v2787_v5 = vpop.permute.xlu0 %2786 }
 0x324   : > { %2701 = vst.msk [vmem:[#allocation5 + $0x130] sm:$0xff] %vm2561_vm12, %v7269_v53  ;;  %2700 = vst.msk [vmem:[#allocation5 + $0x120] sm:$0xff] %vm2561_vm12, %v7271_v56  ;;  %v7283_v19 = vld [vmem:[#allocation4 + $0xda] sm:$0xff]  ;;  %v2477_v57 = vmul.f32 %v5445_v4, %v6976_v18  ;;  %v2382_v59 = vpop.f32.mrb[19].mxu0 }
 0x325   : > { %2879 = vst.msk [vmem:[#allocation5 + $0x40] sm:$0xff] %vm2874_vm14, %v2787_v5  ;;  %v2476_v10 = vmul.f32 %v6976_v18, %v2382_v59  ;;  %v4203_v4 = vld [vmem:[%s8481_s4 + $0x48] sm:$0xff] }
 0x326   : > { %4112 = vst.msk [vmem:[#allocation5 + $0xe8] sm:$0xff] %vm2561_vm12, %v7283_v19  ;;  %v2516_v16 = vadd.f32 %v6983_v22, %v2477_v57  ;;  %v5535_v59 = vpack.c.bf16 %v4203_v4, %v4202_v47  ;;  %v4204_v57 = vld [vmem:[%s8481_s4 + $0x50] sm:$0xff] }
 0x327   : > { %v2515_v13 = vadd.f32 %v6983_v22, %v2476_v10  ;;  %v5538_v12 = vpack.c.bf16 %v4205_v8, %v4204_v57  ;;  %v4206_v10 = vld [vmem:[%s8481_s4 + $0x60] sm:$0xff] }
 0x328   : > { %v2548_v51 = vmax.f32 %v2516_v16, 0.0  ;;  %5562 = vmatpush1.bf16.msra.mxu1 %v5535_v59  ;;  %5536 = vmatpush1.bf16.msra.mxu0 %v5535_v59 }
 0x329   : > { %v2547_v5 = vmax.f32 %v2515_v13, 0.0  ;;  %5554 = vmatprep.subr.bf16.mxu1 %v5697_v58  ;;  %5537 = vmatprep.subr.bf16.mxu0 %v5697_v58  ;;  %v5541_v13 = vpack.c.bf16 %v4207_v60, %v4206_v10  ;;  %v4209_v10 = vld [vmem:[%s8481_s4 + $0x78] sm:$0xff] }
 0x32a   : > { %2637 = vst.msk [vmem:[#allocation4 + $0xf9] sm:$0xff] %vm2561_vm12, %v2548_v51 }
 0x32b   : > { %2636 = vst.msk [vmem:[#allocation4 + $0xf1] sm:$0xff] %vm2561_vm12, %v2547_v5 }
 0x32c   : > { %5563 = vmatpush1.bf16.msra.mxu1 %v5538_v12  ;;  %5539 = vmatpush1.bf16.msra.mxu0 %v5538_v12  ;;  %v4208_v12 = vld [vmem:[%s8481_s4 + $0x70] sm:$0xff] }
 0x32d   : > { %5555 = vmatprep.subr.bf16.mxu1 %v5697_v58  ;;  %5540 = vmatprep.subr.bf16.mxu0 %v5697_v58  ;;  %v5544_v60 = vpack.c.bf16 %v4209_v10, %v4208_v12  ;;  %v3489_v12 = vld [vmem:[#allocation4 + $0x3a] sm:$0xff] }
 0x330   : > { %5564 = vmatpush1.bf16.msra.mxu1 %v5541_v13  ;;  %5542 = vmatpush1.bf16.msra.mxu0 %v5541_v13  ;;  %v4210_v13 = vld [vmem:[%s8481_s4 + $0x80] sm:$0xff] }
 0x331   : > { %v7324_v16 = vld [vmem:[#allocation4 + $0xf9] sm:$0xff]  ;;  %v2793_v4 = vpop.permute.xlu1 %2792  ;;  %5556 = vmatprep.subr.bf16.mxu1 %v5697_v58  ;;  %5543 = vmatprep.subr.bf16.mxu0 %v5697_v58 }
 0x332   : > { %v7326_v51 = vld [vmem:[#allocation4 + $0xfa] sm:$0xff]  ;;  %2820 = vrot.lane.b32.xlu1 %v7324_v16, %s5692_s18  ;;  %v7331_v47 = vld [vmem:[#allocation4 + $0xf1] sm:$0xff]  ;;  %2882 = vst.msk [vmem:[#allocation5 + $0x70] sm:$0xff] %vm2874_vm14, %v2793_v4  ;;  %v2791_v57 = vpop.permute.xlu0 %2790  ;;  %v7361_v4 = vld [vmem:[#allocation4 + $0x22] sm:$0xff] }
 0x333   : > { %v7333_v5 = vld [vmem:[#allocation4 + $0xf8] sm:$0xff]  ;;  %v7335_v59 = vld [vmem:[#allocation4 + $0xf0] sm:$0xff]  ;;  %4115 = vst.msk [vmem:[#allocation5 + $0x118] sm:$0xff] %vm2561_vm12, %v7326_v51  ;;  %2818 = vrot.lane.b32.xlu0 %v7331_v47, %s5692_s18 }
 0x334   : > { %2703 = vst.msk [vmem:[#allocation5 + $0x150] sm:$0xff] %vm2561_vm12, %v7333_v5  ;;  %2702 = vst.msk [vmem:[#allocation5 + $0x140] sm:$0xff] %vm2561_vm12, %v7335_v59  ;;  %v7346_v8 = vld [vmem:[#allocation4 + $0xf2] sm:$0xff]  ;;  %5565 = vmatpush1.bf16.msra.mxu1 %v5544_v60  ;;  %5545 = vmatpush1.bf16.msra.mxu0 %v5544_v60  ;;  %v3490_v60 = vld [vmem:[#allocation4 + $0x4a] sm:$0xff] }
 0x335   : > { %2881 = vst.msk [vmem:[#allocation5 + $0x60] sm:$0xff] %vm2874_vm14, %v2791_v57  ;;  %5557 = vmatprep.subr.bf16.mxu1 %v5697_v58  ;;  %v4211_v57 = vld [vmem:[%s8481_s4 + $0x88] sm:$0xff]  ;;  %5546 = vmatprep.subr.bf16.mxu0 %v5697_v58 }
 0x336   : > { %4114 = vst.msk [vmem:[#allocation5 + $0x108] sm:$0xff] %vm2561_vm12, %v7346_v8  ;;  %3170 = vrot.lane.b32.xlu1 %v7037_v40, %s5698_s21  ;;  %v5547_v10 = vpack.c.bf16 %v4211_v57, %v4210_v13 }
 0x337   : > { %2977 = vrot.lane.b32.xlu0 %v7361_v4, %s5696_s26 }
 0x338   : > { %5566 = vmatpush1.bf16.msra.mxu1 %v5547_v10  ;;  %5548 = vmatpush1.bf16.msra.mxu0 %v5547_v10 }
 0x33a   : > { %3556 = vrot.lane.b32.xlu1 %v3489_v12, %s5699_s28 }
 0x33b   : > { %3363 = vrot.lane.b32.xlu0 %v7028_v31, %s5700_s30 }
 0x33e   : > { %3750 = vrot.lane.b32.xlu1 %v7067_v14, %s5701_s12 }
 0x33f   : > { %2979 = vrot.lane.b32.xlu0 %v7035_v2, %s5696_s26 }
 0x342   : > { %3943 = vrot.lane.b32.xlu1 %v7057_v63, %s5702_s25 }
 0x343   : > { %3172 = vrot.lane.b32.xlu0 %v7069_v15, %s5698_s21 }
 0x344   : > { %v2797_v58 = vpop.permute.xlu1 %2796 }
 0x345   : > { %2884 = vst.msk [vmem:[#allocation5 + $0x90] sm:$0xff] %vm2874_vm14, %v2797_v58  ;;  %v2795_v31 = vpop.permute.xlu0 %2794 }
 0x346   : > { %2883 = vst.msk [vmem:[#allocation5 + $0x80] sm:$0xff] %vm2874_vm14, %v2795_v31  ;;  %3558 = vrot.lane.b32.xlu1 %v3490_v60, %s5699_s28 }
 0x347   : > { %3365 = vrot.lane.b32.xlu0 %v7063_v11, %s5700_s30 }
 0x34a   : > { %3752 = vrot.lane.b32.xlu1 %v7095_v48, %s5701_s12 }
 0x34b   : > { %2981 = vrot.lane.b32.xlu0 %v3489_v12, %s5696_s26 }
 0x34e   : > { %3945 = vrot.lane.b32.xlu1 %v7091_v0, %s5702_s25 }
 0x34f   : > { %3174 = vrot.lane.b32.xlu0 %v7067_v14, %s5698_s21 }
 0x352   : > { %3560 = vrot.lane.b32.xlu1 %v7059_v55, %s5699_s28 }
 0x353   : > { %3367 = vrot.lane.b32.xlu0 %v7057_v63, %s5700_s30 }
 0x354   : > { %v2801_v2 = vpop.permute.xlu1 %2800 }
 0x355   : > { %2886 = vst.msk [vmem:[#allocation5 + $0xb0] sm:$0xff] %vm2874_vm14, %v2801_v2  ;;  %v2799_v11 = vpop.permute.xlu0 %2798 }
 0x356   : > { %2885 = vst.msk [vmem:[#allocation5 + $0xa0] sm:$0xff] %vm2874_vm14, %v2799_v11  ;;  %3754 = vrot.lane.b32.xlu1 %v7093_v7, %s5701_s12 }
 0x357   : > { %2983 = vrot.lane.b32.xlu0 %v3490_v60, %s5696_s26 }
 0x35a   : > { %3947 = vrot.lane.b32.xlu1 %v7085_v37, %s5702_s25 }
 0x35b   : > { %3176 = vrot.lane.b32.xlu0 %v7095_v48, %s5698_s21 }
 0x35e   : > { %3562 = vrot.lane.b32.xlu1 %v7105_v9, %s5699_s28 }
 0x35f   : > { %3369 = vrot.lane.b32.xlu0 %v7091_v0, %s5700_s30 }
 0x362   : > { %3756 = vrot.lane.b32.xlu1 %v7125_v50, %s5701_s12 }
 0x363   : > { %2985 = vrot.lane.b32.xlu0 %v7059_v55, %s5696_s26 }
 0x364   : > { %v2805_v63 = vpop.permute.xlu1 %2804 }
 0x365   : > { %2888 = vst.msk [vmem:[#allocation5 + $0xd0] sm:$0xff] %vm2874_vm14, %v2805_v63  ;;  %v2803_v14 = vpop.permute.xlu0 %2802 }
 0x366   : > { %2887 = vst.msk [vmem:[#allocation5 + $0xc0] sm:$0xff] %vm2874_vm14, %v2803_v14  ;;  %3949 = vrot.lane.b32.xlu1 %v7121_v21, %s5702_s25  ;;  %v2907_v14 = vld [vmem:[#allocation4 + $0x2] sm:$0xff] }
 0x367   : > { %3178 = vrot.lane.b32.xlu0 %v7093_v7, %s5698_s21 }
 0x36a   : > { %3564 = vrot.lane.b32.xlu1 %v7087_v36, %s5699_s28 }
 0x36b   : > { %3371 = vrot.lane.b32.xlu0 %v7085_v37, %s5700_s30 }
 0x36e   : > { %3758 = vrot.lane.b32.xlu1 %v7123_v34, %s5701_s12 }
 0x36f   : > { %2987 = vrot.lane.b32.xlu0 %v7105_v9, %s5696_s26 }
 0x372   : > { %3951 = vrot.lane.b32.xlu1 %v7115_v61, %s5702_s25 }
 0x373   : > { %3180 = vrot.lane.b32.xlu0 %v7125_v50, %s5698_s21 }
 0x374   : > { %v2809_v55 = vpop.permute.xlu1 %2808 }
 0x375   : > { %2890 = vst.msk [vmem:[#allocation5 + $0xf0] sm:$0xff] %vm2874_vm14, %v2809_v55  ;;  %v2807_v0 = vpop.permute.xlu0 %2806 }
 0x376   : > { %2889 = vst.msk [vmem:[#allocation5 + $0xe0] sm:$0xff] %vm2874_vm14, %v2807_v0  ;;  %3566 = vrot.lane.b32.xlu1 %v7135_v28, %s5699_s28 }
 0x377   : > { %3373 = vrot.lane.b32.xlu0 %v7121_v21, %s5700_s30 }
 0x37a   : > { %3760 = vrot.lane.b32.xlu1 %v7155_v54, %s5701_s12 }
 0x37b   : > { %2989 = vrot.lane.b32.xlu0 %v7087_v36, %s5696_s26  ;;  %v5448_v36 = vpop.f32.mrb[20].mxu0 }
 0x37c   : > { %v2479_v48 = vmul.f32 %v5448_v36, %v6976_v18  ;;  %v2392_v9 = vpop.f32.mrb[21].mxu0 }
 0x37d   : > { %v2478_v21 = vmul.f32 %v6976_v18, %v2392_v9 }
 0x37e   : > { %3953 = vrot.lane.b32.xlu1 %v7151_v43, %s5702_s25 }
 0x37f   : > { %3182 = vrot.lane.b32.xlu0 %v7123_v34, %s5698_s21  ;;  %v2517_v34 = vadd.f32 %v6983_v22, %v2478_v21 }
 0x381   : > { %v2549_v13 = vmax.f32 %v2517_v34, 0.0 }
 0x382   : > { %3568 = vrot.lane.b32.xlu1 %v7117_v45, %s5699_s28 }
 0x383   : > { %3375 = vrot.lane.b32.xlu0 %v7115_v61, %s5700_s30  ;;  %v2518_v61 = vadd.f32 %v6983_v22, %v2479_v48  ;;  %2638 = vst.msk [vmem:[#allocation4 + $0x109] sm:$0xff] %vm2561_vm12, %v2549_v13 }
 0x384   : > { %v2813_v37 = vpop.permute.xlu1 %2812 }
 0x385   : > { %2892 = vst.msk [vmem:[#allocation5 + $0x110] sm:$0xff] %vm2874_vm14, %v2813_v37  ;;  %v2811_v7 = vpop.permute.xlu0 %2810  ;;  %v2550_v50 = vmax.f32 %v2518_v61, 0.0 }
 0x386   : > { %2891 = vst.msk [vmem:[#allocation5 + $0x100] sm:$0xff] %vm2874_vm14, %v2811_v7  ;;  %3762 = vrot.lane.b32.xlu1 %v7153_v44, %s5701_s12 }
 0x387   : > { %2991 = vrot.lane.b32.xlu0 %v7135_v28, %s5696_s26  ;;  %2639 = vst.msk [vmem:[#allocation4 + $0x111] sm:$0xff] %vm2561_vm12, %v2550_v50 }
 0x38a   : > { %3955 = vrot.lane.b32.xlu1 %v7145_v32, %s5702_s25  ;;  %v7478_v57 = vld [vmem:[#allocation4 + $0x108] sm:$0xff] }
 0x38b   : > { %3184 = vrot.lane.b32.xlu0 %v7155_v54, %s5698_s21  ;;  %2704 = vst.msk [vmem:[#allocation5 + $0x160] sm:$0xff] %vm2561_vm12, %v7478_v57 }
 0x38e   : > { %3570 = vrot.lane.b32.xlu1 %v7165_v46, %s5699_s28  ;;  %v7480_v12 = vld [vmem:[#allocation4 + $0x110] sm:$0xff] }
 0x38f   : > { %3377 = vrot.lane.b32.xlu0 %v7151_v43, %s5700_s30  ;;  %v5451_v43 = vpop.f32.mrb[22].mxu0  ;;  %v7485_v10 = vld [vmem:[#allocation4 + $0x10a] sm:$0xff]  ;;  %v7487_v58 = vld [vmem:[#allocation4 + $0x112] sm:$0xff]  ;;  %2705 = vst.msk [vmem:[#allocation5 + $0x170] sm:$0xff] %vm2561_vm12, %v7480_v12 }
 0x390   : > { %v2402_v31 = vpop.f32.mrb[23].mxu0  ;;  %4116 = vst.msk [vmem:[#allocation5 + $0x128] sm:$0xff] %vm2561_vm12, %v7485_v10  ;;  %4117 = vst.msk [vmem:[#allocation5 + $0x138] sm:$0xff] %vm2561_vm12, %v7487_v58 }
 0x391   : > { %v2480_v60 = vmul.f32 %v6976_v18, %v2402_v31 }
 0x392   : > { %3764 = vrot.lane.b32.xlu1 %v7185_v49, %s5701_s12 }
 0x393   : > { %2993 = vrot.lane.b32.xlu0 %v7117_v45, %s5696_s26  ;;  %v2481_v45 = vmul.f32 %v5451_v43, %v6976_v18  ;;  %v2519_v11 = vadd.f32 %v6983_v22, %v2480_v60 }
 0x394   : > { %v2817_v28 = vpop.permute.xlu1 %2816 }
 0x395   : > { %2894 = vst.msk [vmem:[#allocation5 + $0x130] sm:$0xff] %vm2874_vm14, %v2817_v28  ;;  %v2815_v54 = vpop.permute.xlu0 %2814  ;;  %v2520_v2 = vadd.f32 %v6983_v22, %v2481_v45  ;;  %v2551_v63 = vmax.f32 %v2519_v11, 0.0 }
 0x396   : > { %2893 = vst.msk [vmem:[#allocation5 + $0x120] sm:$0xff] %vm2874_vm14, %v2815_v54  ;;  %3957 = vrot.lane.b32.xlu1 %v7181_v33, %s5702_s25 }
 0x397   : > { %3186 = vrot.lane.b32.xlu0 %v7153_v44, %s5698_s21  ;;  %v2552_v44 = vmax.f32 %v2520_v2, 0.0  ;;  %2640 = vst.msk [vmem:[#allocation4 + $0x121] sm:$0xff] %vm2561_vm12, %v2551_v63  ;;  %v7583_v2 = vld [vmem:[%s8479_s2] ss:$0 sm:$0xff] }
 0x399   : > { %2641 = vst.msk [vmem:[#allocation4 + $0x129] sm:$0xff] %vm2561_vm12, %v2552_v44 }
 0x39a   : > { %3572 = vrot.lane.b32.xlu1 %v7147_v41, %s5699_s28 }
 0x39b   : > { %3379 = vrot.lane.b32.xlu0 %v7145_v32, %s5700_s30 }
 0x39e   : > { %3766 = vrot.lane.b32.xlu1 %v7183_v23, %s5701_s12  ;;  %v7518_v0 = vld [vmem:[#allocation4 + $0x120] sm:$0xff] }
 0x39f   : > { %2995 = vrot.lane.b32.xlu0 %v7165_v46, %s5696_s26  ;;  %v5454_v46 = vpop.f32.mrb[24].mxu0  ;;  %2706 = vst.msk [vmem:[#allocation5 + $0x180] sm:$0xff] %vm2561_vm12, %v7518_v0 }
 0x3a0   : > { %v7520_v37 = vld [vmem:[#allocation4 + $0x128] sm:$0xff]  ;;  %v2412_v48 = vpop.f32.mrb[25].mxu0 }
 0x3a1   : > { %v7524_v7 = vld [vmem:[#allocation4 + $0x122] sm:$0xff]  ;;  %v7526_v36 = vld [vmem:[#allocation4 + $0x12a] sm:$0xff]  ;;  %2707 = vst.msk [vmem:[#allocation5 + $0x190] sm:$0xff] %vm2561_vm12, %v7520_v37  ;;  %v2482_v21 = vmul.f32 %v6976_v18, %v2412_v48  ;;  %v5457_v31 = vpop.f32.mrb[26].mxu0 }
 0x3a2   : > { %3959 = vrot.lane.b32.xlu1 %v7175_v35, %s5702_s25  ;;  %4118 = vst.msk [vmem:[#allocation5 + $0x148] sm:$0xff] %vm2561_vm12, %v7524_v7  ;;  %4119 = vst.msk [vmem:[#allocation5 + $0x158] sm:$0xff] %vm2561_vm12, %v7526_v36  ;;  %v2422_v11 = vpop.f32.mrb[27].mxu0 }
 0x3a3   : > { %3188 = vrot.lane.b32.xlu0 %v7185_v49, %s5698_s21  ;;  %v2483_v49 = vmul.f32 %v5454_v46, %v6976_v18  ;;  %v2484_v63 = vmul.f32 %v7583_v2, %v2422_v11  ;;  %v7599_v46 = vld [vmem:[#allocation4 + $0x1a] sm:$0xff] }
 0x3a4   : > { %v2821_v32 = vpop.permute.xlu1 %2820 }
 0x3a5   : > { %2896 = vst.msk [vmem:[#allocation5 + $0x150] sm:$0xff] %vm2874_vm14, %v2821_v32  ;;  %v2819_v55 = vpop.permute.xlu0 %2818  ;;  %v2522_v34 = vadd.f32 %v6983_v22, %v2483_v49  ;;  %v7594_v32 = vld [vmem:[%s8480_s3] ss:$0 sm:$0xff] }
 0x3a6   : > { %2895 = vst.msk [vmem:[#allocation5 + $0x140] sm:$0xff] %vm2874_vm14, %v2819_v55  ;;  %2971 = vrot.lane.b32.xlu1 %v2907_v14, %s5696_s26  ;;  %v2523_v49 = vadd.f32 %v7594_v32, %v2484_v63  ;;  %v4141_v63 = vld [vmem:[#allocation5 + $0x58] sm:$0xff] }
 0x3a7   : > { %3381 = vrot.lane.b32.xlu0 %v7181_v33, %s5700_s30  ;;  %v2521_v33 = vadd.f32 %v6983_v22, %v2482_v21  ;;  %v2554_v50 = vmax.f32 %v2522_v34, 0.0 }
 0x3a8   : > { %v3171_v9 = vpop.permute.xlu1 %3170 }
 0x3a9   : > { %v2978_v61 = vpop.permute.xlu0 %2977  ;;  %v2553_v18 = vmax.f32 %v2521_v33, 0.0  ;;  %2643 = vst.msk [vmem:[#allocation4 + $0x141] sm:$0xff] %vm2561_vm12, %v2554_v50  ;;  %v4139_v33 = vld [vmem:[#allocation5 + $0x48] sm:$0xff] }
 0x3aa   : > { %3071 = vst.msk [vmem:[#allocation5 + $0x30] sm:$0xff] %vm3067_vm15, %v2978_v61  ;;  %2997 = vrot.lane.b32.xlu1 %v7147_v41, %s5696_s26  ;;  %v2555_v61 = vmax.f32 %v2523_v49, 0.0 }
 0x3ab   : > { %3574 = vrot.lane.b32.xlu0 %v7195_v29, %s5699_s28  ;;  %3264 = vst.msk [vmem:[#allocation5 + $0x30] sm:$0xff] %vm3260_vm1, %v3171_v9 }
 0x3ac   : > { %v3557_v13 = vpop.permute.xlu1 %3556  ;;  %2642 = vst.msk [vmem:[#allocation4 + $0x139] sm:$0xff] %vm2561_vm12, %v2553_v18  ;;  %2644 = vst.msk [vmem:[#allocation4 + $0x151] sm:$0xff] %vm2561_vm12, %v2555_v61 }
 0x3ad   : > { %v3364_v28 = vpop.permute.xlu0 %3363 }
 0x3ae   : > { %3457 = vst.msk [vmem:[#allocation5 + $0x30] sm:$0xff] %vm3453_vm2, %v3364_v28  ;;  %3768 = vrot.lane.b32.xlu1 %v7215_v27, %s5701_s12 }
 0x3af   : > { %3164 = vrot.lane.b32.xlu0 %v7006_v17, %s5698_s21  ;;  %3650 = vst.msk [vmem:[#allocation5 + $0x30] sm:$0xff] %vm3646_vm3, %v3557_v13 }
 0x3b0   : > { %v3751_v22 = vpop.permute.xlu1 %3750 }
 0x3b1   : > { %3844 = vst.msk [vmem:[#allocation5 + $0x30] sm:$0xff] %vm3840_vm4, %v3751_v22  ;;  %v2980_v41 = vpop.permute.xlu0 %2979 }
 0x3b2   : > { %3072 = vst.msk [vmem:[#allocation5 + $0x40] sm:$0xff] %vm3067_vm15, %v2980_v41  ;;  %3357 = vrot.lane.b32.xlu1 %v7001_v20, %s5700_s30  ;;  %v7572_v20 = vld [vmem:[#allocation4 + $0x142] sm:$0xff] }
 0x3b3   : > { %3190 = vrot.lane.b32.xlu0 %v7183_v23, %s5698_s21  ;;  %v7563_v17 = vld [vmem:[#allocation4 + $0x138] sm:$0xff]  ;;  %v7565_v45 = vld [vmem:[#allocation4 + $0x140] sm:$0xff]  ;;  %v2908_v23 = vld [vmem:[#allocation4 + $0xa] sm:$0xff]  ;;  %4121 = vst.msk [vmem:[#allocation5 + $0x178] sm:$0xff] %vm2561_vm12, %v7572_v20 }
 0x3b4   : > { %v3944_v54 = vpop.permute.xlu1 %3943  ;;  %v7570_v60 = vld [vmem:[#allocation4 + $0x13a] sm:$0xff]  ;;  %2708 = vst.msk [vmem:[#allocation5 + $0x1a0] sm:$0xff] %vm2561_vm12, %v7563_v17  ;;  %2709 = vst.msk [vmem:[#allocation5 + $0x1b0] sm:$0xff] %vm2561_vm12, %v7565_v45  ;;  %v7620_v22 = vld [vmem:[#allocation4 + $0x150] sm:$0xff] }
 0x3b5   : > { %4037 = vst.msk [vmem:[#allocation5 + $0x30] sm:$0xff] %vm4033_vm6, %v3944_v54  ;;  %v3173_v43 = vpop.permute.xlu0 %3172  ;;  %v5460_v54 = vpop.f32.mrb[28].mxu0 }
 0x3b6   : > { %3265 = vst.msk [vmem:[#allocation5 + $0x40] sm:$0xff] %vm3260_vm1, %v3173_v43  ;;  %3383 = vrot.lane.b32.xlu1 %v7175_v35, %s5700_s30  ;;  %v2485_v35 = vmul.f32 %v7583_v2, %v5457_v31 }
 0x3b7   : > { %3961 = vrot.lane.b32.xlu0 %v7211_v25, %s5702_s25  ;;  %4120 = vst.msk [vmem:[#allocation5 + $0x168] sm:$0xff] %vm2561_vm12, %v7570_v60  ;;  %2710 = vst.msk [vmem:[#allocation5 + $0x1c0] sm:$0xff] %vm2561_vm12, %v7620_v22 }
 0x3b8   : > { %v3559_v44 = vpop.permute.xlu1 %3558  ;;  %v2524_v55 = vadd.f32 %v7594_v32, %v2485_v35 }
 0x3b9   : > { %v3366_v14 = vpop.permute.xlu0 %3365 }
 0x3ba   : > { %3458 = vst.msk [vmem:[#allocation5 + $0x40] sm:$0xff] %vm3453_vm2, %v3366_v14  ;;  %2973 = vrot.lane.b32.xlu1 %v2908_v23, %s5696_s26  ;;  %v2556_v48 = vmax.f32 %v2524_v55, 0.0 }
 0x3bb   : > { %3651 = vst.msk [vmem:[#allocation5 + $0x40] sm:$0xff] %vm3646_vm3, %v3559_v44  ;;  %3550 = vrot.lane.b32.xlu0 %v7599_v46, %s5699_s28  ;;  %v3294_v44 = vld [vmem:[#allocation4 + $0x21] sm:$0xff] }
 0x3bc   : > { %v3753_v9 = vpop.permute.xlu1 %3752  ;;  %v4136_v21 = vld [vmem:[#allocation5 + $0x30] sm:$0xff]  ;;  %2645 = vst.msk [vmem:[#allocation4 + $0x159] sm:$0xff] %vm2561_vm12, %v2556_v48 }
 0x3bd   : > { %3845 = vst.msk [vmem:[#allocation5 + $0x40] sm:$0xff] %vm3840_vm4, %v3753_v9  ;;  %4388 = vmatmul.mubr.f32.vlgmr.msra.gmra.mrb[0].mxu1 %v4136_v21  ;;  %v2982_v34 = vpop.permute.xlu0 %2981 }
 0x3be   : > { %3073 = vst.msk [vmem:[#allocation5 + $0x50] sm:$0xff] %vm3067_vm15, %v2982_v34  ;;  %3744 = vrot.lane.b32.xlu1 %v7045_v42, %s5701_s12  ;;  %5264 = vmatprep.mubr.msk.f32.mxu1 %vm2561_vm12, %v4139_v33 }
 0x3bf   : > { %3576 = vrot.lane.b32.xlu0 %v7177_v6, %s5699_s28 }
 0x3c0   : > { %v3946_v50 = vpop.permute.xlu1 %3945 }
 0x3c1   : > { %4038 = vst.msk [vmem:[#allocation5 + $0x40] sm:$0xff] %vm4033_vm6, %v3946_v50  ;;  %v3175_v13 = vpop.permute.xlu0 %3174  ;;  %v4143_v50 = vld [vmem:[#allocation5 + $0x68] sm:$0xff] }
 0x3c2   : > { %3266 = vst.msk [vmem:[#allocation5 + $0x50] sm:$0xff] %vm3260_vm1, %v3175_v13  ;;  %3166 = vrot.lane.b32.xlu1 %v7008_v24, %s5698_s21  ;;  %v2487_v24 = vmul.f32 %v7583_v2, %v5460_v54 }
 0x3c3   : > { %2999 = vrot.lane.b32.xlu0 %v7195_v29, %s5696_s26  ;;  %v7622_v41 = vld [vmem:[#allocation4 + $0x158] sm:$0xff]  ;;  %v2432_v29 = vpop.f32.mrb[29].mxu0 }
 0x3c4   : > { %v3561_v18 = vpop.permute.xlu1 %3560  ;;  %v7627_v43 = vld [vmem:[#allocation4 + $0x152] sm:$0xff]  ;;  %v7629_v31 = vld [vmem:[#allocation4 + $0x15a] sm:$0xff]  ;;  %2711 = vst.msk [vmem:[#allocation5 + $0x1d0] sm:$0xff] %vm2561_vm12, %v7622_v41  ;;  %v2486_v35 = vmul.f32 %v7583_v2, %v2432_v29  ;;  %v2526_v14 = vadd.f32 %v7594_v32, %v2487_v24 }
 0x3c5   : > { %v3368_v28 = vpop.permute.xlu0 %3367  ;;  %4122 = vst.msk [vmem:[#allocation5 + $0x188] sm:$0xff] %vm2561_vm12, %v7627_v43  ;;  %4123 = vst.msk [vmem:[#allocation5 + $0x198] sm:$0xff] %vm2561_vm12, %v7629_v31 }
 0x3c6   : > { %3459 = vst.msk [vmem:[#allocation5 + $0x50] sm:$0xff] %vm3453_vm2, %v3368_v28  ;;  %3937 = vrot.lane.b32.xlu1 %v7032_v39, %s5702_s25  ;;  %v2525_v55 = vadd.f32 %v7594_v32, %v2486_v35  ;;  %v2558_v49 = vmax.f32 %v2526_v14, 0.0 }
 0x3c7   : > { %3652 = vst.msk [vmem:[#allocation5 + $0x50] sm:$0xff] %vm3646_vm3, %v3561_v18  ;;  %3770 = vrot.lane.b32.xlu0 %v7213_v26, %s5701_s12 }
 0x3c8   : > { %v3755_v39 = vpop.permute.xlu1 %3754  ;;  %v4138_v23 = vld [vmem:[#allocation5 + $0x40] sm:$0xff]  ;;  %v2557_v9 = vmax.f32 %v2525_v55, 0.0  ;;  %2647 = vst.msk [vmem:[#allocation4 + $0x171] sm:$0xff] %vm2561_vm12, %v2558_v49  ;;  %v4145_v49 = vld [vmem:[#allocation5 + $0x78] sm:$0xff] }
 0x3c9   : > { %3846 = vst.msk [vmem:[#allocation5 + $0x50] sm:$0xff] %vm3840_vm4, %v3755_v39  ;;  %4393 = vmatmul.mubr.f32.gmra.mrb[2].mxu1 %v4138_v23  ;;  %v2984_v11 = vpop.permute.xlu0 %2983  ;;  %v3295_v55 = vld [vmem:[#allocation4 + $0x31] sm:$0xff] }
 0x3ca   : > { %3074 = vst.msk [vmem:[#allocation5 + $0x60] sm:$0xff] %vm3067_vm15, %v2984_v11  ;;  %3359 = vrot.lane.b32.xlu1 %v3294_v44, %s5700_s30  ;;  %5265 = vmatprep.mubr.msk.f32.mxu1 %vm2561_vm12, %v4141_v63 }
 0x3cb   : > { %3192 = vrot.lane.b32.xlu0 %v7215_v27, %s5698_s21  ;;  %2646 = vst.msk [vmem:[#allocation4 + $0x169] sm:$0xff] %vm2561_vm12, %v2557_v9 }
 0x3cc   : > { %v3948_v48 = vpop.permute.xlu1 %3947 }
 0x3cd   : > { %4039 = vst.msk [vmem:[#allocation5 + $0x50] sm:$0xff] %vm4033_vm6, %v3948_v48  ;;  %v3177_v21 = vpop.permute.xlu0 %3176 }
 0x3ce   : > { %3267 = vst.msk [vmem:[#allocation5 + $0x60] sm:$0xff] %vm3260_vm1, %v3177_v21  ;;  %3385 = vrot.lane.b32.xlu1 %v7211_v25, %s5700_s30 }
 0x3cf   : > { %3963 = vrot.lane.b32.xlu0 %v7205_v38, %s5702_s25  ;;  %v7677_v28 = vld [vmem:[#allocation4 + $0x172] sm:$0xff] }
 0x3d0   : > { %v3563_v61 = vpop.permute.xlu1 %3562  ;;  %4125 = vst.msk [vmem:[#allocation5 + $0x1b8] sm:$0xff] %vm2561_vm12, %v7677_v28 }
 0x3d1   : > { %v3370_v27 = vpop.permute.xlu0 %3369 }
 0x3d2   : > { %3460 = vst.msk [vmem:[#allocation5 + $0x60] sm:$0xff] %vm3453_vm2, %v3370_v27  ;;  %2975 = vrot.lane.b32.xlu1 %v7599_v46, %s5696_s26  ;;  %v7667_v13 = vld [vmem:[#allocation4 + $0x168] sm:$0xff]  ;;  %v7669_v18 = vld [vmem:[#allocation4 + $0x170] sm:$0xff]  ;;  %v5463_v46 = vpop.f32.mrb[30].mxu0 }
 0x3d3   : > { %3653 = vst.msk [vmem:[#allocation5 + $0x60] sm:$0xff] %vm3646_vm3, %v3563_v61  ;;  %3552 = vrot.lane.b32.xlu0 %v7361_v4, %s5699_s28  ;;  %v7675_v4 = vld [vmem:[#allocation4 + $0x16a] sm:$0xff]  ;;  %v2489_v54 = vmul.f32 %v7583_v2, %v5463_v46  ;;  %v2442_v24 = vpop.f32.mrb[31].mxu0 }
 0x3d4   : > { %v3757_v34 = vpop.permute.xlu1 %3756  ;;  %v4140_v33 = vld [vmem:[#allocation5 + $0x50] sm:$0xff]  ;;  %2712 = vst.msk [vmem:[#allocation5 + $0x1e0] sm:$0xff] %vm2561_vm12, %v7667_v13  ;;  %2713 = vst.msk [vmem:[#allocation5 + $0x1f0] sm:$0xff] %vm2561_vm12, %v7669_v18  ;;  %v2488_v29 = vmul.f32 %v7583_v2, %v2442_v24  ;;  %v7741_v46 = vld [vmem:[%s8484_s7] sm:$0xf] }
 0x3d5   : > { %3847 = vst.msk [vmem:[#allocation5 + $0x60] sm:$0xff] %vm3840_vm4, %v3757_v34  ;;  %4398 = vmatmul.mubr.f32.gmra.mrb[4].mxu1 %v4140_v33  ;;  %v2986_v25 = vpop.permute.xlu0 %2985  ;;  %v2528_v23 = vadd.f32 %v7594_v32, %v2489_v54  ;;  %v3874_v2 = vld [vmem:[#allocation4 + $0x39] sm:$0xff]  ;;  %5464 = vmatprep.subr.msk.mxu0 %vm2222_vm5, %v7741_v46 }
 0x3d6   : > { %3075 = vst.msk [vmem:[#allocation5 + $0x70] sm:$0xff] %vm3067_vm15, %v2986_v25  ;;  %3746 = vrot.lane.b32.xlu1 %v7037_v40, %s5701_s12  ;;  %5266 = vmatprep.mubr.msk.f32.mxu1 %vm2561_vm12, %v4143_v50  ;;  %v2527_v35 = vadd.f32 %v7594_v32, %v2488_v29  ;;  %v4147_v50 = vld [vmem:[#allocation5 + $0x88] sm:$0xff] }
 0x3d7   : > { %3578 = vrot.lane.b32.xlu0 %v7226_v52, %s5699_s28  ;;  %4124 = vst.msk [vmem:[#allocation5 + $0x1a8] sm:$0xff] %vm2561_vm12, %v7675_v4  ;;  %v2560_v11 = vmax.f32 %v2528_v23, 0.0 }
 0x3d8   : > { %v3950_v40 = vpop.permute.xlu1 %3949  ;;  %v2559_v63 = vmax.f32 %v2527_v35, 0.0  ;;  %v4149_v35 = vld [vmem:[#allocation5 + $0x98] sm:$0xff] }
 0x3d9   : > { %4040 = vst.msk [vmem:[#allocation5 + $0x60] sm:$0xff] %vm4033_vm6, %v3950_v40  ;;  %v3179_v39 = vpop.permute.xlu0 %3178  ;;  %v3875_v40 = vld [vmem:[#allocation4 + $0x49] sm:$0xff] }
 0x3da   : > { %3268 = vst.msk [vmem:[#allocation5 + $0x70] sm:$0xff] %vm3260_vm1, %v3179_v39  ;;  %3168 = vrot.lane.b32.xlu1 %v7045_v42, %s5698_s21 }
 0x3db   : > { %3001 = vrot.lane.b32.xlu0 %v7177_v6, %s5696_s26  ;;  %2649 = vst.msk [vmem:[#allocation4 + $0x189] sm:$0xff] %vm2561_vm12, %v2560_v11  ;;  %2648 = vst.msk [vmem:[#allocation4 + $0x181] sm:$0xff] %vm2561_vm12, %v2559_v63 }
 0x3dc   : > { %v3565_v44 = vpop.permute.xlu1 %3564 }
 0x3dd   : > { %v3372_v14 = vpop.permute.xlu0 %3371 }
 0x3de   : > { %3461 = vst.msk [vmem:[#allocation5 + $0x70] sm:$0xff] %vm3453_vm2, %v3372_v14  ;;  %3939 = vrot.lane.b32.xlu1 %v3874_v2, %s5702_s25 }
 0x3df   : > { %3654 = vst.msk [vmem:[#allocation5 + $0x70] sm:$0xff] %vm3646_vm3, %v3565_v44  ;;  %3772 = vrot.lane.b32.xlu0 %v7271_v56, %s5701_s12 }
 0x3e0   : > { %v3759_v42 = vpop.permute.xlu1 %3758  ;;  %v4142_v6 = vld [vmem:[#allocation5 + $0x60] sm:$0xff] }
 0x3e1   : > { %3848 = vst.msk [vmem:[#allocation5 + $0x70] sm:$0xff] %vm3840_vm4, %v3759_v42  ;;  %4403 = vmatmul.mubr.f32.gmra.mrb[6].mxu1 %v4142_v6  ;;  %v2988_v32 = vpop.permute.xlu0 %2987  ;;  %v4151_v42 = vld [vmem:[#allocation5 + $0xa8] sm:$0xff] }
 0x3e2   : > { %3076 = vst.msk [vmem:[#allocation5 + $0x80] sm:$0xff] %vm3067_vm15, %v2988_v32  ;;  %3361 = vrot.lane.b32.xlu1 %v3295_v55, %s5700_s30  ;;  %5267 = vmatprep.mubr.msk.f32.mxu1 %vm2561_vm12, %v4145_v49  ;;  %v7716_v21 = vld [vmem:[#allocation4 + $0x182] sm:$0xff]  ;;  %v7718_v61 = vld [vmem:[#allocation4 + $0x18a] sm:$0xff] }
 0x3e3   : > { %3194 = vrot.lane.b32.xlu0 %v7213_v26, %s5698_s21  ;;  %4126 = vst.msk [vmem:[#allocation5 + $0x1c8] sm:$0xff] %vm2561_vm12, %v7716_v21  ;;  %4127 = vst.msk [vmem:[#allocation5 + $0x1d8] sm:$0xff] %vm2561_vm12, %v7718_v61 }
 0x3e4   : > { %v3952_v48 = vpop.permute.xlu1 %3951 }
 0x3e5   : > { %4041 = vst.msk [vmem:[#allocation5 + $0x70] sm:$0xff] %vm4033_vm6, %v3952_v48  ;;  %v3181_v9 = vpop.permute.xlu0 %3180  ;;  %v4153_v48 = vld [vmem:[#allocation5 + $0xb8] sm:$0xff] }
 0x3e6   : > { %3269 = vst.msk [vmem:[#allocation5 + $0x80] sm:$0xff] %vm3260_vm1, %v3181_v9  ;;  %3387 = vrot.lane.b32.xlu1 %v7205_v38, %s5700_s30  ;;  %v3488_v38 = vld [vmem:[#allocation4 + $0x32] sm:$0xff] }
 0x3e7   : > { %3965 = vrot.lane.b32.xlu0 %v7267_v3, %s5702_s25 }
 0x3e8   : > { %v3567_v26 = vpop.permute.xlu1 %3566 }
 0x3e9   : > { %v3374_v27 = vpop.permute.xlu0 %3373 }
 0x3ea   : > { %3462 = vst.msk [vmem:[#allocation5 + $0x80] sm:$0xff] %vm3453_vm2, %v3374_v27  ;;  %3580 = vrot.lane.b32.xlu1 %v7207_v62, %s5699_s28 }
 0x3eb   : > { %3655 = vst.msk [vmem:[#allocation5 + $0x80] sm:$0xff] %vm3646_vm3, %v3567_v26  ;;  %3554 = vrot.lane.b32.xlu0 %v3488_v38, %s5699_s28  ;;  %v3891_v26 = vld [vmem:[#allocation4 + $0x109] sm:$0xff] }
 0x3ec   : > { %v3761_v34 = vpop.permute.xlu1 %3760  ;;  %v4144_v33 = vld [vmem:[#allocation5 + $0x70] sm:$0xff] }
 0x3ed   : > { %3849 = vst.msk [vmem:[#allocation5 + $0x80] sm:$0xff] %vm3840_vm4, %v3761_v34  ;;  %4408 = vmatmul.mubr.f32.gmra.mrb[8].mxu1 %v4144_v33  ;;  %v2990_v25 = vpop.permute.xlu0 %2989  ;;  %v4155_v34 = vld [vmem:[#allocation5 + $0xc8] sm:$0xff] }
 0x3ee   : > { %3077 = vst.msk [vmem:[#allocation5 + $0x90] sm:$0xff] %vm3067_vm15, %v2990_v25  ;;  %3003 = vrot.lane.b32.xlu1 %v7226_v52, %s5696_s26  ;;  %5268 = vmatprep.mubr.msk.f32.mxu1 %vm2561_vm12, %v4147_v50 }
 0x3ef   : > { %3748 = vrot.lane.b32.xlu0 %v7069_v15, %s5701_s12 }
 0x3f0   : > { %v3954_v54 = vpop.permute.xlu1 %3953 }
 0x3f1   : > { %4042 = vst.msk [vmem:[#allocation5 + $0x80] sm:$0xff] %vm4033_vm6, %v3954_v54  ;;  %v3183_v24 = vpop.permute.xlu0 %3182  ;;  %v3892_v54 = vld [vmem:[#allocation4 + $0x111] sm:$0xff] }
 0x3f2   : > { %3270 = vst.msk [vmem:[#allocation5 + $0x90] sm:$0xff] %vm3260_vm1, %v3183_v24  ;;  %3941 = vrot.lane.b32.xlu1 %v3875_v40, %s5702_s25 }
 0x3f3   : > { %3774 = vrot.lane.b32.xlu0 %v7269_v53, %s5701_s12 }
 0x3f4   : > { %v3569_v15 = vpop.permute.xlu1 %3568 }
 0x3f5   : > { %v3376_v52 = vpop.permute.xlu0 %3375 }
 0x3f6   : > { %3463 = vst.msk [vmem:[#allocation5 + $0x90] sm:$0xff] %vm3453_vm2, %v3376_v52  ;;  %3967 = vrot.lane.b32.xlu1 %v7261_v30, %s5702_s25 }
 0x3f7   : > { %3656 = vst.msk [vmem:[#allocation5 + $0x90] sm:$0xff] %vm3646_vm3, %v3569_v15  ;;  %3196 = vrot.lane.b32.xlu0 %v7271_v56, %s5698_s21 }
 0x3f8   : > { %v3763_v29 = vpop.permute.xlu1 %3762  ;;  %v4146_v39 = vld [vmem:[#allocation5 + $0x80] sm:$0xff] }
 0x3f9   : > { %3850 = vst.msk [vmem:[#allocation5 + $0x90] sm:$0xff] %vm3840_vm4, %v3763_v29  ;;  %4413 = vmatmul.mubr.f32.gmra.mrb[10].mxu1 %v4146_v39  ;;  %v2992_v23 = vpop.permute.xlu0 %2991  ;;  %v7841_v39 = vld [vmem:[#allocation4 + $0x121] sm:$0xff] }
 0x3fa   : > { %3078 = vst.msk [vmem:[#allocation5 + $0xa0] sm:$0xff] %vm3067_vm15, %v2992_v23  ;;  %3582 = vrot.lane.b32.xlu1 %v7283_v19, %s5699_s28  ;;  %5269 = vmatprep.mubr.msk.f32.mxu1 %vm2561_vm12, %v4149_v35  ;;  %v4157_v23 = vld [vmem:[#allocation5 + $0xd8] sm:$0xff] }
 0x3fb   : > { %3389 = vrot.lane.b32.xlu0 %v7267_v3, %s5700_s30 }
 0x3fc   : > { %v3956_v11 = vpop.permute.xlu1 %3955 }
 0x3fd   : > { %4043 = vst.msk [vmem:[#allocation5 + $0x90] sm:$0xff] %vm4033_vm6, %v3956_v11  ;;  %v3185_v56 = vpop.permute.xlu0 %3184 }
 0x3fe   : > { %3271 = vst.msk [vmem:[#allocation5 + $0xa0] sm:$0xff] %vm3260_vm1, %v3185_v56  ;;  %3776 = vrot.lane.b32.xlu1 %v7335_v59, %s5701_s12 }
 0x3ff   : > { %3005 = vrot.lane.b32.xlu0 %v7207_v62, %s5696_s26 }
 0x400   : > { %v3571_v44 = vpop.permute.xlu1 %3570 }
 0x401   : > { %v3378_v63 = vpop.permute.xlu0 %3377 }
 0x402   : > { %3464 = vst.msk [vmem:[#allocation5 + $0xa0] sm:$0xff] %vm3453_vm2, %v3378_v63  ;;  %3969 = vrot.lane.b32.xlu1 %v7331_v47, %s5702_s25 }
 0x403   : > { %3657 = vst.msk [vmem:[#allocation5 + $0xa0] sm:$0xff] %vm3646_vm3, %v3571_v44  ;;  %3198 = vrot.lane.b32.xlu0 %v7269_v53, %s5698_s21 }
 0x404   : > { %v3765_v3 = vpop.permute.xlu1 %3764  ;;  %v4148_v14 = vld [vmem:[#allocation5 + $0x90] sm:$0xff] }
 0x405   : > { %3851 = vst.msk [vmem:[#allocation5 + $0xa0] sm:$0xff] %vm3840_vm4, %v3765_v3  ;;  %4418 = vmatmul.mubr.f32.gmra.mrb[12].mxu1 %v4148_v14  ;;  %v2994_v2 = vpop.permute.xlu0 %2993  ;;  %v4133_v14 = vld [vmem:[#allocation5 + $0x18] sm:$0xff] }
 0x406   : > { %3079 = vst.msk [vmem:[#allocation5 + $0xb0] sm:$0xff] %vm3067_vm15, %v2994_v2  ;;  %3584 = vrot.lane.b32.xlu1 %v7263_v1, %s5699_s28  ;;  %5270 = vmatprep.mubr.msk.f32.mxu1 %vm2561_vm12, %v4151_v42  ;;  %v7870_v2 = vld [vmem:[#allocation4 + $0x129] sm:$0xff] }
 0x407   : > { %3391 = vrot.lane.b32.xlu0 %v7261_v30, %s5700_s30 }
 0x408   : > { %v3958_v62 = vpop.permute.xlu1 %3957 }
 0x409   : > { %4044 = vst.msk [vmem:[#allocation5 + $0xa0] sm:$0xff] %vm4033_vm6, %v3958_v62  ;;  %v3187_v53 = vpop.permute.xlu0 %3186 }
 0x40a   : > { %3272 = vst.msk [vmem:[#allocation5 + $0xb0] sm:$0xff] %vm3260_vm1, %v3187_v53  ;;  %3778 = vrot.lane.b32.xlu1 %v7333_v5, %s5701_s12 }
 0x40b   : > { %3007 = vrot.lane.b32.xlu0 %v7283_v19, %s5696_s26 }
 0x40c   : > { %v3573_v6 = vpop.permute.xlu1 %3572 }
 0x40d   : > { %v3380_v32 = vpop.permute.xlu0 %3379 }
 0x40e   : > { %3465 = vst.msk [vmem:[#allocation5 + $0xb0] sm:$0xff] %vm3453_vm2, %v3380_v32  ;;  %3971 = vrot.lane.b32.xlu1 %v7324_v16, %s5702_s25 }
 0x40f   : > { %3658 = vst.msk [vmem:[#allocation5 + $0xb0] sm:$0xff] %vm3646_vm3, %v3573_v6  ;;  %3200 = vrot.lane.b32.xlu0 %v7335_v59, %s5698_s21 }
 0x410   : > { %v3767_v30 = vpop.permute.xlu1 %3766  ;;  %v4150_v55 = vld [vmem:[#allocation5 + $0xa0] sm:$0xff] }
 0x411   : > { %3852 = vst.msk [vmem:[#allocation5 + $0xb0] sm:$0xff] %vm3840_vm4, %v3767_v30  ;;  %4423 = vmatmul.mubr.f32.gmra.mrb[14].mxu1 %v4150_v55  ;;  %v2996_v49 = vpop.permute.xlu0 %2995  ;;  %v3895_v55 = vld [vmem:[#allocation4 + $0x139] sm:$0xff] }
 0x412   : > { %3080 = vst.msk [vmem:[#allocation5 + $0xc0] sm:$0xff] %vm3067_vm15, %v2996_v49  ;;  %3586 = vrot.lane.b32.xlu1 %v7346_v8, %s5699_s28  ;;  %5271 = vmatprep.mubr.msk.f32.mxu1 %vm2561_vm12, %v4153_v48 }
 0x413   : > { %3393 = vrot.lane.b32.xlu0 %v7331_v47, %s5700_s30 }
 0x414   : > { %v3960_v19 = vpop.permute.xlu1 %3959 }
 0x415   : > { %4045 = vst.msk [vmem:[#allocation5 + $0xb0] sm:$0xff] %vm4033_vm6, %v3960_v19  ;;  %v3189_v16 = vpop.permute.xlu0 %3188 }
 0x416   : > { %3273 = vst.msk [vmem:[#allocation5 + $0xc0] sm:$0xff] %vm3260_vm1, %v3189_v16  ;;  %3780 = vrot.lane.b32.xlu1 %v7478_v57, %s5701_s12 }
 0x417   : > { %3009 = vrot.lane.b32.xlu0 %v7263_v1, %s5696_s26  ;;  %v3312_v1 = vld [vmem:[#allocation4 + $0xf9] sm:$0xff] }
 0x418   : > { %v2972_v59 = vpop.permute.xlu1 %2971 }
 0x419   : > { %3068 = vst.msk [vmem:[#allocation5] sm:$0xff] %vm3067_vm15, %v2972_v59  ;;  %v3382_v9 = vpop.permute.xlu0 %3381 }
 0x41a   : > { %3466 = vst.msk [vmem:[#allocation5 + $0xc0] sm:$0xff] %vm3453_vm2, %v3382_v9  ;;  %3973 = vrot.lane.b32.xlu1 %v3891_v26, %s5702_s25  ;;  %v4135_v9 = vld [vmem:[#allocation5 + $0x28] sm:$0xff] }
 0x41b   : > { %3202 = vrot.lane.b32.xlu0 %v7333_v5, %s5698_s21 }
 0x41c   : > { %v2998_v47 = vpop.permute.xlu1 %2997  ;;  %v4152_v27 = vld [vmem:[#allocation5 + $0xb0] sm:$0xff] }
 0x41d   : > { %3081 = vst.msk [vmem:[#allocation5 + $0xd0] sm:$0xff] %vm3067_vm15, %v2998_v47  ;;  %4428 = vmatmul.mubr.f32.gmra.mrb[16].mxu1 %v4152_v27  ;;  %v3575_v38 = vpop.permute.xlu0 %3574  ;;  %v7915_v47 = vld [vmem:[#allocation4 + $0x141] sm:$0xff] }
 0x41e   : > { %3659 = vst.msk [vmem:[#allocation5 + $0xc0] sm:$0xff] %vm3646_vm3, %v3575_v38  ;;  %5272 = vmatprep.mubr.msk.f32.mxu1 %vm2561_vm12, %v4155_v34  ;;  %3588 = vrot.lane.b32.xlu1 %v7326_v51, %s5699_s28  ;;  %v4161_v34 = vld [vmem:[#allocation5 + $0xf8] sm:$0xff] }
 0x41f   : > { %3395 = vrot.lane.b32.xlu0 %v3312_v1, %s5700_s30 }
 0x420   : > { %v3769_v33 = vpop.permute.xlu1 %3768 }
 0x421   : > { %3853 = vst.msk [vmem:[#allocation5 + $0xc0] sm:$0xff] %vm3840_vm4, %v3769_v33  ;;  %v3165_v5 = vpop.permute.xlu0 %3164 }
 0x422   : > { %3261 = vst.msk [vmem:[#allocation5] sm:$0xff] %vm3260_vm1, %v3165_v5  ;;  %3782 = vrot.lane.b32.xlu1 %v7480_v12, %s5701_s12 }
 0x423   : > { %3011 = vrot.lane.b32.xlu0 %v7346_v8, %s5696_s26 }
 0x424   : > { %v3358_v25 = vpop.permute.xlu1 %3357 }
 0x425   : > { %3454 = vst.msk [vmem:[#allocation5] sm:$0xff] %vm3453_vm2, %v3358_v25  ;;  %v3191_v50 = vpop.permute.xlu0 %3190 }
 0x426   : > { %3274 = vst.msk [vmem:[#allocation5 + $0xd0] sm:$0xff] %vm3260_vm1, %v3191_v50  ;;  %3975 = vrot.lane.b32.xlu1 %v3892_v54, %s5702_s25  ;;  %v7933_v50 = vld [vmem:[#allocation4 + $0x151] sm:$0xff] }
 0x427   : > { %3204 = vrot.lane.b32.xlu0 %v7478_v57, %s5698_s21 }
 0x428   : > { %v3384_v24 = vpop.permute.xlu1 %3383 }
 0x429   : > { %3467 = vst.msk [vmem:[#allocation5 + $0xd0] sm:$0xff] %vm3453_vm2, %v3384_v24  ;;  %v3962_v40 = vpop.permute.xlu0 %3961 }
 0x42a   : > { %4046 = vst.msk [vmem:[#allocation5 + $0xc0] sm:$0xff] %vm4033_vm6, %v3962_v40  ;;  %3590 = vrot.lane.b32.xlu1 %v7485_v10, %s5699_s28 }
 0x42b   : > { %3397 = vrot.lane.b32.xlu0 %v3891_v26, %s5700_s30 }
 0x42c   : > { %v2974_v8 = vpop.permute.xlu1 %2973 }
 0x42d   : > { %3069 = vst.msk [vmem:[#allocation5 + $0x10] sm:$0xff] %vm3067_vm15, %v2974_v8  ;;  %v3551_v15 = vpop.permute.xlu0 %3550 }
 0x42e   : > { %3647 = vst.msk [vmem:[#allocation5] sm:$0xff] %vm3646_vm3, %v3551_v15  ;;  %3784 = vrot.lane.b32.xlu1 %v7518_v0, %s5701_s12 }
 0x42f   : > { %3013 = vrot.lane.b32.xlu0 %v7326_v51, %s5696_s26 }
 0x430   : > { %v3745_v57 = vpop.permute.xlu1 %3744 }
 0x431   : > { %3841 = vst.msk [vmem:[#allocation5] sm:$0xff] %vm3840_vm4, %v3745_v57  ;;  %v3577_v52 = vpop.permute.xlu0 %3576  ;;  %v4154_v29 = vld [vmem:[#allocation5 + $0xc0] sm:$0xff] }
 0x432   : > { %3660 = vst.msk [vmem:[#allocation5 + $0xd0] sm:$0xff] %vm3646_vm3, %v3577_v52  ;;  %4433 = vmatmul.mubr.f32.gmra.mrb[18].mxu1 %v4154_v29  ;;  %3977 = vrot.lane.b32.xlu1 %v7841_v39, %s5702_s25  ;;  %v4163_v29 = vld [vmem:[#allocation5 + $0x108] sm:$0xff] }
 0x433   : > { %5273 = vmatprep.mubr.msk.f32.mxu1 %vm2561_vm12, %v4157_v23  ;;  %3206 = vrot.lane.b32.xlu0 %v7480_v12, %s5698_s21  ;;  %v4615_v23 = vld [vmem:[#allocation2 + $0x49] sm:$0xff] }
 0x434   : > { %v3167_v51 = vpop.permute.xlu1 %3166 }
 0x435   : > { %3262 = vst.msk [vmem:[#allocation5 + $0x10] sm:$0xff] %vm3260_vm1, %v3167_v51  ;;  %v3000_v35 = vpop.permute.xlu0 %2999 }
 0x436   : > { %3082 = vst.msk [vmem:[#allocation5 + $0xe0] sm:$0xff] %vm3067_vm15, %v3000_v35  ;;  %2822 = vrot.lane.b32.xlu1 %v3891_v26, %s5692_s18 }
 0x437   : > { %3399 = vrot.lane.b32.xlu0 %v3892_v54, %s5700_s30 }
 0x438   : > { %v3938_v11 = vpop.permute.xlu1 %3937 }
 0x439   : > { %4034 = vst.msk [vmem:[#allocation5] sm:$0xff] %vm4033_vm6, %v3938_v11  ;;  %v3771_v56 = vpop.permute.xlu0 %3770  ;;  %v4617_v11 = vld [vmem:[#allocation2 + $0x61] sm:$0xff] }
 0x43a   : > { %3854 = vst.msk [vmem:[#allocation5 + $0xd0] sm:$0xff] %vm3840_vm4, %v3771_v56  ;;  %3015 = vrot.lane.b32.xlu1 %v7485_v10, %s5696_s26 }
 0x43b   : > { %3592 = vrot.lane.b32.xlu0 %v7487_v58, %s5699_s28 }
 0x43c   : > { %v3360_v12 = vpop.permute.xlu1 %3359 }
 0x43d   : > { %3455 = vst.msk [vmem:[#allocation5 + $0x10] sm:$0xff] %vm3453_vm2, %v3360_v12  ;;  %v3193_v44 = vpop.permute.xlu0 %3192 }
 0x43e   : > { %3275 = vst.msk [vmem:[#allocation5 + $0xe0] sm:$0xff] %vm3260_vm1, %v3193_v44  ;;  %3208 = vrot.lane.b32.xlu1 %v7518_v0, %s5698_s21  ;;  %v7967_v44 = vld [vmem:[#allocation4 + $0x159] sm:$0xff] }
 0x43f   : > { %3786 = vrot.lane.b32.xlu0 %v7520_v37, %s5701_s12 }
 0x440   : > { %v3386_v63 = vpop.permute.xlu1 %3385  ;;  %v4130_v3 = vld [vmem:[#allocation5] sm:$0xff] }
 0x441   : > { %3468 = vst.msk [vmem:[#allocation5 + $0xe0] sm:$0xff] %vm3453_vm2, %v3386_v63  ;;  %4373 = vmatmul.mubr.f32.vlgmr.msra.gmra.mrb[32].mxu0 %v4130_v3  ;;  %v3964_v10 = vpop.permute.xlu0 %3963 }
 0x442   : > { %4047 = vst.msk [vmem:[#allocation5 + $0xd0] sm:$0xff] %vm4033_vm6, %v3964_v10  ;;  %5261 = vmatprep.mubr.msk.f32.mxu0 %vm2561_vm12, %v4133_v14  ;;  %3401 = vrot.lane.b32.xlu1 %v7841_v39, %s5700_s30  ;;  %v4619_v10 = vld [vmem:[#allocation2 + $0x79] sm:$0xff] }
 0x443   : > { %3979 = vrot.lane.b32.xlu0 %v7870_v2, %s5702_s25  ;;  %5465 = vmatpush3.msk.msra.mxu0 %vm2222_vm5, %v7741_v46  ;;  %v4159_v46 = vld [vmem:[#allocation5 + $0xe8] sm:$0xff] }
 0x444   : > { %v2976_v0 = vpop.permute.xlu1 %2975 }
 0x445   : > { %3070 = vst.msk [vmem:[#allocation5 + $0x20] sm:$0xff] %vm3067_vm15, %v2976_v0  ;;  %v3553_v42 = vpop.permute.xlu0 %3552  ;;  %v4620_v0 = vld [vmem:[#allocation2 + $0x81] sm:$0xff] }
 0x446   : > { %3648 = vst.msk [vmem:[#allocation5 + $0x10] sm:$0xff] %vm3646_vm3, %v3553_v42  ;;  %3594 = vrot.lane.b32.xlu1 %v7524_v7, %s5699_s28  ;;  %v4621_v42 = vld [vmem:[#allocation2 + $0x91] sm:$0xff] }
 0x447   : > { %2824 = vrot.lane.b32.xlu0 %v3892_v54, %s5692_s18  ;;  %v4611_v54 = vld [vmem:[#allocation2 + $0x19] sm:$0xff] }
 0x448   : > { %v3747_v62 = vpop.permute.xlu1 %3746 }
 0x449   : > { %3842 = vst.msk [vmem:[#allocation5 + $0x10] sm:$0xff] %vm3840_vm4, %v3747_v62  ;;  %v3579_v53 = vpop.permute.xlu0 %3578  ;;  %v4156_v6 = vld [vmem:[#allocation5 + $0xd0] sm:$0xff] }
 0x44a   : > { %3661 = vst.msk [vmem:[#allocation5 + $0xe0] sm:$0xff] %vm3646_vm3, %v3579_v53  ;;  %4438 = vmatmul.mubr.f32.gmra.mrb[20].mxu1 %v4156_v6  ;;  %3788 = vrot.lane.b32.xlu1 %v7563_v17, %s5701_s12  ;;  %v4622_v6 = vld [vmem:[#allocation2 + $0x99] sm:$0xff] }
 0x44b   : > { %5274 = vmatprep.mubr.msk.f32.mxu1 %vm2561_vm12, %v4159_v46  ;;  %3017 = vrot.lane.b32.xlu0 %v7487_v58, %s5696_s26  ;;  %v4623_v46 = vld [vmem:[#allocation2 + $0xa9] sm:$0xff] }
 0x44c   : > { %v3169_v32 = vpop.permute.xlu1 %3168 }
 0x44d   : > { %3263 = vst.msk [vmem:[#allocation5 + $0x20] sm:$0xff] %vm3260_vm1, %v3169_v32  ;;  %v3002_v30 = vpop.permute.xlu0 %3001 }
 0x44e   : > { %3083 = vst.msk [vmem:[#allocation5 + $0xf0] sm:$0xff] %vm3067_vm15, %v3002_v30  ;;  %3981 = vrot.lane.b32.xlu1 %v3895_v55, %s5702_s25 }
 0x44f   : > { %3210 = vrot.lane.b32.xlu0 %v7520_v37, %s5698_s21 }
 0x450   : > { %v3940_v49 = vpop.permute.xlu1 %3939 }
 0x451   : > { %4035 = vst.msk [vmem:[#allocation5 + $0x10] sm:$0xff] %vm4033_vm6, %v3940_v49  ;;  %v3773_v48 = vpop.permute.xlu0 %3772  ;;  %v4624_v49 = vld [vmem:[#allocation2 + $0xb1] sm:$0xff] }
 0x452   : > { %3855 = vst.msk [vmem:[#allocation5 + $0xe0] sm:$0xff] %vm3840_vm4, %v3773_v48  ;;  %2826 = vrot.lane.b32.xlu1 %v7841_v39, %s5692_s18  ;;  %v4614_v39 = vld [vmem:[#allocation2 + $0x39] sm:$0xff] }
 0x453   : > { %3403 = vrot.lane.b32.xlu0 %v7870_v2, %s5700_s30 }
 0x454   : > { %v3362_v58 = vpop.permute.xlu1 %3361 }
 0x455   : > { %3456 = vst.msk [vmem:[#allocation5 + $0x20] sm:$0xff] %vm3453_vm2, %v3362_v58  ;;  %v3195_v19 = vpop.permute.xlu0 %3194  ;;  %v4625_v58 = vld [vmem:[#allocation2 + $0xc1] sm:$0xff] }
 0x456   : > { %3276 = vst.msk [vmem:[#allocation5 + $0xf0] sm:$0xff] %vm3260_vm1, %v3195_v19  ;;  %3019 = vrot.lane.b32.xlu1 %v7524_v7, %s5696_s26 }
 0x457   : > { %3596 = vrot.lane.b32.xlu0 %v7526_v36, %s5699_s28 }
 0x458   : > { %v3388_v37 = vpop.permute.xlu1 %3387  ;;  %v4132_v16 = vld [vmem:[#allocation5 + $0x10] sm:$0xff] }
 0x459   : > { %3469 = vst.msk [vmem:[#allocation5 + $0xf0] sm:$0xff] %vm3453_vm2, %v3388_v37  ;;  %4378 = vmatmul.mubr.f32.gmra.mrb[34].mxu0 %v4132_v16  ;;  %v3966_v59 = vpop.permute.xlu0 %3965  ;;  %v4167_v37 = vld [vmem:[#allocation5 + $0x128] sm:$0xff] }
 0x45a   : > { %4048 = vst.msk [vmem:[#allocation5 + $0xe0] sm:$0xff] %vm4033_vm6, %v3966_v59  ;;  %5262 = vmatprep.mubr.msk.f32.mxu0 %vm2561_vm12, %v4135_v9  ;;  %3212 = vrot.lane.b32.xlu1 %v7563_v17, %s5698_s21  ;;  %v4626_v16 = vld [vmem:[#allocation2 + $0xc9] sm:$0xff] }
 0x45b   : > { %3790 = vrot.lane.b32.xlu0 %v7565_v45, %s5701_s12 }
 0x45c   : > { %v3581_v7 = vpop.permute.xlu1 %3580 }
 0x45d   : > { %3662 = vst.msk [vmem:[#allocation5 + $0xf0] sm:$0xff] %vm3646_vm3, %v3581_v7  ;;  %v3555_v26 = vpop.permute.xlu0 %3554  ;;  %v4628_v7 = vld [vmem:[#allocation2 + $0xe1] sm:$0xff] }
 0x45e   : > { %3649 = vst.msk [vmem:[#allocation5 + $0x20] sm:$0xff] %vm3646_vm3, %v3555_v26  ;;  %3405 = vrot.lane.b32.xlu1 %v3895_v55, %s5700_s30  ;;  %v4629_v26 = vld [vmem:[#allocation2 + $0xf1] sm:$0xff] }
 0x45f   : > { %3983 = vrot.lane.b32.xlu0 %v7915_v47, %s5702_s25 }
 0x460   : > { %v3004_v27 = vpop.permute.xlu1 %3003 }
 0x461   : > { %3084 = vst.msk [vmem:[#allocation5 + $0x100] sm:$0xff] %vm3067_vm15, %v3004_v27  ;;  %v3749_v17 = vpop.permute.xlu0 %3748  ;;  %v4158_v38 = vld [vmem:[#allocation5 + $0xe0] sm:$0xff] }
 0x462   : > { %3843 = vst.msk [vmem:[#allocation5 + $0x20] sm:$0xff] %vm3840_vm4, %v3749_v17  ;;  %4443 = vmatmul.mubr.f32.gmra.mrb[22].mxu1 %v4158_v38  ;;  %3598 = vrot.lane.b32.xlu1 %v7570_v60, %s5699_s28 }
 0x463   : > { %5275 = vmatprep.mubr.msk.f32.mxu1 %vm2561_vm12, %v4161_v34  ;;  %2828 = vrot.lane.b32.xlu0 %v7870_v2, %s5692_s18  ;;  %v4165_v2 = vld [vmem:[#allocation5 + $0x118] sm:$0xff] }
 0x464   : > { %v3942_v1 = vpop.permute.xlu1 %3941 }
 0x465   : > { %4036 = vst.msk [vmem:[#allocation5 + $0x20] sm:$0xff] %vm4033_vm6, %v3942_v1  ;;  %v3775_v33 = vpop.permute.xlu0 %3774 }
 0x466   : > { %3856 = vst.msk [vmem:[#allocation5 + $0xf0] sm:$0xff] %vm3840_vm4, %v3775_v33  ;;  %3792 = vrot.lane.b32.xlu1 %v7620_v22, %s5701_s12  ;;  %v4631_v33 = vld [vmem:[#allocation2 + $0x109] sm:$0xff] }
 0x467   : > { %3021 = vrot.lane.b32.xlu0 %v7526_v36, %s5696_s26  ;;  %v4612_v36 = vld [vmem:[#allocation2 + $0x21] sm:$0xff] }
 0x468   : > { %v3968_v5 = vpop.permute.xlu1 %3967 }
 0x469   : > { %4049 = vst.msk [vmem:[#allocation5 + $0xf0] sm:$0xff] %vm4033_vm6, %v3968_v5  ;;  %v3197_v25 = vpop.permute.xlu0 %3196 }
 0x46a   : > { %3277 = vst.msk [vmem:[#allocation5 + $0x100] sm:$0xff] %vm3260_vm1, %v3197_v25  ;;  %3985 = vrot.lane.b32.xlu1 %v7933_v50, %s5702_s25  ;;  %v4169_v25 = vld [vmem:[#allocation5 + $0x138] sm:$0xff] }
 0x46b   : > { %3214 = vrot.lane.b32.xlu0 %v7565_v45, %s5698_s21  ;;  %v4613_v45 = vld [vmem:[#allocation2 + $0x31] sm:$0xff] }
 0x46c   : > { %v3583_v24 = vpop.permute.xlu1 %3582  ;;  %v4134_v40 = vld [vmem:[#allocation5 + $0x20] sm:$0xff] }
 0x46d   : > { %4383 = vmatmul.mubr.f32.gmra.mrb[36].mxu0 %v4134_v40  ;;  %v3390_v8 = vpop.permute.xlu0 %3389 }
 0x46e   : > { %3470 = vst.msk [vmem:[#allocation5 + $0x100] sm:$0xff] %vm3453_vm2, %v3390_v8  ;;  %2830 = vrot.lane.b32.xlu1 %v3895_v55, %s5692_s18  ;;  %5466 = vmatprep.mubr.msk.f32.mxu0 %vm358_vm0, %v4611_v54  ;;  %v7991_v55 = vld [vmem:[#allocation4 + $0x169] sm:$0xff]  ;;  %v4633_v54 = vld [vmem:[#allocation2 + $0x121] sm:$0xff]  ;;  %v4634_v8 = vld [vmem:[#allocation2 + $0x129] sm:$0xff] }
 0x46f   : > { %3663 = vst.msk [vmem:[#allocation5 + $0x100] sm:$0xff] %vm3646_vm3, %v3583_v24  ;;  %3407 = vrot.lane.b32.xlu0 %v7915_v47, %s5700_s30 }
 0x470   : > { %v3777_v15 = vpop.permute.xlu1 %3776  ;;  %v4160_v57 = vld [vmem:[#allocation5 + $0xf0] sm:$0xff] }
 0x471   : > { %3857 = vst.msk [vmem:[#allocation5 + $0x100] sm:$0xff] %vm3840_vm4, %v3777_v15  ;;  %4448 = vmatmul.mubr.f32.gmra.mrb[24].mxu1 %v4160_v57  ;;  %5467 = vmatmul.mubr.msk.f32.vlgmr.msra.gmra.mrb[38].mxu0 %vm358_vm0, %v4612_v36  ;;  %v3006_v52 = vpop.permute.xlu0 %3005  ;;  %v4635_v36 = vld [vmem:[#allocation2 + $0x139] sm:$0xff] }
 0x472   : > { %3085 = vst.msk [vmem:[#allocation5 + $0x110] sm:$0xff] %vm3067_vm15, %v3006_v52  ;;  %5276 = vmatprep.mubr.msk.f32.mxu1 %vm2561_vm12, %v4163_v29  ;;  %3023 = vrot.lane.b32.xlu1 %v7570_v60, %s5696_s26  ;;  %v4616_v60 = vld [vmem:[#allocation2 + $0x51] sm:$0xff] }
 0x473   : > { %3600 = vrot.lane.b32.xlu0 %v7572_v20, %s5699_s28  ;;  %5469 = vmatprep.mubr.msk.f32.mxu0 %vm358_vm0, %v4613_v45  ;;  %v3708_v29 = vld [vmem:[#allocation4 + $0x180] sm:$0xff] }
 0x474   : > { %v3970_v51 = vpop.permute.xlu1 %3969 }
 0x475   : > { %4050 = vst.msk [vmem:[#allocation5 + $0x100] sm:$0xff] %vm4033_vm6, %v3970_v51  ;;  %5470 = vmatmul.mubr.msk.f32.gmra.mrb[40].mxu0 %vm358_vm0, %v4614_v39  ;;  %v3199_v35 = vpop.permute.xlu0 %3198  ;;  %v4636_v39 = vld [vmem:[#allocation2 + $0x141] sm:$0xff] }
 0x476   : > { %3278 = vst.msk [vmem:[#allocation5 + $0x110] sm:$0xff] %vm3260_vm1, %v3199_v35  ;;  %3216 = vrot.lane.b32.xlu1 %v7620_v22, %s5698_s21  ;;  %5472 = vmatprep.mubr.msk.f32.mxu0 %vm358_vm0, %v4615_v23  ;;  %v4618_v22 = vld [vmem:[#allocation2 + $0x69] sm:$0xff]  ;;  %v4637_v35 = vld [vmem:[#allocation2 + $0x151] sm:$0xff] }
 0x477   : > { %3794 = vrot.lane.b32.xlu0 %v7622_v41, %s5701_s12 }
 0x478   : > { %v3585_v56 = vpop.permute.xlu1 %3584 }
 0x479   : > { %5473 = vmatmul.mubr.msk.f32.gmra.mrb[42].mxu0 %vm358_vm0, %v4616_v60  ;;  %v3392_v12 = vpop.permute.xlu0 %3391 }
 0x47a   : > { %3471 = vst.msk [vmem:[#allocation5 + $0x110] sm:$0xff] %vm3453_vm2, %v3392_v12  ;;  %3409 = vrot.lane.b32.xlu1 %v7933_v50, %s5700_s30  ;;  %5475 = vmatprep.mubr.msk.f32.mxu0 %vm358_vm0, %v4617_v11  ;;  %v4171_v11 = vld [vmem:[#allocation5 + $0x148] sm:$0xff]  ;;  %v4638_v12 = vld [vmem:[#allocation2 + $0x159] sm:$0xff] }
 0x47b   : > { %3664 = vst.msk [vmem:[#allocation5 + $0x110] sm:$0xff] %vm3646_vm3, %v3585_v56  ;;  %3987 = vrot.lane.b32.xlu0 %v7967_v44, %s5702_s25  ;;  %v3901_v56 = vld [vmem:[#allocation4 + $0x181] sm:$0xff] }
 0x47c   : > { %v3779_v63 = vpop.permute.xlu1 %3778  ;;  %v4162_v3 = vld [vmem:[#allocation5 + $0x100] sm:$0xff] }
 0x47d   : > { %3858 = vst.msk [vmem:[#allocation5 + $0x110] sm:$0xff] %vm3840_vm4, %v3779_v63  ;;  %4453 = vmatmul.mubr.f32.gmra.mrb[26].mxu1 %v4162_v3  ;;  %5476 = vmatmul.mubr.msk.f32.gmra.mrb[44].mxu0 %vm358_vm0, %v4618_v22  ;;  %v3008_v14 = vpop.permute.xlu0 %3007  ;;  %v4640_v63 = vld [vmem:[#allocation2 + $0x171] sm:$0xff] }
 0x47e   : > { %3086 = vst.msk [vmem:[#allocation5 + $0x120] sm:$0xff] %vm3067_vm15, %v3008_v14  ;;  %5277 = vmatprep.mubr.msk.f32.mxu1 %vm2561_vm12, %v4165_v2  ;;  %3602 = vrot.lane.b32.xlu1 %v7627_v43, %s5699_s28 }
 0x47f   : > { %2832 = vrot.lane.b32.xlu0 %v7915_v47, %s5692_s18  ;;  %5478 = vmatprep.mubr.msk.f32.mxu0 %vm358_vm0, %v4619_v10 }
 0x480   : > { %v3972_v62 = vpop.permute.xlu1 %3971 }
 0x481   : > { %4051 = vst.msk [vmem:[#allocation5 + $0x110] sm:$0xff] %vm4033_vm6, %v3972_v62  ;;  %5479 = vmatmul.mubr.msk.f32.gmra.mrb[46].mxu0 %vm358_vm0, %v4620_v0  ;;  %v3201_v53 = vpop.permute.xlu0 %3200  ;;  %v4173_v62 = vld [vmem:[#allocation5 + $0x158] sm:$0xff] }
 0x482   : > { %3279 = vst.msk [vmem:[#allocation5 + $0x120] sm:$0xff] %vm3260_vm1, %v3201_v53  ;;  %3796 = vrot.lane.b32.xlu1 %v7667_v13, %s5701_s12  ;;  %5481 = vmatprep.mubr.msk.f32.mxu0 %vm358_vm0, %v4621_v42  ;;  %v3709_v53 = vld [vmem:[#allocation4 + $0x188] sm:$0xff] }
 0x483   : > { %3025 = vrot.lane.b32.xlu0 %v7572_v20, %s5696_s26 }
 0x484   : > { %v3587_v32 = vpop.permute.xlu1 %3586 }
 0x485   : > { %5482 = vmatmul.mubr.msk.f32.gmra.mrb[48].mxu0 %vm358_vm0, %v4622_v6  ;;  %v3394_v30 = vpop.permute.xlu0 %3393 }
 0x486   : > { %3472 = vst.msk [vmem:[#allocation5 + $0x120] sm:$0xff] %vm3453_vm2, %v3394_v30  ;;  %3989 = vrot.lane.b32.xlu1 %v7991_v55, %s5702_s25  ;;  %5484 = vmatprep.mubr.msk.f32.mxu0 %vm358_vm0, %v4623_v46  ;;  %v4096_v46 = vld [vmem:[#allocation4 + $0x19a] sm:$0xff] }
 0x487   : > { %3665 = vst.msk [vmem:[#allocation5 + $0x120] sm:$0xff] %vm3646_vm3, %v3587_v32  ;;  %3218 = vrot.lane.b32.xlu0 %v7622_v41, %s5698_s21  ;;  %v4627_v41 = vld [vmem:[#allocation2 + $0xd9] sm:$0xff] }
 0x488   : > { %v3781_v20 = vpop.permute.xlu1 %3780  ;;  %v4164_v48 = vld [vmem:[#allocation5 + $0x110] sm:$0xff]  ;;  %v3902_v32 = vld [vmem:[#allocation4 + $0x189] sm:$0xff]  ;;  %4128 = vst.msk [vmem:[#allocation5 + $0x1e8] sm:$0xff] %vm2561_vm12, %v4096_v46 }
 0x489   : > { %3859 = vst.msk [vmem:[#allocation5 + $0x120] sm:$0xff] %vm3840_vm4, %v3781_v20  ;;  %4458 = vmatmul.mubr.f32.gmra.mrb[28].mxu1 %v4164_v48  ;;  %5485 = vmatmul.mubr.msk.f32.gmra.mrb[50].mxu0 %vm358_vm0, %v4624_v49  ;;  %v3010_v19 = vpop.permute.xlu0 %3009  ;;  %v3710_v48 = vld [vmem:[#allocation4 + $0x198] sm:$0xff] }
 0x48a   : > { %3087 = vst.msk [vmem:[#allocation5 + $0x130] sm:$0xff] %vm3067_vm15, %v3010_v19  ;;  %5278 = vmatprep.mubr.msk.f32.mxu1 %vm2561_vm12, %v4167_v37  ;;  %2834 = vrot.lane.b32.xlu1 %v7933_v50, %s5692_s18  ;;  %v4632_v50 = vld [vmem:[#allocation2 + $0x111] sm:$0xff]  ;;  %v4641_v19 = vld [vmem:[#allocation2 + $0x181] sm:$0xff] }
 0x48b   : > { %3411 = vrot.lane.b32.xlu0 %v7967_v44, %s5700_s30  ;;  %5487 = vmatprep.mubr.msk.f32.mxu0 %vm358_vm0, %v4625_v58 }
 0x48c   : > { %v3974_v59 = vpop.permute.xlu1 %3973 }
 0x48d   : > { %4052 = vst.msk [vmem:[#allocation5 + $0x120] sm:$0xff] %vm4033_vm6, %v3974_v59  ;;  %5488 = vmatmul.mubr.msk.f32.gmra.mrb[52].mxu0 %vm358_vm0, %v4626_v16  ;;  %v3203_v9 = vpop.permute.xlu0 %3202  ;;  %v4642_v16 = vld [vmem:[#allocation2 + $0x189] sm:$0xff] }
 0x48e   : > { %3280 = vst.msk [vmem:[#allocation5 + $0x130] sm:$0xff] %vm3260_vm1, %v3203_v9  ;;  %3027 = vrot.lane.b32.xlu1 %v7627_v43, %s5696_s26  ;;  %5490 = vmatprep.mubr.msk.f32.mxu0 %vm358_vm0, %v4627_v41  ;;  %v4630_v43 = vld [vmem:[#allocation2 + $0xf9] sm:$0xff] }
 0x48f   : > { %3604 = vrot.lane.b32.xlu0 %v7629_v31, %s5699_s28  ;;  %v4097_v41 = vld [vmem:[#allocation4 + $0x1a2] sm:$0xff] }
 0x490   : > { %v8017_v47 = vpop.f32.mrb[0].mxu1  ;;  %v3589_v27 = vpop.permute.xlu1 %3588  ;;  %4129 = vst.msk [vmem:[#allocation5 + $0x1f8] sm:$0xff] %vm2561_vm12, %v4097_v41 }
 0x491   : > { %v4391_v17 = vpop.f32.mrb[1].mxu1  ;;  %5491 = vmatmul.mubr.msk.f32.gmra.mrb[54].mxu0 %vm358_vm0, %v4628_v7  ;;  %v3396_v38 = vpop.permute.xlu0 %3395 }
 0x492   : > { %3473 = vst.msk [vmem:[#allocation5 + $0x130] sm:$0xff] %vm3453_vm2, %v3396_v38  ;;  %3220 = vrot.lane.b32.xlu1 %v7667_v13, %s5698_s21  ;;  %5493 = vmatprep.mubr.msk.f32.mxu0 %vm358_vm0, %v4629_v26  ;;  %v8033_v13 = vld [vmem:[#allocation4 + $0x171] sm:$0xff] }
 0x493   : > { %3666 = vst.msk [vmem:[#allocation5 + $0x130] sm:$0xff] %vm3646_vm3, %v3589_v27  ;;  %3798 = vrot.lane.b32.xlu0 %v7669_v18, %s5701_s12  ;;  %v4175_v26 = vld [vmem:[#allocation5 + $0x168] sm:$0xff] }
 0x494   : > { %v3783_v34 = vpop.permute.xlu1 %3782  ;;  %v4166_v1 = vld [vmem:[#allocation5 + $0x120] sm:$0xff] }
 0x495   : > { %3860 = vst.msk [vmem:[#allocation5 + $0x130] sm:$0xff] %vm3840_vm4, %v3783_v34  ;;  %5494 = vmatmul.mubr.msk.f32.gmra.mrb[56].mxu0 %vm358_vm0, %v4630_v43  ;;  %v3012_v5 = vpop.permute.xlu0 %3011  ;;  %4463 = vmatmul.mubr.f32.gmra.mrb[30].mxu1 %v4166_v1  ;;  %v3904_v43 = vld [vmem:[#allocation4 + $0x1a1] sm:$0xff] }
 0x496   : > { %3088 = vst.msk [vmem:[#allocation5 + $0x140] sm:$0xff] %vm3067_vm15, %v3012_v5  ;;  %5279 = vmatprep.mubr.msk.f32.mxu1 %vm2561_vm12, %v4169_v25  ;;  %3413 = vrot.lane.b32.xlu1 %v7991_v55, %s5700_s30  ;;  %v3711_v1 = vld [vmem:[#allocation4 + $0x1a0] sm:$0xff] }
 0x497   : > { %3991 = vrot.lane.b32.xlu0 %v8033_v13, %s5702_s25  ;;  %5496 = vmatprep.mubr.msk.f32.mxu0 %vm358_vm0, %v4631_v33 }
 0x498   : > { %v3976_v24 = vpop.permute.xlu1 %3975 }
 0x499   : > { %4053 = vst.msk [vmem:[#allocation5 + $0x130] sm:$0xff] %vm4033_vm6, %v3976_v24  ;;  %v3205_v40 = vpop.permute.xlu0 %3204  ;;  %5497 = vmatmul.mubr.msk.f32.gmra.mrb[58].mxu0 %vm358_vm0, %v4632_v50 }
 0x49a   : > { %3281 = vst.msk [vmem:[#allocation5 + $0x140] sm:$0xff] %vm3260_vm1, %v3205_v40  ;;  %3606 = vrot.lane.b32.xlu1 %v7675_v4, %s5699_s28  ;;  %5499 = vmatprep.mubr.msk.f32.mxu0 %vm358_vm0, %v4633_v54 }
 0x49b   : > { %2836 = vrot.lane.b32.xlu0 %v7967_v44, %s5692_s18 }
 0x49c   : > { %v8046_v15 = vpop.f32.mrb[2].mxu1  ;;  %v3591_v57 = vpop.permute.xlu1 %3590 }
 0x49d   : > { %v4396_v45 = vpop.f32.mrb[3].mxu1  ;;  %v3398_v52 = vpop.permute.xlu0 %3397  ;;  %5500 = vmatmul.mubr.msk.f32.gmra.mrb[60].mxu0 %vm358_vm0, %v4634_v8 }
 0x49e   : > { %3474 = vst.msk [vmem:[#allocation5 + $0x140] sm:$0xff] %vm3453_vm2, %v3398_v52  ;;  %3800 = vrot.lane.b32.xlu1 %v3708_v29, %s5701_s12  ;;  %5502 = vmatprep.mubr.msk.f32.mxu0 %vm358_vm0, %v4635_v36 }
 0x49f   : > { %3667 = vst.msk [vmem:[#allocation5 + $0x140] sm:$0xff] %vm3646_vm3, %v3591_v57  ;;  %3029 = vrot.lane.b32.xlu0 %v7629_v31, %s5696_s26  ;;  %v4639_v31 = vld [vmem:[#allocation2 + $0x169] sm:$0xff] }
 0x4a0   : > { %v3785_v23 = vpop.permute.xlu1 %3784  ;;  %v4168_v51 = vld [vmem:[#allocation5 + $0x130] sm:$0xff] }
 0x4a1   : > { %3861 = vst.msk [vmem:[#allocation5 + $0x140] sm:$0xff] %vm3840_vm4, %v3785_v23  ;;  %4468 = vmatmul.mubr.f32.gmra.mrb[32].mxu1 %v4168_v51  ;;  %v3014_v60 = vpop.permute.xlu0 %3013  ;;  %5503 = vmatmul.mubr.msk.f32.gmra.mrb[62].mxu0 %vm358_vm0, %v4636_v39 }
 0x4a2   : > { %3089 = vst.msk [vmem:[#allocation5 + $0x150] sm:$0xff] %vm3067_vm15, %v3014_v60  ;;  %5280 = vmatprep.mubr.msk.f32.mxu1 %vm2561_vm12, %v4171_v11  ;;  %3993 = vrot.lane.b32.xlu1 %v3901_v56, %s5702_s25 }
 0x4a3   : > { %3222 = vrot.lane.b32.xlu0 %v7669_v18, %s5698_s21  ;;  %5505 = vmatprep.mubr.msk.f32.mxu0 %vm358_vm0, %v4637_v35  ;;  %v4179_v35 = vld [vmem:[#allocation5 + $0x188] sm:$0xff] }
 0x4a4   : > { %v3978_v44 = vpop.permute.xlu1 %3977 }
 0x4a5   : > { %4054 = vst.msk [vmem:[#allocation5 + $0x140] sm:$0xff] %vm4033_vm6, %v3978_v44  ;;  %v3207_v22 = vpop.permute.xlu0 %3206  ;;  %5506 = vmatmul.mubr.msk.f32.gmra.mrb[64].mxu0 %vm358_vm0, %v4638_v12 }
 0x4a6   : > { %3282 = vst.msk [vmem:[#allocation5 + $0x150] sm:$0xff] %vm3260_vm1, %v3207_v22  ;;  %2838 = vrot.lane.b32.xlu1 %v7991_v55, %s5692_s18  ;;  %5508 = vmatprep.mubr.msk.f32.mxu0 %vm358_vm0, %v4639_v31 }
 0x4a7   : > { %3415 = vrot.lane.b32.xlu0 %v8033_v13, %s5700_s30 }
 0x4a8   : > { %v8071_v18 = vpop.f32.mrb[4].mxu1  ;;  %v2823_v3 = vpop.permute.xlu1 %2822 }
 0x4a9   : > { %2897 = vst.msk [vmem:[#allocation5 + $0x160] sm:$0xff] %vm2874_vm14, %v2823_v3  ;;  %v4401_v10 = vpop.f32.mrb[5].mxu1  ;;  %v3400_v14 = vpop.permute.xlu0 %3399  ;;  %5509 = vmatmul.mubr.msk.f32.gmra.mrb[66].mxu0 %vm358_vm0, %v4640_v63 }
 0x4aa   : > { %3475 = vst.msk [vmem:[#allocation5 + $0x150] sm:$0xff] %vm3453_vm2, %v3400_v14  ;;  %3031 = vrot.lane.b32.xlu1 %v7675_v4, %s5696_s26  ;;  %5511 = vmatprep.mubr.msk.f32.mxu0 %vm358_vm0, %v4641_v19  ;;  %v4181_v10 = vld [vmem:[#allocation5 + $0x198] sm:$0xff] }
 0x4ab   : > { %3608 = vrot.lane.b32.xlu0 %v7677_v28, %s5699_s28 }
 0x4ac   : > { %v3016_v2 = vpop.permute.xlu1 %3015  ;;  %v4170_v0 = vld [vmem:[#allocation5 + $0x140] sm:$0xff] }
 0x4ad   : > { %3090 = vst.msk [vmem:[#allocation5 + $0x160] sm:$0xff] %vm3067_vm15, %v3016_v2  ;;  %v3593_v42 = vpop.permute.xlu0 %3592  ;;  %4473 = vmatmul.mubr.f32.gmra.mrb[34].mxu1 %v4170_v0  ;;  %5512 = vmatmul.mubr.msk.f32.gmra.mrb[68].mxu0 %vm358_vm0, %v4642_v16 }
 0x4ae   : > { %3668 = vst.msk [vmem:[#allocation5 + $0x150] sm:$0xff] %vm3646_vm3, %v3593_v42  ;;  %5281 = vmatprep.mubr.msk.f32.mxu1 %vm2561_vm12, %v4173_v62  ;;  %3224 = vrot.lane.b32.xlu1 %v3708_v29, %s5698_s21 }
 0x4af   : > { %3802 = vrot.lane.b32.xlu0 %v3709_v53, %s5701_s12 }
 0x4b0   : > { %v3209_v4 = vpop.permute.xlu1 %3208 }
 0x4b1   : > { %3283 = vst.msk [vmem:[#allocation5 + $0x160] sm:$0xff] %vm3260_vm1, %v3209_v4  ;;  %v3787_v6 = vpop.permute.xlu0 %3786 }
 0x4b2   : > { %3862 = vst.msk [vmem:[#allocation5 + $0x150] sm:$0xff] %vm3840_vm4, %v3787_v6  ;;  %3417 = vrot.lane.b32.xlu1 %v3901_v56, %s5700_s30 }
 0x4b3   : > { %3995 = vrot.lane.b32.xlu0 %v3902_v32, %s5702_s25 }
 0x4b4   : > { %v8090_v30 = vpop.f32.mrb[6].mxu1  ;;  %v3402_v55 = vpop.permute.xlu1 %3401 }
 0x4b5   : > { %3476 = vst.msk [vmem:[#allocation5 + $0x160] sm:$0xff] %vm3453_vm2, %v3402_v55  ;;  %v4406_v49 = vpop.f32.mrb[7].mxu1  ;;  %v3980_v20 = vpop.permute.xlu0 %3979 }
 0x4b6   : > { %4055 = vst.msk [vmem:[#allocation5 + $0x150] sm:$0xff] %vm4033_vm6, %v3980_v20  ;;  %3610 = vrot.lane.b32.xlu1 %v7716_v21, %s5699_s28  ;;  %v3903_v21 = vld [vmem:[#allocation4 + $0x199] sm:$0xff] }
 0x4b7   : > { %2840 = vrot.lane.b32.xlu0 %v8033_v13, %s5692_s18  ;;  %v4183_v49 = vld [vmem:[#allocation5 + $0x1a8] sm:$0xff]  ;;  %s5335_s18 = sshll.u32 %s5781_s17, 12  ;;  %s5703_s17 = smov [#allocation6]  }
 0x4b8   : > { %v3595_v58 = vpop.permute.xlu1 %3594  ;;  %s5628_s20 = sshll.u32 %s5703_s17, 4  ;;  %s5629_s20 = int_to_ptr.vmem [resolvable:$false] %s5628_s20 }
 0x4b9   : > { %3669 = vst.msk [vmem:[#allocation5 + $0x160] sm:$0xff] %vm3646_vm3, %v3595_v58  ;;  %v2825_v37 = vpop.permute.xlu0 %2824 }
 0x4ba   : > { %2898 = vst.msk [vmem:[#allocation5 + $0x170] sm:$0xff] %vm2874_vm14, %v2825_v37  ;;  %3804 = vrot.lane.b32.xlu1 %v3710_v48, %s5701_s12 }
 0x4bb   : > { %3033 = vrot.lane.b32.xlu0 %v7677_v28, %s5696_s26 }
 0x4bc   : > { %v3789_v59 = vpop.permute.xlu1 %3788 }
 0x4bd   : > { %3863 = vst.msk [vmem:[#allocation5 + $0x160] sm:$0xff] %vm3840_vm4, %v3789_v59  ;;  %v3018_v9 = vpop.permute.xlu0 %3017  ;;  %v4172_v7 = vld [vmem:[#allocation5 + $0x150] sm:$0xff] }
 0x4be   : > { %3091 = vst.msk [vmem:[#allocation5 + $0x170] sm:$0xff] %vm3067_vm15, %v3018_v9  ;;  %4478 = vmatmul.mubr.f32.gmra.mrb[36].mxu1 %v4172_v7  ;;  %3997 = vrot.lane.b32.xlu1 %v3903_v21, %s5702_s25  ;;  %v4185_v21 = vld [vmem:[#allocation5 + $0x1b8] sm:$0xff] }
 0x4bf   : > { %5282 = vmatprep.mubr.msk.f32.mxu1 %vm2561_vm12, %v4175_v26  ;;  %3226 = vrot.lane.b32.xlu0 %v3709_v53, %s5698_s21 }
 0x4c0   : > { %v8111_v28 = vpop.f32.mrb[8].mxu1  ;;  %v3982_v27 = vpop.permute.xlu1 %3981 }
 0x4c1   : > { %4056 = vst.msk [vmem:[#allocation5 + $0x160] sm:$0xff] %vm4033_vm6, %v3982_v27  ;;  %v4411_v17 = vpop.f32.mrb[9].mxu1  ;;  %v3211_v38 = vpop.permute.xlu0 %3210 }
 0x4c2   : > { %3284 = vst.msk [vmem:[#allocation5 + $0x170] sm:$0xff] %vm3260_vm1, %v3211_v38  ;;  %3612 = vrot.lane.b32.xlu1 %v7718_v61, %s5699_s28  ;;  %v4177_v61 = vld [vmem:[#allocation5 + $0x178] sm:$0xff] }
 0x4c3   : > { %3419 = vrot.lane.b32.xlu0 %v3902_v32, %s5700_s30  ;;  %s350_s30 = sand.u32 1, %s5678_s14  }
 0x4c4   : > { %v2827_v34 = vpop.permute.xlu1 %2826  ;;  %s5222_s11 = sshll.u32 %s350_s30, 8 }
 0x4c5   : > { %2899 = vst.msk [vmem:[#allocation5 + $0x180] sm:$0xff] %vm2874_vm14, %v2827_v34  ;;  %v3404_v33 = vpop.permute.xlu0 %3403  ;;  %s8252_s27 = scalar_lea.vmem [#allocation6], %s5222_s11  ;;  %s5630_s11 = scalar_lea.vmem %s5629_s20, 8192 }
 0x4c6   : > { %3477 = vst.msk [vmem:[#allocation5 + $0x170] sm:$0xff] %vm3453_vm2, %v3404_v33  ;;  %3999 = vrot.lane.b32.xlu1 %v3904_v43, %s5702_s25  ;;  %s5156_s26 = sshll.u32 %s8252_s27, 4  ;;  %s8435_s25 = scalar_lea.sflag [#allocation7], %s350_s30  ;;  %s8430_s26 = int_to_ptr.vmem [resolvable:$true] %s5156_s26 }
 0x4c7   : > { %3806 = vrot.lane.b32.xlu0 %v3711_v1, %s5701_s12  ;;  %s8428_s12 = scalar_lea.hbm %s8487_s10, %s5335_s18  ;;  %s5624_s29 = scalar_lea.vmem %s8430_s26, 4096 }
 0x4c8   : > { %v3020_v5 = vpop.permute.xlu1 %3019  ;;  %v4174_v25 = vld [vmem:[#allocation5 + $0x160] sm:$0xff]  ;;  %p5625_p11 = scmp.ne.s32.totalorder %s8430_s26, %s5624_s29  ;;  %p5631_p0 = scmp.lt.s32.totalorder %s8430_s26, %s5629_s20 }
 0x4c9   : > { %3092 = vst.msk [vmem:[#allocation5 + $0x180] sm:$0xff] %vm3067_vm15, %v3020_v5  ;;  %v3597_v13 = vpop.permute.xlu0 %3596  ;;  %4483 = vmatmul.mubr.f32.gmra.mrb[38].mxu1 %v4174_v25  ;;  %v4187_v5 = vld [vmem:[#allocation5 + $0x1c8] sm:$0xff]  ;;  %p5632_p1 = scmp.lt.s32.totalorder %s5630_s11, %s5624_s29 }
 0x4ca   : > { %3670 = vst.msk [vmem:[#allocation5 + $0x170] sm:$0xff] %vm3646_vm3, %v3597_v13  ;;  %5283 = vmatprep.mubr.msk.f32.mxu1 %vm2561_vm12, %v4177_v61  ;;  %p5626_p12 = pnand %p5625_p11, %p5798_p5 }
 0x4cb   : > { %p5633_p2 = por %p5632_p1, %p5631_p0 }
 0x4cc   : > { %v8125_v50 = vpop.f32.mrb[10].mxu1  ;;  %v3213_v54 = vpop.permute.xlu1 %3212  ;;  %p5627_p13 = pneg %p5626_p12 }
 0x4cd   : > { %3285 = vst.msk [vmem:[#allocation5 + $0x180] sm:$0xff] %vm3260_vm1, %v3213_v54  ;;  %v4416_v24 = vpop.f32.mrb[11].mxu1  ;;  %v3791_v40 = vpop.permute.xlu0 %3790 }
 0x4ce   : > { %3864 = vst.msk [vmem:[#allocation5 + $0x170] sm:$0xff] %vm3840_vm4, %v3791_v40  ;;  %p5634_p3 = pnand %p5633_p2, %p5627_p13 }
 0x4d0   : > { %v3406_v8 = vpop.permute.xlu1 %3405 }
 0x4d1   : > { %3478 = vst.msk [vmem:[#allocation5 + $0x180] sm:$0xff] %vm3453_vm2, %v3406_v8  ;;  %v3984_v36 = vpop.permute.xlu0 %3983 }
 0x4d2   : > { %4057 = vst.msk [vmem:[#allocation5 + $0x170] sm:$0xff] %vm4033_vm6, %v3984_v36 }
 0x4d4   : > { %v3599_v57 = vpop.permute.xlu1 %3598 }
 0x4d5   : > { %3671 = vst.msk [vmem:[#allocation5 + $0x180] sm:$0xff] %vm3646_vm3, %v3599_v57  ;;  %v2829_v45 = vpop.permute.xlu0 %2828 }
 0x4d6   : > { %2900 = vst.msk [vmem:[#allocation5 + $0x190] sm:$0xff] %vm2874_vm14, %v2829_v45 }
 0x4d8   : > { %v8133_v52 = vpop.f32.mrb[12].mxu1  ;;  %v3793_v29 = vpop.permute.xlu1 %3792 }
 0x4d9   : > { %3865 = vst.msk [vmem:[#allocation5 + $0x180] sm:$0xff] %vm3840_vm4, %v3793_v29  ;;  %v4421_v39 = vpop.f32.mrb[13].mxu1  ;;  %v3022_v23 = vpop.permute.xlu0 %3021  ;;  %v4176_v51 = vld [vmem:[#allocation5 + $0x170] sm:$0xff]  ;;  %v4189_v29 = vld [vmem:[#allocation5 + $0x1d8] sm:$0xff] }
 0x4da   : > { %3093 = vst.msk [vmem:[#allocation5 + $0x190] sm:$0xff] %vm3067_vm15, %v3022_v23  ;;  %4488 = vmatmul.mubr.f32.gmra.mrb[40].mxu1 %v4176_v51 }
 0x4db   : > { %5284 = vmatprep.mubr.msk.f32.mxu1 %vm2561_vm12, %v4179_v35 }
 0x4dc   : > { %v3986_v60 = vpop.permute.xlu1 %3985 }
 0x4dd   : > { %4058 = vst.msk [vmem:[#allocation5 + $0x180] sm:$0xff] %vm4033_vm6, %v3986_v60  ;;  %v3215_v11 = vpop.permute.xlu0 %3214 }
 0x4de   : > { %3286 = vst.msk [vmem:[#allocation5 + $0x190] sm:$0xff] %vm3260_vm1, %v3215_v11 }
 0x4e0   : > { %v2831_v56 = vpop.permute.xlu1 %2830 }
 0x4e1   : > { %2901 = vst.msk [vmem:[#allocation5 + $0x1a0] sm:$0xff] %vm2874_vm14, %v2831_v56  ;;  %v3408_v12 = vpop.permute.xlu0 %3407 }
 0x4e2   : > { %3479 = vst.msk [vmem:[#allocation5 + $0x190] sm:$0xff] %vm3453_vm2, %v3408_v12 }
 0x4e4   : > { %v8142_v31 = vpop.f32.mrb[14].mxu1  ;;  %v3024_v44 = vpop.permute.xlu1 %3023  ;;  %v4178_v22 = vld [vmem:[#allocation5 + $0x180] sm:$0xff] }
 0x4e5   : > { %3094 = vst.msk [vmem:[#allocation5 + $0x1a0] sm:$0xff] %vm3067_vm15, %v3024_v44  ;;  %v4426_v63 = vpop.f32.mrb[15].mxu1  ;;  %v3601_v3 = vpop.permute.xlu0 %3600  ;;  %4493 = vmatmul.mubr.f32.gmra.mrb[42].mxu1 %v4178_v22  ;;  %v4191_v22 = vld [vmem:[#allocation5 + $0x1e8] sm:$0xff] }
 0x4e6   : > { %3672 = vst.msk [vmem:[#allocation5 + $0x190] sm:$0xff] %vm3646_vm3, %v3601_v3  ;;  %5285 = vmatprep.mubr.msk.f32.mxu1 %vm2561_vm12, %v4181_v10 }
 0x4e8   : > { %v3217_v14 = vpop.permute.xlu1 %3216 }
 0x4e9   : > { %3287 = vst.msk [vmem:[#allocation5 + $0x1a0] sm:$0xff] %vm3260_vm1, %v3217_v14  ;;  %v3795_v2 = vpop.permute.xlu0 %3794 }
 0x4ea   : > { %3866 = vst.msk [vmem:[#allocation5 + $0x190] sm:$0xff] %vm3840_vm4, %v3795_v2 }
 0x4ec   : > { %v3410_v0 = vpop.permute.xlu1 %3409 }
 0x4ed   : > { %3480 = vst.msk [vmem:[#allocation5 + $0x1a0] sm:$0xff] %vm3453_vm2, %v3410_v0  ;;  %v3988_v42 = vpop.permute.xlu0 %3987 }
 0x4ee   : > { %4059 = vst.msk [vmem:[#allocation5 + $0x190] sm:$0xff] %vm4033_vm6, %v3988_v42 }
 0x4f0   : > { %v8151_v62 = vpop.f32.mrb[16].mxu1  ;;  %v3603_v53 = vpop.permute.xlu1 %3602 }
 0x4f1   : > { %3673 = vst.msk [vmem:[#allocation5 + $0x1a0] sm:$0xff] %vm3646_vm3, %v3603_v53  ;;  %v4431_v4 = vpop.f32.mrb[17].mxu1  ;;  %v2833_v6 = vpop.permute.xlu0 %2832 }
 0x4f2   : > { %2902 = vst.msk [vmem:[#allocation5 + $0x1b0] sm:$0xff] %vm2874_vm14, %v2833_v6  ;;  %v4193_v6 = vld [vmem:[#allocation5 + $0x1f8] sm:$0xff] }
 0x4f4   : > { %v3797_v46 = vpop.permute.xlu1 %3796 }
 0x4f5   : > { %3867 = vst.msk [vmem:[#allocation5 + $0x1a0] sm:$0xff] %vm3840_vm4, %v3797_v46  ;;  %v3026_v32 = vpop.permute.xlu0 %3025  ;;  %v4180_v55 = vld [vmem:[#allocation5 + $0x190] sm:$0xff] }
 0x4f6   : > { %3095 = vst.msk [vmem:[#allocation5 + $0x1b0] sm:$0xff] %vm3067_vm15, %v3026_v32  ;;  %4498 = vmatmul.mubr.f32.gmra.mrb[44].mxu1 %v4180_v55 }
 0x4f7   : > { %5286 = vmatprep.mubr.msk.f32.mxu1 %vm2561_vm12, %v4183_v49 }
 0x4f8   : > { %v3990_v20 = vpop.permute.xlu1 %3989 }
 0x4f9   : > { %4060 = vst.msk [vmem:[#allocation5 + $0x1a0] sm:$0xff] %vm4033_vm6, %v3990_v20  ;;  %v3219_v48 = vpop.permute.xlu0 %3218 }
 0x4fa   : > { %3288 = vst.msk [vmem:[#allocation5 + $0x1b0] sm:$0xff] %vm3260_vm1, %v3219_v48  ;;  %v8208_v48 = vld [vmem:[%s8482_s5] ss:$0 sm:$0xff] }
 0x4fc   : > { %v2835_v58 = vpop.permute.xlu1 %2834 }
 0x4fd   : > { %2903 = vst.msk [vmem:[#allocation5 + $0x1c0] sm:$0xff] %vm2874_vm14, %v2835_v58  ;;  %v3412_v19 = vpop.permute.xlu0 %3411 }
 0x4fe   : > { %3481 = vst.msk [vmem:[#allocation5 + $0x1b0] sm:$0xff] %vm3453_vm2, %v3412_v19  ;;  %v8213_v19 = vld [vmem:[%s8485_s8] ss:$0 sm:$0xff] }
 0x500   : > { %v3028_v37 = vpop.permute.xlu1 %3027  ;;  %v4182_v16 = vld [vmem:[#allocation5 + $0x1a0] sm:$0xff] }
 0x501   : > { %3096 = vst.msk [vmem:[#allocation5 + $0x1c0] sm:$0xff] %vm3067_vm15, %v3028_v37  ;;  %v3605_v41 = vpop.permute.xlu0 %3604  ;;  %4503 = vmatmul.mubr.f32.gmra.mrb[46].mxu1 %v4182_v16 }
 0x502   : > { %3674 = vst.msk [vmem:[#allocation5 + $0x1b0] sm:$0xff] %vm3646_vm3, %v3605_v41  ;;  %5287 = vmatprep.mubr.msk.f32.mxu1 %vm2561_vm12, %v4185_v21 }
 0x504   : > { %v3221_v59 = vpop.permute.xlu1 %3220 }
 0x505   : > { %3289 = vst.msk [vmem:[#allocation5 + $0x1c0] sm:$0xff] %vm3260_vm1, %v3221_v59  ;;  %v8166_v9 = vpop.f32.mrb[18].mxu1  ;;  %v3799_v7 = vpop.permute.xlu0 %3798  ;;  %v8224_v59 = vld [vmem:[%s8486_s9] ss:$0 sm:$0xff] }
 0x506   : > { %3868 = vst.msk [vmem:[#allocation5 + $0x1b0] sm:$0xff] %vm3840_vm4, %v3799_v7  ;;  %v4436_v26 = vpop.f32.mrb[19].mxu1 }
 0x508   : > { %v3414_v27 = vpop.permute.xlu1 %3413 }
 0x509   : > { %3482 = vst.msk [vmem:[#allocation5 + $0x1c0] sm:$0xff] %vm3453_vm2, %v3414_v27  ;;  %v3992_v17 = vpop.permute.xlu0 %3991 }
 0x50a   : > { %4061 = vst.msk [vmem:[#allocation5 + $0x1b0] sm:$0xff] %vm4033_vm6, %v3992_v17  ;;  %v8230_v17 = vld [vmem:[%s8483_s6] ss:$0 sm:$0xff] }
 0x50c   : > { %v3607_v38 = vpop.permute.xlu1 %3606 }
 0x50d   : > { %3675 = vst.msk [vmem:[#allocation5 + $0x1c0] sm:$0xff] %vm3646_vm3, %v3607_v38  ;;  %v2837_v43 = vpop.permute.xlu0 %2836 }
 0x50e   : > { %2904 = vst.msk [vmem:[#allocation5 + $0x1d0] sm:$0xff] %vm2874_vm14, %v2837_v43  ;;  %v4543_v43 = vmul.f32 %v8208_v48, %v8017_v47 }
 0x510   : > { %v3801_v34 = vpop.permute.xlu1 %3800 }
 0x511   : > { %3869 = vst.msk [vmem:[#allocation5 + $0x1c0] sm:$0xff] %vm3840_vm4, %v3801_v34  ;;  %v3030_v1 = vpop.permute.xlu0 %3029  ;;  %v4184_v33 = vld [vmem:[#allocation5 + $0x1b0] sm:$0xff] }
 0x512   : > { %3097 = vst.msk [vmem:[#allocation5 + $0x1d0] sm:$0xff] %vm3067_vm15, %v3030_v1  ;;  %4508 = vmatmul.mubr.f32.gmra.mrb[48].mxu1 %v4184_v33 }
 0x513   : > { %5288 = vmatprep.mubr.msk.f32.mxu1 %vm2561_vm12, %v4187_v5 }
 0x514   : > { %v8176_v25 = vpop.f32.mrb[32].mxu0  ;;  %v3994_v13 = vpop.permute.xlu1 %3993 }
 0x515   : > { %4062 = vst.msk [vmem:[#allocation5 + $0x1c0] sm:$0xff] %vm4033_vm6, %v3994_v13  ;;  %v3223_v61 = vpop.permute.xlu0 %3222  ;;  %v4376_v54 = vpop.f32.mrb[33].mxu0  ;;  %v4540_v16 = vmul.f32 %v8208_v48, %v8176_v25 }
 0x516   : > { %3290 = vst.msk [vmem:[#allocation5 + $0x1d0] sm:$0xff] %vm3260_vm1, %v3223_v61 }
 0x517   : > { %v4579_v33 = vadd.f32 %v8230_v17, %v4540_v16 }
 0x518   : > { %v2839_v24 = vpop.permute.xlu1 %2838 }
 0x519   : > { %2905 = vst.msk [vmem:[#allocation5 + $0x1e0] sm:$0xff] %vm2874_vm14, %v2839_v24  ;;  %v3416_v40 = vpop.permute.xlu0 %3415 }
 0x51a   : > { %3483 = vst.msk [vmem:[#allocation5 + $0x1d0] sm:$0xff] %vm3453_vm2, %v3416_v40 }
 0x51c   : > { %v3032_v8 = vpop.permute.xlu1 %3031  ;;  %v4186_v36 = vld [vmem:[#allocation5 + $0x1c0] sm:$0xff] }
 0x51d   : > { %3098 = vst.msk [vmem:[#allocation5 + $0x1e0] sm:$0xff] %vm3067_vm15, %v3032_v8  ;;  %v8183_v57 = vpop.f32.mrb[20].mxu1  ;;  %v3609_v45 = vpop.permute.xlu0 %3608  ;;  %4513 = vmatmul.mubr.f32.gmra.mrb[50].mxu1 %v4186_v36  ;;  %v4582_v8 = vadd.f32 %v8230_v17, %v4543_v43  ;;  %v4545_v36 = vmul.f32 %v8208_v48, %v8071_v18 }
 0x51e   : > { %3676 = vst.msk [vmem:[#allocation5 + $0x1d0] sm:$0xff] %vm3646_vm3, %v3609_v45  ;;  %v4441_v39 = vpop.f32.mrb[21].mxu1  ;;  %5289 = vmatprep.mubr.msk.f32.mxu1 %vm2561_vm12, %v4189_v29 }
 0x51f   : > { %v4544_v39 = vmul.f32 %v8208_v48, %v8046_v15 }
 0x520   : > { %v3225_v23 = vpop.permute.xlu1 %3224 }
 0x521   : > { %3291 = vst.msk [vmem:[#allocation5 + $0x1e0] sm:$0xff] %vm3260_vm1, %v3225_v23  ;;  %v3803_v51 = vpop.permute.xlu0 %3802 }
 0x522   : > { %3870 = vst.msk [vmem:[#allocation5 + $0x1d0] sm:$0xff] %vm3840_vm4, %v3803_v51 }
 0x524   : > { %v3418_v35 = vpop.permute.xlu1 %3417 }
 0x525   : > { %3484 = vst.msk [vmem:[#allocation5 + $0x1e0] sm:$0xff] %vm3453_vm2, %v3418_v35  ;;  %v3996_v60 = vpop.permute.xlu0 %3995 }
 0x526   : > { %4063 = vst.msk [vmem:[#allocation5 + $0x1d0] sm:$0xff] %vm4033_vm6, %v3996_v60 }
 0x528   : > { %v3611_v11 = vpop.permute.xlu1 %3610 }
 0x529   : > { %3677 = vst.msk [vmem:[#allocation5 + $0x1e0] sm:$0xff] %vm3646_vm3, %v3611_v11  ;;  %v2841_v56 = vpop.permute.xlu0 %2840 }
 0x52a   : > { %2906 = vst.msk [vmem:[#allocation5 + $0x1f0] sm:$0xff] %vm2874_vm14, %v2841_v56 }
 0x52c   : > { %v4379_v12 = vpop.f32.mrb[34].mxu0  ;;  %v3805_v44 = vpop.permute.xlu1 %3804 }
 0x52d   : > { %3871 = vst.msk [vmem:[#allocation5 + $0x1e0] sm:$0xff] %vm3840_vm4, %v3805_v44  ;;  %v4381_v63 = vpop.f32.mrb[35].mxu0  ;;  %v3034_v3 = vpop.permute.xlu0 %3033  ;;  %v4188_v10 = vld [vmem:[#allocation5 + $0x1d0] sm:$0xff]  ;;  %v4541_v37 = vmul.f32 %v8208_v48, %v4379_v12  ;;  %v4584_v44 = vadd.f32 %v8230_v17, %v4545_v36 }
 0x52e   : > { %3099 = vst.msk [vmem:[#allocation5 + $0x1f0] sm:$0xff] %vm3067_vm15, %v3034_v3  ;;  %4518 = vmatmul.mubr.f32.gmra.mrb[52].mxu1 %v4188_v10  ;;  %v4583_v10 = vadd.f32 %v8230_v17, %v4544_v39 }
 0x52f   : > { %5290 = vmatprep.mubr.msk.f32.mxu1 %vm2561_vm12, %v4191_v22  ;;  %v4580_v34 = vadd.f32 %v8230_v17, %v4541_v37  ;;  %v4547_v22 = vmul.f32 %v8208_v48, %v8111_v28 }
 0x530   : > { %v3998_v14 = vpop.permute.xlu1 %3997 }
 0x531   : > { %4064 = vst.msk [vmem:[#allocation5 + $0x1e0] sm:$0xff] %vm4033_vm6, %v3998_v14  ;;  %v3227_v2 = vpop.permute.xlu0 %3226  ;;  %v4546_v14 = vmul.f32 %v8208_v48, %v8090_v30  ;;  %v4586_v30 = vadd.f32 %v8230_v17, %v4547_v22 }
 0x532   : > { %3292 = vst.msk [vmem:[#allocation5 + $0x1f0] sm:$0xff] %vm3260_vm1, %v3227_v2 }
 0x533   : > { %v4585_v16 = vadd.f32 %v8230_v17, %v4546_v14 }
 0x534   : > { %v3613_v0 = vpop.permute.xlu1 %3612 }
 0x535   : > { %v8198_v42 = vpop.f32.mrb[22].mxu1  ;;  %v3420_v53 = vpop.permute.xlu0 %3419 }
 0x536   : > { %3485 = vst.msk [vmem:[#allocation5 + $0x1f0] sm:$0xff] %vm3453_vm2, %v3420_v53  ;;  %v4446_v4 = vpop.f32.mrb[23].mxu1 }
 0x537   : > { %3678 = vst.msk [vmem:[#allocation5 + $0x1f0] sm:$0xff] %vm3646_vm3, %v3613_v0 }
 0x538   : > { %v4190_v46 = vld [vmem:[#allocation5 + $0x1e0] sm:$0xff]  ;;  %v4000_v32 = vpop.permute.xlu1 %3999 }
 0x539   : > { %v3807_v55 = vpop.permute.xlu0 %3806  ;;  %4523 = vmatmul.mubr.f32.gmra.mrb[54].mxu1 %v4190_v46 }
 0x53a   : > { %3872 = vst.msk [vmem:[#allocation5 + $0x1f0] sm:$0xff] %vm3840_vm4, %v3807_v55  ;;  %5291 = vmatprep.mubr.msk.f32.mxu1 %vm2561_vm12, %v4193_v6 }
 0x53b   : > { %4065 = vst.msk [vmem:[#allocation5 + $0x1f0] sm:$0xff] %vm4033_vm6, %v4000_v32 }
 0x540   : > { %v4384_v49 = vpop.f32.mrb[36].mxu0 }
 0x541   : > { %v4386_v20 = vpop.f32.mrb[37].mxu0  ;;  %v4542_v5 = vmul.f32 %v8208_v48, %v4384_v49 }
 0x542   : > { %v4192_v58 = vld [vmem:[#allocation5 + $0x1f0] sm:$0xff]  ;;  %v4549_v20 = vmul.f32 %v8208_v48, %v8133_v52 }
 0x543   : > { %4528 = vmatmul.mubr.f32.gmra.mrb[56].mxu1 %v4192_v58  ;;  %v4581_v23 = vadd.f32 %v8230_v17, %v4542_v5 }
 0x544   : > { %v8218_v41 = vpop.f32.mrb[24].mxu1  ;;  %v5468_v21 = vpop.f32.mrb[38].mxu0 }
 0x545   : > { %v4976_v7 = vmul.f32 %v5468_v21, %v8213_v19  ;;  %v4451_v26 = vpop.f32.mrb[25].mxu1  ;;  %v4809_v27 = vpop.f32.mrb[39].mxu0  ;;  %v4548_v21 = vmul.f32 %v8208_v48, %v8125_v50  ;;  %v4551_v50 = vmul.f32 %v8208_v48, %v8151_v62 }
 0x546   : > { %v4975_v38 = vmul.f32 %v8213_v19, %v4809_v27 }
 0x547   : > { %v5015_v1 = vadd.f32 %v8224_v59, %v4976_v7 }
 0x548   : > { %v5014_v25 = vadd.f32 %v8224_v59, %v4975_v38  ;;  %v5471_v13 = vpop.f32.mrb[40].mxu0 }
 0x549   : > { %v5047_v61 = vadd.f32 %v5015_v1, %v4580_v34  ;;  %v4978_v54 = vmul.f32 %v5471_v13, %v8213_v19  ;;  %v4819_v24 = vpop.f32.mrb[41].mxu0  ;;  %v4587_v13 = vadd.f32 %v8230_v17, %v4548_v21 }
 0x54a   : > { %v5046_v40 = vadd.f32 %v5014_v25, %v4579_v33  ;;  %v4977_v47 = vmul.f32 %v8213_v19, %v4819_v24  ;;  %v4588_v33 = vadd.f32 %v8230_v17, %v4549_v20 }
 0x54b   : > { %v5079_v45 = vmax.f32 %v5047_v61, 0.0  ;;  %v5017_v29 = vadd.f32 %v8224_v59, %v4978_v54  ;;  %v4550_v61 = vmul.f32 %v8208_v48, %v8142_v31  ;;  %v4553_v31 = vmul.f32 %v8208_v48, %v8183_v57 }
 0x54c   : > { %v5078_v51 = vmax.f32 %v5046_v40, 0.0  ;;  %v5016_v35 = vadd.f32 %v8224_v59, %v4977_v47  ;;  %v5474_v60 = vpop.f32.mrb[42].mxu0 }
 0x54d   : > { %5111 = vst [vmem:[%s8252_s27 + $0x8] sm:$0xff] %v5079_v45  ;;  %v5049_v11 = vadd.f32 %v5017_v29, %v4582_v8  ;;  %v4980_v18 = vmul.f32 %v5474_v60, %v8213_v19  ;;  %v4829_v56 = vpop.f32.mrb[43].mxu0  ;;  %v4590_v29 = vadd.f32 %v8230_v17, %v4551_v50 }
 0x54e   : > { %5110 = vst [vmem:[%s8252_s27] sm:$0xff] %v5078_v51  ;;  %v5048_v12 = vadd.f32 %v5016_v35, %v4581_v23  ;;  %v4979_v15 = vmul.f32 %v8213_v19, %v4829_v56  ;;  %v4589_v51 = vadd.f32 %v8230_v17, %v4550_v61  ;;  %v4552_v35 = vmul.f32 %v8208_v48, %v8166_v9 }
 0x54f   : > { %v5081_v63 = vmax.f32 %v5049_v11, 0.0  ;;  %v5019_v3 = vadd.f32 %v8224_v59, %v4980_v18  ;;  %v4555_v9 = vmul.f32 %v8208_v48, %v8218_v41 }
 0x550   : > { %v5080_v2 = vmax.f32 %v5048_v12, 0.0  ;;  %v5018_v0 = vadd.f32 %v8224_v59, %v4979_v15  ;;  %v8266_v53 = vpop.f32.mrb[26].mxu1  ;;  %v5477_v4 = vpop.f32.mrb[44].mxu0 }
 0x551   : > { %5113 = vst [vmem:[%s8252_s27 + $0x18] sm:$0xff] %v5081_v63  ;;  %v5051_v6 = vadd.f32 %v5019_v3, %v4584_v44  ;;  %v4982_v46 = vmul.f32 %v5477_v4, %v8213_v19  ;;  %v4456_v28 = vpop.f32.mrb[27].mxu1  ;;  %v4839_v32 = vpop.f32.mrb[45].mxu0  ;;  %v4592_v3 = vadd.f32 %v8230_v17, %v4553_v31 }
 0x552   : > { %5112 = vst [vmem:[%s8252_s27 + $0x10] sm:$0xff] %v5080_v2  ;;  %v5050_v55 = vadd.f32 %v5018_v0, %v4583_v10  ;;  %v4981_v49 = vmul.f32 %v8213_v19, %v4839_v32  ;;  %v4591_v2 = vadd.f32 %v8230_v17, %v4552_v35  ;;  %v4554_v0 = vmul.f32 %v8208_v48, %v8198_v42 }
 0x553   : > { %v5083_v58 = vmax.f32 %v5051_v6, 0.0  ;;  %v5021_v37 = vadd.f32 %v8224_v59, %v4982_v46 }
 0x554   : > { %v5082_v7 = vmax.f32 %v5050_v55, 0.0  ;;  %v5020_v26 = vadd.f32 %v8224_v59, %v4981_v49  ;;  %v5480_v27 = vpop.f32.mrb[46].mxu0 }
 0x555   : > { %5115 = vst [vmem:[%s8252_s27 + $0x28] sm:$0xff] %v5083_v58  ;;  %v5053_v38 = vadd.f32 %v5021_v37, %v4586_v30  ;;  %v4984_v43 = vmul.f32 %v5480_v27, %v8213_v19  ;;  %v4849_v34 = vpop.f32.mrb[47].mxu0  ;;  %v4594_v30 = vadd.f32 %v8230_v17, %v4555_v9  ;;  %v4593_v37 = vadd.f32 %v8230_v17, %v4554_v0 }
 0x556   : > { %5114 = vst [vmem:[%s8252_s27 + $0x20] sm:$0xff] %v5082_v7  ;;  %v5052_v52 = vadd.f32 %v5020_v26, %v4585_v16  ;;  %v4983_v1 = vmul.f32 %v8213_v19, %v4849_v34  ;;  %v4556_v16 = vmul.f32 %v8208_v48, %v8266_v53 }
 0x557   : > { %v5085_v5 = vmax.f32 %v5053_v38, 0.0  ;;  %v5023_v25 = vadd.f32 %v8224_v59, %v4984_v43 }
 0x558   : > { %v5084_v54 = vmax.f32 %v5052_v52, 0.0  ;;  %v5022_v24 = vadd.f32 %v8224_v59, %v4983_v1  ;;  %v5483_v40 = vpop.f32.mrb[48].mxu0  ;;  %v4595_v50 = vadd.f32 %v8230_v17, %v4556_v16 }
 0x559   : > { %5117 = vst [vmem:[%s8252_s27 + $0x38] sm:$0xff] %v5085_v5  ;;  %v5055_v47 = vadd.f32 %v5023_v25, %v4588_v33  ;;  %v4986_v8 = vmul.f32 %v5483_v40, %v8213_v19  ;;  %v4859_v36 = vpop.f32.mrb[49].mxu0 }
 0x55a   : > { %5116 = vst [vmem:[%s8252_s27 + $0x30] sm:$0xff] %v5084_v54  ;;  %v5054_v62 = vadd.f32 %v5022_v24, %v4587_v13  ;;  %v4985_v45 = vmul.f32 %v8213_v19, %v4859_v36 }
 0x55b   : > { %v5087_v39 = vmax.f32 %v5055_v47, 0.0  ;;  %v5025_v23 = vadd.f32 %v8224_v59, %v4986_v8 }
 0x55c   : > { %v5086_v60 = vmax.f32 %v5054_v62, 0.0  ;;  %v5024_v11 = vadd.f32 %v8224_v59, %v4985_v45  ;;  %v4459_v18 = vpop.f32.mrb[28].mxu1  ;;  %v5486_v56 = vpop.f32.mrb[50].mxu0 }
 0x55d   : > { %5119 = vst [vmem:[%s8252_s27 + $0x48] sm:$0xff] %v5087_v39  ;;  %v5057_v12 = vadd.f32 %v5025_v23, %v4590_v29  ;;  %v4988_v15 = vmul.f32 %v5486_v56, %v8213_v19  ;;  %v4461_v44 = vpop.f32.mrb[29].mxu1  ;;  %v4869_v57 = vpop.f32.mrb[51].mxu0  ;;  %v4557_v20 = vmul.f32 %v8208_v48, %v4459_v18 }
 0x55e   : > { %5118 = vst [vmem:[%s8252_s27 + $0x40] sm:$0xff] %v5086_v60  ;;  %v5056_v22 = vadd.f32 %v5024_v11, %v4589_v51  ;;  %v4987_v63 = vmul.f32 %v8213_v19, %v4869_v57 }
 0x55f   : > { %v5089_v10 = vmax.f32 %v5057_v12, 0.0  ;;  %v5027_v14 = vadd.f32 %v8224_v59, %v4988_v15  ;;  %v4596_v1 = vadd.f32 %v8230_v17, %v4557_v20 }
 0x560   : > { %v5088_v4 = vmax.f32 %v5056_v22, 0.0  ;;  %v5026_v6 = vadd.f32 %v8224_v59, %v4987_v63  ;;  %v5489_v46 = vpop.f32.mrb[52].mxu0 }
 0x561   : > { %5121 = vst [vmem:[%s8252_s27 + $0x58] sm:$0xff] %v5089_v10  ;;  %v5059_v28 = vadd.f32 %v5027_v14, %v4592_v3  ;;  %v4990_v32 = vmul.f32 %v5489_v46, %v8213_v19  ;;  %v4879_v55 = vpop.f32.mrb[53].mxu0 }
 0x562   : > { %5120 = vst [vmem:[%s8252_s27 + $0x50] sm:$0xff] %v5088_v4  ;;  %v5058_v41 = vadd.f32 %v5026_v6, %v4591_v2  ;;  %v4989_v49 = vmul.f32 %v8213_v19, %v4879_v55 }
 0x563   : > { %v5091_v42 = vmax.f32 %v5059_v28, 0.0  ;;  %v5029_v58 = vadd.f32 %v8224_v59, %v4990_v32 }
 0x564   : > { %v5090_v21 = vmax.f32 %v5058_v41, 0.0  ;;  %v5028_v7 = vadd.f32 %v8224_v59, %v4989_v49  ;;  %v5492_v26 = vpop.f32.mrb[54].mxu0 }
 0x565   : > { %5123 = vst [vmem:[%s8252_s27 + $0x68] sm:$0xff] %v5091_v42  ;;  %v5061_v27 = vadd.f32 %v5029_v58, %v4594_v30  ;;  %v4992_v38 = vmul.f32 %v5492_v26, %v8213_v19  ;;  %v4889_v43 = vpop.f32.mrb[55].mxu0 }
 0x566   : > { %5122 = vst [vmem:[%s8252_s27 + $0x60] sm:$0xff] %v5090_v21  ;;  %v5060_v34 = vadd.f32 %v5028_v7, %v4593_v37  ;;  %v4991_v52 = vmul.f32 %v8213_v19, %v4889_v43 }
 0x567   : > { %v5093_v33 = vmax.f32 %v5061_v27, 0.0  ;;  %v5031_v53 = vadd.f32 %v8224_v59, %v4992_v38 }
 0x568   : > { %v5092_v5 = vmax.f32 %v5060_v34, 0.0  ;;  %v5030_v25 = vadd.f32 %v8224_v59, %v4991_v52  ;;  %v4464_v13 = vpop.f32.mrb[30].mxu1  ;;  %v5495_v61 = vpop.f32.mrb[56].mxu0 }
 0x569   : > { %5125 = vst [vmem:[%s8252_s27 + $0x78] sm:$0xff] %v5093_v33  ;;  %v5063_v54 = vadd.f32 %v5031_v53, %v4596_v1  ;;  %v4558_v24 = vmul.f32 %v8208_v48, %v4464_v13  ;;  %v4466_v40 = vpop.f32.mrb[31].mxu1  ;;  %v4899_v47 = vpop.f32.mrb[57].mxu0  ;;  %v4994_v11 = vmul.f32 %v5495_v61, %v8213_v19 }
 0x56a   : > { %5124 = vst [vmem:[%s8252_s27 + $0x70] sm:$0xff] %v5092_v5  ;;  %v5062_v8 = vadd.f32 %v5030_v25, %v4595_v50  ;;  %v4993_v36 = vmul.f32 %v8213_v19, %v4899_v47 }
 0x56b   : > { %v5095_v62 = vmax.f32 %v5063_v54, 0.0  ;;  %v4597_v45 = vadd.f32 %v8230_v17, %v4558_v24  ;;  %v5033_v15 = vadd.f32 %v8224_v59, %v4994_v11 }
 0x56c   : > { %v5094_v29 = vmax.f32 %v5062_v8, 0.0  ;;  %v5032_v31 = vadd.f32 %v8224_v59, %v4993_v36  ;;  %v5498_v39 = vpop.f32.mrb[58].mxu0 }
 0x56d   : > { %5127 = vst [vmem:[%s8252_s27 + $0x88] sm:$0xff] %v5095_v62  ;;  %v4909_v23 = vpop.f32.mrb[59].mxu0  ;;  %v4996_v30 = vmul.f32 %v5498_v39, %v8213_v19 }
 0x56e   : > { %5126 = vst [vmem:[%s8252_s27 + $0x80] sm:$0xff] %v5094_v29  ;;  %v5064_v51 = vadd.f32 %v5032_v31, %v4597_v45  ;;  %v4995_v0 = vmul.f32 %v8213_v19, %v4909_v23 }
 0x56f   : > { %v5035_v37 = vadd.f32 %v8224_v59, %v4996_v30 }
 0x570   : > { %v5096_v35 = vmax.f32 %v5064_v51, 0.0  ;;  %v5501_v60 = vpop.f32.mrb[60].mxu0  ;;  %v5034_v28 = vadd.f32 %v8224_v59, %v4995_v0 }
 0x571   : > { %v4919_v18 = vpop.f32.mrb[61].mxu0  ;;  %v4998_v5 = vmul.f32 %v5501_v60, %v8213_v19 }
 0x572   : > { %5128 = vst [vmem:[%s8252_s27 + $0x90] sm:$0xff] %v5096_v35  ;;  %v4997_v38 = vmul.f32 %v8213_v19, %v4919_v18 }
 0x573   : > { %v5037_v13 = vadd.f32 %v8224_v59, %v4998_v5 }
 0x574   : > { %v4469_v56 = vpop.f32.mrb[32].mxu1  ;;  %v5504_v12 = vpop.f32.mrb[62].mxu0  ;;  %v5036_v52 = vadd.f32 %v8224_v59, %v4997_v38 }
 0x575   : > { %v4559_v44 = vmul.f32 %v8208_v48, %v4469_v56  ;;  %v4471_v57 = vpop.f32.mrb[33].mxu1  ;;  %v4929_v22 = vpop.f32.mrb[63].mxu0  ;;  %v5000_v51 = vmul.f32 %v5504_v12, %v8213_v19 }
 0x576   : > { %v4999_v8 = vmul.f32 %v8213_v19, %v4929_v22 }
 0x577   : > { %v4598_v63 = vadd.f32 %v8230_v17, %v4559_v44  ;;  %v5039_v60 = vadd.f32 %v8224_v59, %v5000_v51 }
 0x578   : > { %v8348_v3 = vpop.f32.mrb[64].mxu0  ;;  %v5038_v45 = vadd.f32 %v8224_v59, %v4999_v8 }
 0x579   : > { %v5065_v9 = vadd.f32 %v5033_v15, %v4598_v63  ;;  %v4939_v10 = vpop.f32.mrb[65].mxu0 }
 0x57a   : > { %v5001_v57 = vmul.f32 %v8213_v19, %v4939_v10 }
 0x57b   : > { %v5097_v14 = vmax.f32 %v5065_v9, 0.0 }
 0x57c   : > { %v8350_v2 = vpop.f32.mrb[66].mxu0  ;;  %v5040_v12 = vadd.f32 %v8224_v59, %v5001_v57 }
 0x57d   : > { %5129 = vst [vmem:[%s8252_s27 + $0x98] sm:$0xff] %v5097_v14  ;;  %v8354_v4 = vpop.f32.mrb[67].mxu0  ;;  %v5004_v38 = vmul.f32 %v8350_v2, %v8213_v19 }
 0x580   : > { %v4474_v6 = vpop.f32.mrb[34].mxu1  ;;  %v8361_v20 = vpop.f32.mrb[68].mxu0 }
 0x581   : > { %v4560_v46 = vmul.f32 %v8208_v48, %v4474_v6  ;;  %v4476_v32 = vpop.f32.mrb[35].mxu1  ;;  %v8363_v42 = vpop.f32.mrb[69].mxu0 }
 0x583   : > { %v4599_v55 = vadd.f32 %v8230_v17, %v4560_v46  ;;  %v5002_v46 = vmul.f32 %v8348_v3, %v8213_v19 }
 0x585   : > { %v5066_v41 = vadd.f32 %v5034_v28, %v4599_v55  ;;  %v5041_v10 = vadd.f32 %v8224_v59, %v5002_v46 }
 0x587   : > { %v5098_v49 = vmax.f32 %v5066_v41, 0.0 }
 0x589   : > { %5130 = vst [vmem:[%s8252_s27 + $0xa0] sm:$0xff] %v5098_v49 }
 0x591   : > { %v4479_v58 = vpop.f32.mrb[36].mxu1 }
 0x592   : > { %v4561_v16 = vmul.f32 %v8208_v48, %v4479_v58  ;;  %v4481_v21 = vpop.f32.mrb[37].mxu1  ;;  %v5003_v58 = vmul.f32 %v8213_v19, %v8354_v4 }
 0x594   : > { %v4600_v7 = vadd.f32 %v8230_v17, %v4561_v16  ;;  %v5042_v3 = vadd.f32 %v8224_v59, %v5003_v58 }
 0x596   : > { %v5067_v26 = vadd.f32 %v5035_v37, %v4600_v7 }
 0x598   : > { %v5099_v27 = vmax.f32 %v5067_v26, 0.0 }
 0x59a   : > { %5131 = vst [vmem:[%s8252_s27 + $0xa8] sm:$0xff] %v5099_v27 }
 0x59c   : > { %v4484_v43 = vpop.f32.mrb[38].mxu1 }
 0x59d   : > { %v4562_v34 = vmul.f32 %v8208_v48, %v4484_v43  ;;  %v4486_v1 = vpop.f32.mrb[39].mxu1 }
 0x59f   : > { %v4601_v33 = vadd.f32 %v8230_v17, %v4562_v34  ;;  %v5043_v34 = vadd.f32 %v8224_v59, %v5004_v38 }
 0x5a1   : > { %v5068_v53 = vadd.f32 %v5036_v52, %v4601_v33 }
 0x5a3   : > { %v5100_v50 = vmax.f32 %v5068_v53, 0.0 }
 0x5a5   : > { %5132 = vst [vmem:[%s8252_s27 + $0xb0] sm:$0xff] %v5100_v50  ;;  %v5005_v50 = vmul.f32 %v8213_v19, %v8363_v42 }
 0x5ad   : > { %v4489_v25 = vpop.f32.mrb[40].mxu1 }
 0x5ae   : > { %v4563_v61 = vmul.f32 %v8208_v48, %v4489_v25  ;;  %v4491_v54 = vpop.f32.mrb[41].mxu1 }
 0x5b0   : > { %v4602_v24 = vadd.f32 %v8230_v17, %v4563_v61 }
 0x5b2   : > { %v5069_v40 = vadd.f32 %v5037_v13, %v4602_v24  ;;  %v5044_v13 = vadd.f32 %v8224_v59, %v5005_v50  ;;  %v5006_v24 = vmul.f32 %v8361_v20, %v8213_v19 }
 0x5b4   : > { %v5101_v47 = vmax.f32 %v5069_v40, 0.0 }
 0x5b6   : > { %5133 = vst [vmem:[%s8252_s27 + $0xb8] sm:$0xff] %v5101_v47  ;;  %v5045_v47 = vadd.f32 %v8224_v59, %v5006_v24 }
 0x5b8   : > { %v4494_v36 = vpop.f32.mrb[42].mxu1 }
 0x5b9   : > { %v4564_v62 = vmul.f32 %v8208_v48, %v4494_v36  ;;  %v4496_v29 = vpop.f32.mrb[43].mxu1 }
 0x5bb   : > { %v4603_v31 = vadd.f32 %v8230_v17, %v4564_v62 }
 0x5bd   : > { %v5070_v39 = vadd.f32 %v5038_v45, %v4603_v31 }
 0x5bf   : > { %v5102_v23 = vmax.f32 %v5070_v39, 0.0 }
 0x5c1   : > { %5134 = vst [vmem:[%s8252_s27 + $0xc0] sm:$0xff] %v5102_v23 }
 0x5c9   : > { %v4499_v35 = vpop.f32.mrb[44].mxu1 }
 0x5ca   : > { %v4565_v11 = vmul.f32 %v8208_v48, %v4499_v35  ;;  %v4501_v18 = vpop.f32.mrb[45].mxu1 }
 0x5cc   : > { %v4604_v56 = vadd.f32 %v8230_v17, %v4565_v11 }
 0x5ce   : > { %v5071_v15 = vadd.f32 %v5039_v60, %v4604_v56 }
 0x5d0   : > { %v5103_v44 = vmax.f32 %v5071_v15, 0.0 }
 0x5d2   : > { %5135 = vst [vmem:[%s8252_s27 + $0xc8] sm:$0xff] %v5103_v44 }
 0x5d4   : > { %v4504_v22 = vpop.f32.mrb[46].mxu1 }
 0x5d5   : > { %v4566_v63 = vmul.f32 %v8208_v48, %v4504_v22  ;;  %v4506_v9 = vpop.f32.mrb[47].mxu1 }
 0x5d7   : > { %v4605_v14 = vadd.f32 %v8230_v17, %v4566_v63 }
 0x5d9   : > { %v5072_v0 = vadd.f32 %v5040_v12, %v4605_v14 }
 0x5db   : > { %v5104_v6 = vmax.f32 %v5072_v0, 0.0 }
 0x5dd   : > { %5136 = vst [vmem:[%s8252_s27 + $0xd0] sm:$0xff] %v5104_v6 }
 0x5e5   : > { %v4509_v28 = vpop.f32.mrb[48].mxu1 }
 0x5e6   : > { %v4567_v32 = vmul.f32 %v8208_v48, %v4509_v28  ;;  %v4511_v55 = vpop.f32.mrb[49].mxu1 }
 0x5e8   : > { %v4606_v41 = vadd.f32 %v8230_v17, %v4567_v32 }
 0x5ea   : > { %v5073_v49 = vadd.f32 %v5041_v10, %v4606_v41 }
 0x5ec   : > { %v5105_v30 = vmax.f32 %v5073_v49, 0.0 }
 0x5ee   : > { %5137 = vst [vmem:[%s8252_s27 + $0xd8] sm:$0xff] %v5105_v30 }
 0x5f0   : > { %v4514_v37 = vpop.f32.mrb[50].mxu1 }
 0x5f1   : > { %v4568_v16 = vmul.f32 %v8208_v48, %v4514_v37  ;;  %v4516_v21 = vpop.f32.mrb[51].mxu1 }
 0x5f3   : > { %v4607_v7 = vadd.f32 %v8230_v17, %v4568_v16 }
 0x5f5   : > { %v5074_v26 = vadd.f32 %v5042_v3, %v4607_v7 }
 0x5f7   : > { %v5106_v27 = vmax.f32 %v5074_v26, 0.0 }
 0x5f9   : > { %5138 = vst [vmem:[%s8252_s27 + $0xe0] sm:$0xff] %v5106_v27 }
 0x601   : > { %v4519_v43 = vpop.f32.mrb[52].mxu1 }
 0x602   : > { %v4569_v4 = vmul.f32 %v8208_v48, %v4519_v43  ;;  %v4521_v52 = vpop.f32.mrb[53].mxu1 }
 0x604   : > { %v4608_v1 = vadd.f32 %v8230_v17, %v4569_v4 }
 0x606   : > { %v5075_v33 = vadd.f32 %v5043_v34, %v4608_v1 }
 0x608   : > { %v5107_v53 = vmax.f32 %v5075_v33, 0.0 }
 0x60a   : > { %5139 = vst [vmem:[%s8252_s27 + $0xe8] sm:$0xff] %v5107_v53 }
 0x60c   : > { %v4524_v5 = vpop.f32.mrb[54].mxu1 }
 0x60d   : > { %v4570_v2 = vmul.f32 %v8208_v48, %v4524_v5  ;;  %v4526_v25 = vpop.f32.mrb[55].mxu1 }
 0x60f   : > { %v4609_v61 = vadd.f32 %v8230_v17, %v4570_v2 }
 0x611   : > { %v5076_v54 = vadd.f32 %v5044_v13, %v4609_v61 }
 0x613   : > { %v5108_v40 = vmax.f32 %v5076_v54, 0.0 }
 0x615   : > { %5140 = vst [vmem:[%s8252_s27 + $0xf0] sm:$0xff] %v5108_v40 }
 0x616   : > { %v4529_v42 = vpop.f32.mrb[56].mxu1 }
 0x617   : > { %v4571_v8 = vmul.f32 %v8208_v48, %v4529_v42  ;;  %v4531_v36 = vpop.f32.mrb[57].mxu1 }
 0x619   : > { %v4610_v62 = vadd.f32 %v8230_v17, %v4571_v8 }
 0x61b   : > { %v5077_v45 = vadd.f32 %v5045_v47, %v4610_v62 }
 0x61d   : > { %v5109_v19 = vmax.f32 %v5077_v45, 0.0 }
 0x61f   : > { %5141 = vst [vmem:[%s8252_s27 + $0xf8] sm:$0xff] %v5109_v19 }
 0x620   : > { %5637 = shalt.err (!%p5634_p3)
}
 0x621   : > { %s5638_s30 = scalar_lea.hbm %s8428_s12, 4096  ;;  %s5642_s21 = scalar_lea.hbm %s8487_s10, 8192 }
 0x622   : > { %p5639_p4 = scmp.ne.s32.totalorder %s8428_s12, %s5638_s30  ;;  %p5643_p9 = scmp.lt.u32.totalorder %s8428_s12, %s8487_s10 }
 0x623   : > { %p5644_p10 = scmp.lt.u32.totalorder %s5642_s21, %s5638_s30  ;;  %p5646_p12 = scmp.lt.u32.totalorder %s5638_s30, %s8428_s12 }
 0x624   : > { %p5640_p7 = pnand %p5639_p4, %p5798_p5 }
 0x625   : > { %p5645_p11 = por %p5644_p10, %p5643_p9 }
 0x626   : > { %p5641_p8 = pneg %p5640_p7 }
 0x627   : > { %p5647_p13 = por %p5646_p12, %p5645_p11 }
 0x629   : > { %p5648_p0 = pnand %p5647_p13, %p5641_p8 }
 0x62b   : > { %5651 = shalt.err (!%p5648_p0)
}
 0x62c   : > { %s5704_s29 = smov 128   ;;  %s8539_s20 = smov 8  }
 0x62d   : > { %5567 = dma.vmem_to_hbm [thread:$0]  (%p5798_p5), %s8430_s26, 4096, %s8428_s12, %s8435_s25, %s5704_s29, %s5704_s29, %s8539_s20  }
 0x62e PF: > { %p5573_p1 = scmp.ge.s32.totalorder %s5686_s16, 2  ;;  %s5171_s11 = sand.u32 1, %s5674_s13  }
 0x62f   : > { %s5172_s30 = scalar_lea.sflag [#allocation7], %s5171_s11 }
 0x630   : > { %p5570_p2 = pnand %p5573_p1, %p5802_p6 }
 0x632   : > { %5669 = dma.done.wait (!%p5570_p2), %s5172_s30, 4096  }
 0x633   : > { %5671 = vsyncadd (!%p5570_p2), %s5172_s30, 4294963200  ;;  %p20_p3 = scmp.ge.s32.totalorder %s5785_s19, 4   ;;  %s8540_s13 = smov %s5678_s14 }
 0x634   : > { %s8541_s14 = smov %s5682_s15  ;;  %s8542_s15 = smov %s5796_s22 }
 0x635   : > { %s8543_s16 = smov %s5785_s19  ;;  %22 = sbr.rel (!%p20_p3) target bundleno = 3 (0x3), region = 99 }
 0x63c   :  { %5177 = vsyncpa [#allocation7], 1 }
 0x63d   :  { %5179 = vsyncpa [#allocation7 + $0x1], 1 }

</bundles_post_ra>
